<compile_context>
chip_gen: v7x
topology: tpu7x:2x2x1
jax: 0.10.0
libtpu: 0.0.40
codegen_flags: <defaults>
</compile_context>

<pallas_src>
import jax
import jax.numpy as jnp
from jax import lax
from jax.experimental import pallas as pl
from jax.experimental.pallas import tpu as pltpu


# ----------------------------- in-kernel helpers -----------------------------

def _conv3x3_relu(xpad_chs, w_ref, b_ref, in_ch, out_ch, out_h, out_w):
    """3x3, stride-1, pad-1 conv + ReLU on zero-haloed per-channel tiles.

    xpad_chs: list of `in_ch` (out_h+2, out_w+2) f32 arrays (zero halo included).
    w_ref:    SMEM ref, flat (out_ch*in_ch*9,) in PyTorch (OC, IC, 3, 3) order.
    b_ref:    SMEM ref, (out_ch,).
    Returns `out_ch` arrays of shape (out_h, out_w).  Pure VPU FMAs.
    """
    # Nine shifted views per input channel, shared by all output channels.
    views = [[xp[di:di + out_h, dj:dj + out_w] for di in range(3) for dj in range(3)]
             for xp in xpad_chs]
    outs = []
    for oc in range(out_ch):
        acc = None
        for ci in range(in_ch):
            base = (oc * in_ch + ci) * 9
            for t in range(9):
                term = w_ref[base + t] * views[ci][t]      # scalar (SMEM) x tile
                acc = term if acc is None else acc + term
        outs.append(jnp.maximum(acc + b_ref[oc], 0.0))
    return outs


def _pool_row_sel(hi, ho, pad, parity):
    """(ho + 2*pad, hi) 0/1 matrix M with M[a + pad, 2a + parity] = 1."""
    out_i = lax.broadcasted_iota(jnp.int32, (ho + 2 * pad, hi), 0)
    in_i = lax.broadcasted_iota(jnp.int32, (ho + 2 * pad, hi), 1)
    return jnp.where(in_i == 2 * (out_i - pad) + parity,
                     jnp.float32(1.0), jnp.float32(0.0))


def _pool_col_sel(wi, wo, pad, parity):
    """(wi, wo + 2*pad) 0/1 matrix M with M[2b + parity, b + pad] = 1."""
    in_i = lax.broadcasted_iota(jnp.int32, (wi, wo + 2 * pad), 0)
    out_i = lax.broadcasted_iota(jnp.int32, (wi, wo + 2 * pad), 1)
    return jnp.where(in_i == 2 * (out_i - pad) + parity,
                     jnp.float32(1.0), jnp.float32(0.0))


def _maxpool2x2(chs, out_pad):
    """2x2 / stride-2 max-pool of each (hi, wi) array in `chs`.

    Returns (hi//2 + 2*out_pad, wi//2 + 2*out_pad) arrays; with out_pad=1 the
    result already carries the zero halo the next 3x3 conv needs (for free).
    Even/odd selection is done with exact 0/1 matmuls (cross-lane compaction on
    the MXU); the max itself is elementwise VPU work.
    """
    hi, wi = chs[0].shape
    ho, wo = hi // 2, wi // 2
    r_even = _pool_row_sel(hi, ho, out_pad, 0)
    r_odd = _pool_row_sel(hi, ho, out_pad, 1)
    c_even = _pool_col_sel(wi, wo, out_pad, 0)
    c_odd = _pool_col_sel(wi, wo, out_pad, 1)
    outs = []
    for h in chs:
        rmax = jnp.maximum(
            jnp.dot(r_even, h, preferred_element_type=jnp.float32),
            jnp.dot(r_odd, h, preferred_element_type=jnp.float32))
        outs.append(jnp.maximum(
            jnp.dot(rmax, c_even, preferred_element_type=jnp.float32),
            jnp.dot(rmax, c_odd, preferred_element_type=jnp.float32)))
    return outs


# --------------------------------- the kernel --------------------------------

def _cnn_fused_kernel(xpad_ref, w1_ref, b1_ref, w2_ref, b2_ref,
                      wfc_ref, bfc_ref, o_ref):
    _, c_in, hp, wp = xpad_ref.shape
    hh1, ww1 = hp - 2, wp - 2            # 28, 28
    c1 = b1_ref.shape[0]                 # 2
    c2 = b2_ref.shape[0]                 # 4
    hh2, ww2 = hh1 // 2, ww1 // 2        # 14, 14
    hh3, _ = hh2 // 2, ww2 // 2          # 7, 7

    # conv1 + ReLU (input already carries its zero halo from the wrapper pad)
    xpad = [xpad_ref[0, ci] for ci in range(c_in)]
    a1 = _conv3x3_relu(xpad, w1_ref, b1_ref, c_in, c1, hh1, ww1)

    # pool1: (28,28) -> (16,16) zero-haloed tiles (halo for conv2 comes for free)
    p1 = _maxpool2x2(a1, out_pad=1)

    # conv2 + ReLU
    a2 = _conv3x3_relu(p1, w2_ref, b2_ref, c1, c2, hh2, ww2)

    # pool2: (14,14) -> (7,7)
    p2 = _maxpool2x2(a2, out_pad=0)

    # fc: the NCHW flatten is folded into wfc_ref's (c2*7, 7, ncls) layout.
    acc = bfc_ref[...]                                   # (1, ncls)
    for c in range(c2):
        for i in range(hh3):
            acc = acc + jnp.dot(p2[c][i:i + 1, :], wfc_ref[c * hh3 + i],
                                preferred_element_type=jnp.float32)
    o_ref[0] = acc.astype(o_ref.dtype)


# --------------------------------- the wrapper --------------------------------

def cnn_forward(x, params):
    """Pallas forward of the PyTorch CNN.  x: (B, C_in, H, W) float32, NCHW."""
    w1, b1, w2, b2, wfc, bfc = params
    bsz, c_in, h, w = x.shape
    c1 = w1.shape[0]
    c2 = w2.shape[0]
    ncls = wfc.shape[0]
    h3, w3 = h // 4, w // 4

    # Layout-only prep (tiny, once per call): +1 zero halo on the input, flat
    # conv weights for SMEM, fc weights rearranged to the NCHW flatten order:
    #   wfc_r[c*7 + i, j, k] == wfc[k, c*49 + i*7 + j]
    xpad = jnp.pad(x, ((0, 0), (0, 0), (1, 1), (1, 1)))
    w1f = w1.reshape(-1)
    w2f = w2.reshape(-1)
    wfc_r = wfc.T.reshape(c2 * h3, w3, ncls)
    bfc_r = bfc.reshape(1, ncls)

    out = pl.pallas_call(
        _cnn_fused_kernel,
        out_shape=jax.ShapeDtypeStruct((bsz, 1, ncls), jnp.float32),
        grid_spec=pltpu.PrefetchScalarGridSpec(
            num_scalar_prefetch=0,
            grid=(bsz,),
            in_specs=[
                pl.BlockSpec((1, c_in, h + 2, w + 2), lambda i: (i, 0, 0, 0)),
                pl.BlockSpec(memory_space=pltpu.MemorySpace.SMEM),   # w1 (flat)
                pl.BlockSpec(memory_space=pltpu.MemorySpace.SMEM),   # b1
                pl.BlockSpec(memory_space=pltpu.MemorySpace.SMEM),   # w2 (flat)
                pl.BlockSpec(memory_space=pltpu.MemorySpace.SMEM),   # b2
                pl.BlockSpec((c2 * h3, w3, ncls), lambda i: (0, 0, 0)),
                pl.BlockSpec((1, ncls), lambda i: (0, 0)),
            ],
            out_specs=pl.BlockSpec((1, 1, ncls), lambda i: (i, 0, 0)),
        ),
        compiler_params=pltpu.CompilerParams(
            dimension_semantics=("parallel",)),   # batch steps shard over TCs (v7x)
    )(xpad, w1f, b1, w2f, b2, wfc_r, bfc_r)
    return out.reshape(bsz, ncls)


# ------------------------------ params / reference ----------------------------

def init_params(key, input_channels=1, num_classes=10):
    """Deterministic PyTorch-default-style uniform init (no checkpoint loading)."""
    c1, c2 = input_channels * 2, input_channels * 4
    ks = jax.random.split(key, 6)

    def uni(k, shape, fan_in):
        bound = 1.0 / jnp.sqrt(float(fan_in))
        return jax.random.uniform(k, shape, jnp.float32, -bound, bound)

    w1 = uni(ks[0], (c1, input_channels, 3, 3), input_channels * 9)
    b1 = uni(ks[1], (c1,), input_channels * 9)
    w2 = uni(ks[2], (c2, c1, 3, 3), c1 * 9)
    b2 = uni(ks[3], (c2,), c1 * 9)
    wfc = uni(ks[4], (num_classes, c2 * 7 * 7), c2 * 7 * 7)
    bfc = uni(ks[5], (num_classes,), c2 * 7 * 7)
    return (w1, b1, w2, b2, wfc, bfc)


def reference_forward(x, params):
    """Plain-JAX (XLA) reference of the PyTorch forward, for correctness checking."""
    w1, b1, w2, b2, wfc, bfc = params
    dn = ('NCHW', 'OIHW', 'NCHW')
    pool = lambda t: jax.lax.reduce_window(
        t, -jnp.inf, jax.lax.max, (1, 1, 2, 2), (1, 1, 2, 2), 'VALID')
    h = jax.nn.relu(jax.lax.conv_general_dilated(
        x, w1, (1, 1), 'SAME', dimension_numbers=dn) + b1[None, :, None, None])
    h = pool(h)
    h = jax.nn.relu(jax.lax.conv_general_dilated(
        h, w2, (1, 1), 'SAME', dimension_numbers=dn) + b2[None, :, None, None])
    h = pool(h)
    flat = h.reshape(h.shape[0], -1)
    return flat @ wfc.T + bfc


# TODO(synk): checkpoint save/load and the training loop in the source file are
# host-side torch utilities with no kernel equivalent; only forward() is ported.

if __name__ == "__main__":
    key = jax.random.PRNGKey(0)
    kx, kp = jax.random.split(key)
    # The fc layer expects 4*7*7 features, which (with two 2x2 pools) implies 28x28 input.
    x = jax.random.normal(kx, (2, 1, 28, 28), jnp.float32)
    params = init_params(kp, input_channels=1, num_classes=10)

    out = jax.block_until_ready(jax.jit(cnn_forward)(x, params))

    ref = reference_forward(x, params)
    assert out.shape == (2, 10) and out.dtype == jnp.float32
    assert jnp.allclose(out, ref, rtol=1e-3, atol=1e-3), (
        f"max abs err {jnp.max(jnp.abs(out - ref))}")
    print("KERNEL_OK")
</pallas_src>

<mosaic_0001>
module attributes {stable_mosaic.version = 11 : i64} {
  func.func @_cnn_fused_kernel(%arg0: i32, %arg1: memref<1x1x30x30xf32, #tpu.memory_space<vmem>>, %arg2: memref<18xf32, #tpu.memory_space<smem>>, %arg3: memref<2xf32, #tpu.memory_space<smem>>, %arg4: memref<72xf32, #tpu.memory_space<smem>>, %arg5: memref<4xf32, #tpu.memory_space<smem>>, %arg6: memref<28x7x10xf32, #tpu.memory_space<vmem>>, %arg7: memref<1x10xf32, #tpu.memory_space<vmem>>, %arg8: memref<1x1x10xf32, #tpu.memory_space<vmem>>) attributes {dimension_semantics = [#tpu.dimension_semantics<parallel>], iteration_bounds = array<i64: 2>, scalar_prefetch = 0 : i64, scratch_operands = 0 : i64, tpu.core_type = #tpu.core_type<tc>, window_params = [{transform_indices = @transform_0, window_bounds = array<i64: 1, 1, 30, 30>}, {transform_indices = @transform_1, window_bounds = array<i64: 18>}, {transform_indices = @transform_2, window_bounds = array<i64: 2>}, {transform_indices = @transform_3, window_bounds = array<i64: 72>}, {transform_indices = @transform_4, window_bounds = array<i64: 4>}, {pipeline_mode = #tpu.pipeline_mode<synchronous>, transform_indices = @transform_5, window_bounds = array<i64: 28, 7, 10>}, {pipeline_mode = #tpu.pipeline_mode<synchronous>, transform_indices = @transform_6, window_bounds = array<i64: 1, 10>}, {transform_indices = @transform_7, window_bounds = array<i64: 1, 1, 10>}]} {
    %c0 = arith.constant 0 : index
    %c0_0 = arith.constant 0 : index
    %c0_1 = arith.constant 0 : index
    %c0_2 = arith.constant 0 : index
    %0 = vector.load %arg1[%c0, %c0_0, %c0_1, %c0_2] : memref<1x1x30x30xf32, #tpu.memory_space<vmem>>, vector<1x1x30x30xf32>
    %1 = vector.shape_cast %0 : vector<1x1x30x30xf32> to vector<30x30xf32>
    %2 = vector.extract_strided_slice %1 {offsets = [0, 0], sizes = [28, 28], strides = [1, 1]} : vector<30x30xf32> to vector<28x28xf32>
    %3 = vector.extract_strided_slice %1 {offsets = [0, 1], sizes = [28, 28], strides = [1, 1]} : vector<30x30xf32> to vector<28x28xf32>
    %4 = vector.extract_strided_slice %1 {offsets = [0, 2], sizes = [28, 28], strides = [1, 1]} : vector<30x30xf32> to vector<28x28xf32>
    %5 = vector.extract_strided_slice %1 {offsets = [1, 0], sizes = [28, 28], strides = [1, 1]} : vector<30x30xf32> to vector<28x28xf32>
    %6 = vector.extract_strided_slice %1 {offsets = [1, 1], sizes = [28, 28], strides = [1, 1]} : vector<30x30xf32> to vector<28x28xf32>
    %7 = vector.extract_strided_slice %1 {offsets = [1, 2], sizes = [28, 28], strides = [1, 1]} : vector<30x30xf32> to vector<28x28xf32>
    %8 = vector.extract_strided_slice %1 {offsets = [2, 0], sizes = [28, 28], strides = [1, 1]} : vector<30x30xf32> to vector<28x28xf32>
    %9 = vector.extract_strided_slice %1 {offsets = [2, 1], sizes = [28, 28], strides = [1, 1]} : vector<30x30xf32> to vector<28x28xf32>
    %10 = vector.extract_strided_slice %1 {offsets = [2, 2], sizes = [28, 28], strides = [1, 1]} : vector<30x30xf32> to vector<28x28xf32>
    %c0_3 = arith.constant 0 : index
    %11 = memref.load %arg2[%c0_3] : memref<18xf32, #tpu.memory_space<smem>>
    %12 = vector.broadcast %11 : f32 to vector<28x28xf32>
    %13 = arith.mulf %12, %2 : vector<28x28xf32>
    %c1 = arith.constant 1 : index
    %14 = memref.load %arg2[%c1] : memref<18xf32, #tpu.memory_space<smem>>
    %15 = vector.broadcast %14 : f32 to vector<28x28xf32>
    %16 = arith.mulf %15, %3 : vector<28x28xf32>
    %17 = arith.addf %13, %16 : vector<28x28xf32>
    %c2 = arith.constant 2 : index
    %18 = memref.load %arg2[%c2] : memref<18xf32, #tpu.memory_space<smem>>
    %19 = vector.broadcast %18 : f32 to vector<28x28xf32>
    %20 = arith.mulf %19, %4 : vector<28x28xf32>
    %21 = arith.addf %17, %20 : vector<28x28xf32>
    %c3 = arith.constant 3 : index
    %22 = memref.load %arg2[%c3] : memref<18xf32, #tpu.memory_space<smem>>
    %23 = vector.broadcast %22 : f32 to vector<28x28xf32>
    %24 = arith.mulf %23, %5 : vector<28x28xf32>
    %25 = arith.addf %21, %24 : vector<28x28xf32>
    %c4 = arith.constant 4 : index
    %26 = memref.load %arg2[%c4] : memref<18xf32, #tpu.memory_space<smem>>
    %27 = vector.broadcast %26 : f32 to vector<28x28xf32>
    %28 = arith.mulf %27, %6 : vector<28x28xf32>
    %29 = arith.addf %25, %28 : vector<28x28xf32>
    %c5 = arith.constant 5 : index
    %30 = memref.load %arg2[%c5] : memref<18xf32, #tpu.memory_space<smem>>
    %31 = vector.broadcast %30 : f32 to vector<28x28xf32>
    %32 = arith.mulf %31, %7 : vector<28x28xf32>
    %33 = arith.addf %29, %32 : vector<28x28xf32>
    %c6 = arith.constant 6 : index
    %34 = memref.load %arg2[%c6] : memref<18xf32, #tpu.memory_space<smem>>
    %35 = vector.broadcast %34 : f32 to vector<28x28xf32>
    %36 = arith.mulf %35, %8 : vector<28x28xf32>
    %37 = arith.addf %33, %36 : vector<28x28xf32>
    %c7 = arith.constant 7 : index
    %38 = memref.load %arg2[%c7] : memref<18xf32, #tpu.memory_space<smem>>
    %39 = vector.broadcast %38 : f32 to vector<28x28xf32>
    %40 = arith.mulf %39, %9 : vector<28x28xf32>
    %41 = arith.addf %37, %40 : vector<28x28xf32>
    %c8 = arith.constant 8 : index
    %42 = memref.load %arg2[%c8] : memref<18xf32, #tpu.memory_space<smem>>
    %43 = vector.broadcast %42 : f32 to vector<28x28xf32>
    %44 = arith.mulf %43, %10 : vector<28x28xf32>
    %45 = arith.addf %41, %44 : vector<28x28xf32>
    %c0_4 = arith.constant 0 : index
    %46 = memref.load %arg3[%c0_4] : memref<2xf32, #tpu.memory_space<smem>>
    %47 = vector.broadcast %46 : f32 to vector<28x28xf32>
    %48 = arith.addf %45, %47 : vector<28x28xf32>
    %cst = arith.constant 0.000000e+00 : f32
    %49 = vector.broadcast %cst : f32 to vector<28x28xf32>
    %50 = arith.maximumf %48, %49 : vector<28x28xf32>
    %c9 = arith.constant 9 : index
    %51 = memref.load %arg2[%c9] : memref<18xf32, #tpu.memory_space<smem>>
    %52 = vector.broadcast %51 : f32 to vector<28x28xf32>
    %53 = arith.mulf %52, %2 : vector<28x28xf32>
    %c10 = arith.constant 10 : index
    %54 = memref.load %arg2[%c10] : memref<18xf32, #tpu.memory_space<smem>>
    %55 = vector.broadcast %54 : f32 to vector<28x28xf32>
    %56 = arith.mulf %55, %3 : vector<28x28xf32>
    %57 = arith.addf %53, %56 : vector<28x28xf32>
    %c11 = arith.constant 11 : index
    %58 = memref.load %arg2[%c11] : memref<18xf32, #tpu.memory_space<smem>>
    %59 = vector.broadcast %58 : f32 to vector<28x28xf32>
    %60 = arith.mulf %59, %4 : vector<28x28xf32>
    %61 = arith.addf %57, %60 : vector<28x28xf32>
    %c12 = arith.constant 12 : index
    %62 = memref.load %arg2[%c12] : memref<18xf32, #tpu.memory_space<smem>>
    %63 = vector.broadcast %62 : f32 to vector<28x28xf32>
    %64 = arith.mulf %63, %5 : vector<28x28xf32>
    %65 = arith.addf %61, %64 : vector<28x28xf32>
    %c13 = arith.constant 13 : index
    %66 = memref.load %arg2[%c13] : memref<18xf32, #tpu.memory_space<smem>>
    %67 = vector.broadcast %66 : f32 to vector<28x28xf32>
    %68 = arith.mulf %67, %6 : vector<28x28xf32>
    %69 = arith.addf %65, %68 : vector<28x28xf32>
    %c14 = arith.constant 14 : index
    %70 = memref.load %arg2[%c14] : memref<18xf32, #tpu.memory_space<smem>>
    %71 = vector.broadcast %70 : f32 to vector<28x28xf32>
    %72 = arith.mulf %71, %7 : vector<28x28xf32>
    %73 = arith.addf %69, %72 : vector<28x28xf32>
    %c15 = arith.constant 15 : index
    %74 = memref.load %arg2[%c15] : memref<18xf32, #tpu.memory_space<smem>>
    %75 = vector.broadcast %74 : f32 to vector<28x28xf32>
    %76 = arith.mulf %75, %8 : vector<28x28xf32>
    %77 = arith.addf %73, %76 : vector<28x28xf32>
    %c16 = arith.constant 16 : index
    %78 = memref.load %arg2[%c16] : memref<18xf32, #tpu.memory_space<smem>>
    %79 = vector.broadcast %78 : f32 to vector<28x28xf32>
    %80 = arith.mulf %79, %9 : vector<28x28xf32>
    %81 = arith.addf %77, %80 : vector<28x28xf32>
    %c17 = arith.constant 17 : index
    %82 = memref.load %arg2[%c17] : memref<18xf32, #tpu.memory_space<smem>>
    %83 = vector.broadcast %82 : f32 to vector<28x28xf32>
    %84 = arith.mulf %83, %10 : vector<28x28xf32>
    %85 = arith.addf %81, %84 : vector<28x28xf32>
    %c1_5 = arith.constant 1 : index
    %86 = memref.load %arg3[%c1_5] : memref<2xf32, #tpu.memory_space<smem>>
    %87 = vector.broadcast %86 : f32 to vector<28x28xf32>
    %88 = arith.addf %85, %87 : vector<28x28xf32>
    %cst_6 = arith.constant 0.000000e+00 : f32
    %89 = vector.broadcast %cst_6 : f32 to vector<28x28xf32>
    %90 = arith.maximumf %88, %89 : vector<28x28xf32>
    %91 = tpu.iota {dimensions = array<i32: 0>} : vector<16x28xi32>
    %92 = tpu.iota {dimensions = array<i32: 1>} : vector<16x28xi32>
    %c1_i32 = arith.constant 1 : i32
    %93 = vector.broadcast %c1_i32 : i32 to vector<16x28xi32>
    %94 = arith.subi %91, %93 : vector<16x28xi32>
    %c2_i32 = arith.constant 2 : i32
    %95 = vector.broadcast %c2_i32 : i32 to vector<16x28xi32>
    %96 = arith.muli %95, %94 : vector<16x28xi32>
    %c0_i32 = arith.constant 0 : i32
    %97 = vector.broadcast %c0_i32 : i32 to vector<16x28xi32>
    %98 = arith.addi %96, %97 : vector<16x28xi32>
    %99 = arith.cmpi eq, %92, %98 : vector<16x28xi32>
    %cst_7 = arith.constant 1.000000e+00 : f32
    %cst_8 = arith.constant 0.000000e+00 : f32
    %100 = vector.broadcast %cst_7 : f32 to vector<16x28xf32>
    %101 = vector.broadcast %cst_8 : f32 to vector<16x28xf32>
    %102 = arith.select %99, %100, %101 : vector<16x28xi1>, vector<16x28xf32>
    %103 = tpu.iota {dimensions = array<i32: 0>} : vector<16x28xi32>
    %104 = tpu.iota {dimensions = array<i32: 1>} : vector<16x28xi32>
    %c1_i32_9 = arith.constant 1 : i32
    %105 = vector.broadcast %c1_i32_9 : i32 to vector<16x28xi32>
    %106 = arith.subi %103, %105 : vector<16x28xi32>
    %c2_i32_10 = arith.constant 2 : i32
    %107 = vector.broadcast %c2_i32_10 : i32 to vector<16x28xi32>
    %108 = arith.muli %107, %106 : vector<16x28xi32>
    %c1_i32_11 = arith.constant 1 : i32
    %109 = vector.broadcast %c1_i32_11 : i32 to vector<16x28xi32>
    %110 = arith.addi %108, %109 : vector<16x28xi32>
    %111 = arith.cmpi eq, %104, %110 : vector<16x28xi32>
    %cst_12 = arith.constant 1.000000e+00 : f32
    %cst_13 = arith.constant 0.000000e+00 : f32
    %112 = vector.broadcast %cst_12 : f32 to vector<16x28xf32>
    %113 = vector.broadcast %cst_13 : f32 to vector<16x28xf32>
    %114 = arith.select %111, %112, %113 : vector<16x28xi1>, vector<16x28xf32>
    %115 = tpu.iota {dimensions = array<i32: 0>} : vector<28x16xi32>
    %116 = tpu.iota {dimensions = array<i32: 1>} : vector<28x16xi32>
    %c1_i32_14 = arith.constant 1 : i32
    %117 = vector.broadcast %c1_i32_14 : i32 to vector<28x16xi32>
    %118 = arith.subi %116, %117 : vector<28x16xi32>
    %c2_i32_15 = arith.constant 2 : i32
    %119 = vector.broadcast %c2_i32_15 : i32 to vector<28x16xi32>
    %120 = arith.muli %119, %118 : vector<28x16xi32>
    %c0_i32_16 = arith.constant 0 : i32
    %121 = vector.broadcast %c0_i32_16 : i32 to vector<28x16xi32>
    %122 = arith.addi %120, %121 : vector<28x16xi32>
    %123 = arith.cmpi eq, %115, %122 : vector<28x16xi32>
    %cst_17 = arith.constant 1.000000e+00 : f32
    %cst_18 = arith.constant 0.000000e+00 : f32
    %124 = vector.broadcast %cst_17 : f32 to vector<28x16xf32>
    %125 = vector.broadcast %cst_18 : f32 to vector<28x16xf32>
    %126 = arith.select %123, %124, %125 : vector<28x16xi1>, vector<28x16xf32>
    %127 = tpu.iota {dimensions = array<i32: 0>} : vector<28x16xi32>
    %128 = tpu.iota {dimensions = array<i32: 1>} : vector<28x16xi32>
    %c1_i32_19 = arith.constant 1 : i32
    %129 = vector.broadcast %c1_i32_19 : i32 to vector<28x16xi32>
    %130 = arith.subi %128, %129 : vector<28x16xi32>
    %c2_i32_20 = arith.constant 2 : i32
    %131 = vector.broadcast %c2_i32_20 : i32 to vector<28x16xi32>
    %132 = arith.muli %131, %130 : vector<28x16xi32>
    %c1_i32_21 = arith.constant 1 : i32
    %133 = vector.broadcast %c1_i32_21 : i32 to vector<28x16xi32>
    %134 = arith.addi %132, %133 : vector<28x16xi32>
    %135 = arith.cmpi eq, %127, %134 : vector<28x16xi32>
    %cst_22 = arith.constant 1.000000e+00 : f32
    %cst_23 = arith.constant 0.000000e+00 : f32
    %136 = vector.broadcast %cst_22 : f32 to vector<28x16xf32>
    %137 = vector.broadcast %cst_23 : f32 to vector<28x16xf32>
    %138 = arith.select %135, %136, %137 : vector<28x16xi1>, vector<28x16xf32>
    %cst_24 = arith.constant dense<0.000000e+00> : vector<16x28xf32>
    %139 = tpu.matmul %102, %50, %cst_24 {dimension_numbers = #tpu.dot_dimension_numbers<[1], [0], [0], [1], [0, 0, 1, 1], [], []>} : vector<16x28xf32>, vector<28x28xf32>, vector<16x28xf32> -> vector<16x28xf32>
    %cst_25 = arith.constant dense<0.000000e+00> : vector<16x28xf32>
    %140 = tpu.matmul %114, %50, %cst_25 {dimension_numbers = #tpu.dot_dimension_numbers<[1], [0], [0], [1], [0, 0, 1, 1], [], []>} : vector<16x28xf32>, vector<28x28xf32>, vector<16x28xf32> -> vector<16x28xf32>
    %141 = arith.maximumf %139, %140 : vector<16x28xf32>
    %cst_26 = arith.constant dense<0.000000e+00> : vector<16x16xf32>
    %142 = tpu.matmul %141, %126, %cst_26 {dimension_numbers = #tpu.dot_dimension_numbers<[1], [0], [0], [1], [0, 0, 1, 1], [], []>} : vector<16x28xf32>, vector<28x16xf32>, vector<16x16xf32> -> vector<16x16xf32>
    %cst_27 = arith.constant dense<0.000000e+00> : vector<16x16xf32>
    %143 = tpu.matmul %141, %138, %cst_27 {dimension_numbers = #tpu.dot_dimension_numbers<[1], [0], [0], [1], [0, 0, 1, 1], [], []>} : vector<16x28xf32>, vector<28x16xf32>, vector<16x16xf32> -> vector<16x16xf32>
    %144 = arith.maximumf %142, %143 : vector<16x16xf32>
    %cst_28 = arith.constant dense<0.000000e+00> : vector<16x28xf32>
    %145 = tpu.matmul %102, %90, %cst_28 {dimension_numbers = #tpu.dot_dimension_numbers<[1], [0], [0], [1], [0, 0, 1, 1], [], []>} : vector<16x28xf32>, vector<28x28xf32>, vector<16x28xf32> -> vector<16x28xf32>
    %cst_29 = arith.constant dense<0.000000e+00> : vector<16x28xf32>
    %146 = tpu.matmul %114, %90, %cst_29 {dimension_numbers = #tpu.dot_dimension_numbers<[1], [0], [0], [1], [0, 0, 1, 1], [], []>} : vector<16x28xf32>, vector<28x28xf32>, vector<16x28xf32> -> vector<16x28xf32>
    %147 = arith.maximumf %145, %146 : vector<16x28xf32>
    %cst_30 = arith.constant dense<0.000000e+00> : vector<16x16xf32>
    %148 = tpu.matmul %147, %126, %cst_30 {dimension_numbers = #tpu.dot_dimension_numbers<[1], [0], [0], [1], [0, 0, 1, 1], [], []>} : vector<16x28xf32>, vector<28x16xf32>, vector<16x16xf32> -> vector<16x16xf32>
    %cst_31 = arith.constant dense<0.000000e+00> : vector<16x16xf32>
    %149 = tpu.matmul %147, %138, %cst_31 {dimension_numbers = #tpu.dot_dimension_numbers<[1], [0], [0], [1], [0, 0, 1, 1], [], []>} : vector<16x28xf32>, vector<28x16xf32>, vector<16x16xf32> -> vector<16x16xf32>
    %150 = arith.maximumf %148, %149 : vector<16x16xf32>
    %151 = vector.extract_strided_slice %144 {offsets = [0, 0], sizes = [14, 14], strides = [1, 1]} : vector<16x16xf32> to vector<14x14xf32>
    %152 = vector.extract_strided_slice %144 {offsets = [0, 1], sizes = [14, 14], strides = [1, 1]} : vector<16x16xf32> to vector<14x14xf32>
    %153 = vector.extract_strided_slice %144 {offsets = [0, 2], sizes = [14, 14], strides = [1, 1]} : vector<16x16xf32> to vector<14x14xf32>
    %154 = vector.extract_strided_slice %144 {offsets = [1, 0], sizes = [14, 14], strides = [1, 1]} : vector<16x16xf32> to vector<14x14xf32>
    %155 = vector.extract_strided_slice %144 {offsets = [1, 1], sizes = [14, 14], strides = [1, 1]} : vector<16x16xf32> to vector<14x14xf32>
    %156 = vector.extract_strided_slice %144 {offsets = [1, 2], sizes = [14, 14], strides = [1, 1]} : vector<16x16xf32> to vector<14x14xf32>
    %157 = vector.extract_strided_slice %144 {offsets = [2, 0], sizes = [14, 14], strides = [1, 1]} : vector<16x16xf32> to vector<14x14xf32>
    %158 = vector.extract_strided_slice %144 {offsets = [2, 1], sizes = [14, 14], strides = [1, 1]} : vector<16x16xf32> to vector<14x14xf32>
    %159 = vector.extract_strided_slice %144 {offsets = [2, 2], sizes = [14, 14], strides = [1, 1]} : vector<16x16xf32> to vector<14x14xf32>
    %160 = vector.extract_strided_slice %150 {offsets = [0, 0], sizes = [14, 14], strides = [1, 1]} : vector<16x16xf32> to vector<14x14xf32>
    %161 = vector.extract_strided_slice %150 {offsets = [0, 1], sizes = [14, 14], strides = [1, 1]} : vector<16x16xf32> to vector<14x14xf32>
    %162 = vector.extract_strided_slice %150 {offsets = [0, 2], sizes = [14, 14], strides = [1, 1]} : vector<16x16xf32> to vector<14x14xf32>
    %163 = vector.extract_strided_slice %150 {offsets = [1, 0], sizes = [14, 14], strides = [1, 1]} : vector<16x16xf32> to vector<14x14xf32>
    %164 = vector.extract_strided_slice %150 {offsets = [1, 1], sizes = [14, 14], strides = [1, 1]} : vector<16x16xf32> to vector<14x14xf32>
    %165 = vector.extract_strided_slice %150 {offsets = [1, 2], sizes = [14, 14], strides = [1, 1]} : vector<16x16xf32> to vector<14x14xf32>
    %166 = vector.extract_strided_slice %150 {offsets = [2, 0], sizes = [14, 14], strides = [1, 1]} : vector<16x16xf32> to vector<14x14xf32>
    %167 = vector.extract_strided_slice %150 {offsets = [2, 1], sizes = [14, 14], strides = [1, 1]} : vector<16x16xf32> to vector<14x14xf32>
    %168 = vector.extract_strided_slice %150 {offsets = [2, 2], sizes = [14, 14], strides = [1, 1]} : vector<16x16xf32> to vector<14x14xf32>
    %c0_32 = arith.constant 0 : index
    %169 = memref.load %arg4[%c0_32] : memref<72xf32, #tpu.memory_space<smem>>
    %170 = vector.broadcast %169 : f32 to vector<14x14xf32>
    %171 = arith.mulf %170, %151 : vector<14x14xf32>
    %c1_33 = arith.constant 1 : index
    %172 = memref.load %arg4[%c1_33] : memref<72xf32, #tpu.memory_space<smem>>
    %173 = vector.broadcast %172 : f32 to vector<14x14xf32>
    %174 = arith.mulf %173, %152 : vector<14x14xf32>
    %175 = arith.addf %171, %174 : vector<14x14xf32>
    %c2_34 = arith.constant 2 : index
    %176 = memref.load %arg4[%c2_34] : memref<72xf32, #tpu.memory_space<smem>>
    %177 = vector.broadcast %176 : f32 to vector<14x14xf32>
    %178 = arith.mulf %177, %153 : vector<14x14xf32>
    %179 = arith.addf %175, %178 : vector<14x14xf32>
    %c3_35 = arith.constant 3 : index
    %180 = memref.load %arg4[%c3_35] : memref<72xf32, #tpu.memory_space<smem>>
    %181 = vector.broadcast %180 : f32 to vector<14x14xf32>
    %182 = arith.mulf %181, %154 : vector<14x14xf32>
    %183 = arith.addf %179, %182 : vector<14x14xf32>
    %c4_36 = arith.constant 4 : index
    %184 = memref.load %arg4[%c4_36] : memref<72xf32, #tpu.memory_space<smem>>
    %185 = vector.broadcast %184 : f32 to vector<14x14xf32>
    %186 = arith.mulf %185, %155 : vector<14x14xf32>
    %187 = arith.addf %183, %186 : vector<14x14xf32>
    %c5_37 = arith.constant 5 : index
    %188 = memref.load %arg4[%c5_37] : memref<72xf32, #tpu.memory_space<smem>>
    %189 = vector.broadcast %188 : f32 to vector<14x14xf32>
    %190 = arith.mulf %189, %156 : vector<14x14xf32>
    %191 = arith.addf %187, %190 : vector<14x14xf32>
    %c6_38 = arith.constant 6 : index
    %192 = memref.load %arg4[%c6_38] : memref<72xf32, #tpu.memory_space<smem>>
    %193 = vector.broadcast %192 : f32 to vector<14x14xf32>
    %194 = arith.mulf %193, %157 : vector<14x14xf32>
    %195 = arith.addf %191, %194 : vector<14x14xf32>
    %c7_39 = arith.constant 7 : index
    %196 = memref.load %arg4[%c7_39] : memref<72xf32, #tpu.memory_space<smem>>
    %197 = vector.broadcast %196 : f32 to vector<14x14xf32>
    %198 = arith.mulf %197, %158 : vector<14x14xf32>
    %199 = arith.addf %195, %198 : vector<14x14xf32>
    %c8_40 = arith.constant 8 : index
    %200 = memref.load %arg4[%c8_40] : memref<72xf32, #tpu.memory_space<smem>>
    %201 = vector.broadcast %200 : f32 to vector<14x14xf32>
    %202 = arith.mulf %201, %159 : vector<14x14xf32>
    %203 = arith.addf %199, %202 : vector<14x14xf32>
    %c9_41 = arith.constant 9 : index
    %204 = memref.load %arg4[%c9_41] : memref<72xf32, #tpu.memory_space<smem>>
    %205 = vector.broadcast %204 : f32 to vector<14x14xf32>
    %206 = arith.mulf %205, %160 : vector<14x14xf32>
    %207 = arith.addf %203, %206 : vector<14x14xf32>
    %c10_42 = arith.constant 10 : index
    %208 = memref.load %arg4[%c10_42] : memref<72xf32, #tpu.memory_space<smem>>
    %209 = vector.broadcast %208 : f32 to vector<14x14xf32>
    %210 = arith.mulf %209, %161 : vector<14x14xf32>
    %211 = arith.addf %207, %210 : vector<14x14xf32>
    %c11_43 = arith.constant 11 : index
    %212 = memref.load %arg4[%c11_43] : memref<72xf32, #tpu.memory_space<smem>>
    %213 = vector.broadcast %212 : f32 to vector<14x14xf32>
    %214 = arith.mulf %213, %162 : vector<14x14xf32>
    %215 = arith.addf %211, %214 : vector<14x14xf32>
    %c12_44 = arith.constant 12 : index
    %216 = memref.load %arg4[%c12_44] : memref<72xf32, #tpu.memory_space<smem>>
    %217 = vector.broadcast %216 : f32 to vector<14x14xf32>
    %218 = arith.mulf %217, %163 : vector<14x14xf32>
    %219 = arith.addf %215, %218 : vector<14x14xf32>
    %c13_45 = arith.constant 13 : index
    %220 = memref.load %arg4[%c13_45] : memref<72xf32, #tpu.memory_space<smem>>
    %221 = vector.broadcast %220 : f32 to vector<14x14xf32>
    %222 = arith.mulf %221, %164 : vector<14x14xf32>
    %223 = arith.addf %219, %222 : vector<14x14xf32>
    %c14_46 = arith.constant 14 : index
    %224 = memref.load %arg4[%c14_46] : memref<72xf32, #tpu.memory_space<smem>>
    %225 = vector.broadcast %224 : f32 to vector<14x14xf32>
    %226 = arith.mulf %225, %165 : vector<14x14xf32>
    %227 = arith.addf %223, %226 : vector<14x14xf32>
    %c15_47 = arith.constant 15 : index
    %228 = memref.load %arg4[%c15_47] : memref<72xf32, #tpu.memory_space<smem>>
    %229 = vector.broadcast %228 : f32 to vector<14x14xf32>
    %230 = arith.mulf %229, %166 : vector<14x14xf32>
    %231 = arith.addf %227, %230 : vector<14x14xf32>
    %c16_48 = arith.constant 16 : index
    %232 = memref.load %arg4[%c16_48] : memref<72xf32, #tpu.memory_space<smem>>
    %233 = vector.broadcast %232 : f32 to vector<14x14xf32>
    %234 = arith.mulf %233, %167 : vector<14x14xf32>
    %235 = arith.addf %231, %234 : vector<14x14xf32>
    %c17_49 = arith.constant 17 : index
    %236 = memref.load %arg4[%c17_49] : memref<72xf32, #tpu.memory_space<smem>>
    %237 = vector.broadcast %236 : f32 to vector<14x14xf32>
    %238 = arith.mulf %237, %168 : vector<14x14xf32>
    %239 = arith.addf %235, %238 : vector<14x14xf32>
    %c0_50 = arith.constant 0 : index
    %240 = memref.load %arg5[%c0_50] : memref<4xf32, #tpu.memory_space<smem>>
    %241 = vector.broadcast %240 : f32 to vector<14x14xf32>
    %242 = arith.addf %239, %241 : vector<14x14xf32>
    %cst_51 = arith.constant 0.000000e+00 : f32
    %243 = vector.broadcast %cst_51 : f32 to vector<14x14xf32>
    %244 = arith.maximumf %242, %243 : vector<14x14xf32>
    %c18 = arith.constant 18 : index
    %245 = memref.load %arg4[%c18] : memref<72xf32, #tpu.memory_space<smem>>
    %246 = vector.broadcast %245 : f32 to vector<14x14xf32>
    %247 = arith.mulf %246, %151 : vector<14x14xf32>
    %c19 = arith.constant 19 : index
    %248 = memref.load %arg4[%c19] : memref<72xf32, #tpu.memory_space<smem>>
    %249 = vector.broadcast %248 : f32 to vector<14x14xf32>
    %250 = arith.mulf %249, %152 : vector<14x14xf32>
    %251 = arith.addf %247, %250 : vector<14x14xf32>
    %c20 = arith.constant 20 : index
    %252 = memref.load %arg4[%c20] : memref<72xf32, #tpu.memory_space<smem>>
    %253 = vector.broadcast %252 : f32 to vector<14x14xf32>
    %254 = arith.mulf %253, %153 : vector<14x14xf32>
    %255 = arith.addf %251, %254 : vector<14x14xf32>
    %c21 = arith.constant 21 : index
    %256 = memref.load %arg4[%c21] : memref<72xf32, #tpu.memory_space<smem>>
    %257 = vector.broadcast %256 : f32 to vector<14x14xf32>
    %258 = arith.mulf %257, %154 : vector<14x14xf32>
    %259 = arith.addf %255, %258 : vector<14x14xf32>
    %c22 = arith.constant 22 : index
    %260 = memref.load %arg4[%c22] : memref<72xf32, #tpu.memory_space<smem>>
    %261 = vector.broadcast %260 : f32 to vector<14x14xf32>
    %262 = arith.mulf %261, %155 : vector<14x14xf32>
    %263 = arith.addf %259, %262 : vector<14x14xf32>
    %c23 = arith.constant 23 : index
    %264 = memref.load %arg4[%c23] : memref<72xf32, #tpu.memory_space<smem>>
    %265 = vector.broadcast %264 : f32 to vector<14x14xf32>
    %266 = arith.mulf %265, %156 : vector<14x14xf32>
    %267 = arith.addf %263, %266 : vector<14x14xf32>
    %c24 = arith.constant 24 : index
    %268 = memref.load %arg4[%c24] : memref<72xf32, #tpu.memory_space<smem>>
    %269 = vector.broadcast %268 : f32 to vector<14x14xf32>
    %270 = arith.mulf %269, %157 : vector<14x14xf32>
    %271 = arith.addf %267, %270 : vector<14x14xf32>
    %c25 = arith.constant 25 : index
    %272 = memref.load %arg4[%c25] : memref<72xf32, #tpu.memory_space<smem>>
    %273 = vector.broadcast %272 : f32 to vector<14x14xf32>
    %274 = arith.mulf %273, %158 : vector<14x14xf32>
    %275 = arith.addf %271, %274 : vector<14x14xf32>
    %c26 = arith.constant 26 : index
    %276 = memref.load %arg4[%c26] : memref<72xf32, #tpu.memory_space<smem>>
    %277 = vector.broadcast %276 : f32 to vector<14x14xf32>
    %278 = arith.mulf %277, %159 : vector<14x14xf32>
    %279 = arith.addf %275, %278 : vector<14x14xf32>
    %c27 = arith.constant 27 : index
    %280 = memref.load %arg4[%c27] : memref<72xf32, #tpu.memory_space<smem>>
    %281 = vector.broadcast %280 : f32 to vector<14x14xf32>
    %282 = arith.mulf %281, %160 : vector<14x14xf32>
    %283 = arith.addf %279, %282 : vector<14x14xf32>
    %c28 = arith.constant 28 : index
    %284 = memref.load %arg4[%c28] : memref<72xf32, #tpu.memory_space<smem>>
    %285 = vector.broadcast %284 : f32 to vector<14x14xf32>
    %286 = arith.mulf %285, %161 : vector<14x14xf32>
    %287 = arith.addf %283, %286 : vector<14x14xf32>
    %c29 = arith.constant 29 : index
    %288 = memref.load %arg4[%c29] : memref<72xf32, #tpu.memory_space<smem>>
    %289 = vector.broadcast %288 : f32 to vector<14x14xf32>
    %290 = arith.mulf %289, %162 : vector<14x14xf32>
    %291 = arith.addf %287, %290 : vector<14x14xf32>
    %c30 = arith.constant 30 : index
    %292 = memref.load %arg4[%c30] : memref<72xf32, #tpu.memory_space<smem>>
    %293 = vector.broadcast %292 : f32 to vector<14x14xf32>
    %294 = arith.mulf %293, %163 : vector<14x14xf32>
    %295 = arith.addf %291, %294 : vector<14x14xf32>
    %c31 = arith.constant 31 : index
    %296 = memref.load %arg4[%c31] : memref<72xf32, #tpu.memory_space<smem>>
    %297 = vector.broadcast %296 : f32 to vector<14x14xf32>
    %298 = arith.mulf %297, %164 : vector<14x14xf32>
    %299 = arith.addf %295, %298 : vector<14x14xf32>
    %c32 = arith.constant 32 : index
    %300 = memref.load %arg4[%c32] : memref<72xf32, #tpu.memory_space<smem>>
    %301 = vector.broadcast %300 : f32 to vector<14x14xf32>
    %302 = arith.mulf %301, %165 : vector<14x14xf32>
    %303 = arith.addf %299, %302 : vector<14x14xf32>
    %c33 = arith.constant 33 : index
    %304 = memref.load %arg4[%c33] : memref<72xf32, #tpu.memory_space<smem>>
    %305 = vector.broadcast %304 : f32 to vector<14x14xf32>
    %306 = arith.mulf %305, %166 : vector<14x14xf32>
    %307 = arith.addf %303, %306 : vector<14x14xf32>
    %c34 = arith.constant 34 : index
    %308 = memref.load %arg4[%c34] : memref<72xf32, #tpu.memory_space<smem>>
    %309 = vector.broadcast %308 : f32 to vector<14x14xf32>
    %310 = arith.mulf %309, %167 : vector<14x14xf32>
    %311 = arith.addf %307, %310 : vector<14x14xf32>
    %c35 = arith.constant 35 : index
    %312 = memref.load %arg4[%c35] : memref<72xf32, #tpu.memory_space<smem>>
    %313 = vector.broadcast %312 : f32 to vector<14x14xf32>
    %314 = arith.mulf %313, %168 : vector<14x14xf32>
    %315 = arith.addf %311, %314 : vector<14x14xf32>
    %c1_52 = arith.constant 1 : index
    %316 = memref.load %arg5[%c1_52] : memref<4xf32, #tpu.memory_space<smem>>
    %317 = vector.broadcast %316 : f32 to vector<14x14xf32>
    %318 = arith.addf %315, %317 : vector<14x14xf32>
    %cst_53 = arith.constant 0.000000e+00 : f32
    %319 = vector.broadcast %cst_53 : f32 to vector<14x14xf32>
    %320 = arith.maximumf %318, %319 : vector<14x14xf32>
    %c36 = arith.constant 36 : index
    %321 = memref.load %arg4[%c36] : memref<72xf32, #tpu.memory_space<smem>>
    %322 = vector.broadcast %321 : f32 to vector<14x14xf32>
    %323 = arith.mulf %322, %151 : vector<14x14xf32>
    %c37 = arith.constant 37 : index
    %324 = memref.load %arg4[%c37] : memref<72xf32, #tpu.memory_space<smem>>
    %325 = vector.broadcast %324 : f32 to vector<14x14xf32>
    %326 = arith.mulf %325, %152 : vector<14x14xf32>
    %327 = arith.addf %323, %326 : vector<14x14xf32>
    %c38 = arith.constant 38 : index
    %328 = memref.load %arg4[%c38] : memref<72xf32, #tpu.memory_space<smem>>
    %329 = vector.broadcast %328 : f32 to vector<14x14xf32>
    %330 = arith.mulf %329, %153 : vector<14x14xf32>
    %331 = arith.addf %327, %330 : vector<14x14xf32>
    %c39 = arith.constant 39 : index
    %332 = memref.load %arg4[%c39] : memref<72xf32, #tpu.memory_space<smem>>
    %333 = vector.broadcast %332 : f32 to vector<14x14xf32>
    %334 = arith.mulf %333, %154 : vector<14x14xf32>
    %335 = arith.addf %331, %334 : vector<14x14xf32>
    %c40 = arith.constant 40 : index
    %336 = memref.load %arg4[%c40] : memref<72xf32, #tpu.memory_space<smem>>
    %337 = vector.broadcast %336 : f32 to vector<14x14xf32>
    %338 = arith.mulf %337, %155 : vector<14x14xf32>
    %339 = arith.addf %335, %338 : vector<14x14xf32>
    %c41 = arith.constant 41 : index
    %340 = memref.load %arg4[%c41] : memref<72xf32, #tpu.memory_space<smem>>
    %341 = vector.broadcast %340 : f32 to vector<14x14xf32>
    %342 = arith.mulf %341, %156 : vector<14x14xf32>
    %343 = arith.addf %339, %342 : vector<14x14xf32>
    %c42 = arith.constant 42 : index
    %344 = memref.load %arg4[%c42] : memref<72xf32, #tpu.memory_space<smem>>
    %345 = vector.broadcast %344 : f32 to vector<14x14xf32>
    %346 = arith.mulf %345, %157 : vector<14x14xf32>
    %347 = arith.addf %343, %346 : vector<14x14xf32>
    %c43 = arith.constant 43 : index
    %348 = memref.load %arg4[%c43] : memref<72xf32, #tpu.memory_space<smem>>
    %349 = vector.broadcast %348 : f32 to vector<14x14xf32>
    %350 = arith.mulf %349, %158 : vector<14x14xf32>
    %351 = arith.addf %347, %350 : vector<14x14xf32>
    %c44 = arith.constant 44 : index
    %352 = memref.load %arg4[%c44] : memref<72xf32, #tpu.memory_space<smem>>
    %353 = vector.broadcast %352 : f32 to vector<14x14xf32>
    %354 = arith.mulf %353, %159 : vector<14x14xf32>
    %355 = arith.addf %351, %354 : vector<14x14xf32>
    %c45 = arith.constant 45 : index
    %356 = memref.load %arg4[%c45] : memref<72xf32, #tpu.memory_space<smem>>
    %357 = vector.broadcast %356 : f32 to vector<14x14xf32>
    %358 = arith.mulf %357, %160 : vector<14x14xf32>
    %359 = arith.addf %355, %358 : vector<14x14xf32>
    %c46 = arith.constant 46 : index
    %360 = memref.load %arg4[%c46] : memref<72xf32, #tpu.memory_space<smem>>
    %361 = vector.broadcast %360 : f32 to vector<14x14xf32>
    %362 = arith.mulf %361, %161 : vector<14x14xf32>
    %363 = arith.addf %359, %362 : vector<14x14xf32>
    %c47 = arith.constant 47 : index
    %364 = memref.load %arg4[%c47] : memref<72xf32, #tpu.memory_space<smem>>
    %365 = vector.broadcast %364 : f32 to vector<14x14xf32>
    %366 = arith.mulf %365, %162 : vector<14x14xf32>
    %367 = arith.addf %363, %366 : vector<14x14xf32>
    %c48 = arith.constant 48 : index
    %368 = memref.load %arg4[%c48] : memref<72xf32, #tpu.memory_space<smem>>
    %369 = vector.broadcast %368 : f32 to vector<14x14xf32>
    %370 = arith.mulf %369, %163 : vector<14x14xf32>
    %371 = arith.addf %367, %370 : vector<14x14xf32>
    %c49 = arith.constant 49 : index
    %372 = memref.load %arg4[%c49] : memref<72xf32, #tpu.memory_space<smem>>
    %373 = vector.broadcast %372 : f32 to vector<14x14xf32>
    %374 = arith.mulf %373, %164 : vector<14x14xf32>
    %375 = arith.addf %371, %374 : vector<14x14xf32>
    %c50 = arith.constant 50 : index
    %376 = memref.load %arg4[%c50] : memref<72xf32, #tpu.memory_space<smem>>
    %377 = vector.broadcast %376 : f32 to vector<14x14xf32>
    %378 = arith.mulf %377, %165 : vector<14x14xf32>
    %379 = arith.addf %375, %378 : vector<14x14xf32>
    %c51 = arith.constant 51 : index
    %380 = memref.load %arg4[%c51] : memref<72xf32, #tpu.memory_space<smem>>
    %381 = vector.broadcast %380 : f32 to vector<14x14xf32>
    %382 = arith.mulf %381, %166 : vector<14x14xf32>
    %383 = arith.addf %379, %382 : vector<14x14xf32>
    %c52 = arith.constant 52 : index
    %384 = memref.load %arg4[%c52] : memref<72xf32, #tpu.memory_space<smem>>
    %385 = vector.broadcast %384 : f32 to vector<14x14xf32>
    %386 = arith.mulf %385, %167 : vector<14x14xf32>
    %387 = arith.addf %383, %386 : vector<14x14xf32>
    %c53 = arith.constant 53 : index
    %388 = memref.load %arg4[%c53] : memref<72xf32, #tpu.memory_space<smem>>
    %389 = vector.broadcast %388 : f32 to vector<14x14xf32>
    %390 = arith.mulf %389, %168 : vector<14x14xf32>
    %391 = arith.addf %387, %390 : vector<14x14xf32>
    %c2_54 = arith.constant 2 : index
    %392 = memref.load %arg5[%c2_54] : memref<4xf32, #tpu.memory_space<smem>>
    %393 = vector.broadcast %392 : f32 to vector<14x14xf32>
    %394 = arith.addf %391, %393 : vector<14x14xf32>
    %cst_55 = arith.constant 0.000000e+00 : f32
    %395 = vector.broadcast %cst_55 : f32 to vector<14x14xf32>
    %396 = arith.maximumf %394, %395 : vector<14x14xf32>
    %c54 = arith.constant 54 : index
    %397 = memref.load %arg4[%c54] : memref<72xf32, #tpu.memory_space<smem>>
    %398 = vector.broadcast %397 : f32 to vector<14x14xf32>
    %399 = arith.mulf %398, %151 : vector<14x14xf32>
    %c55 = arith.constant 55 : index
    %400 = memref.load %arg4[%c55] : memref<72xf32, #tpu.memory_space<smem>>
    %401 = vector.broadcast %400 : f32 to vector<14x14xf32>
    %402 = arith.mulf %401, %152 : vector<14x14xf32>
    %403 = arith.addf %399, %402 : vector<14x14xf32>
    %c56 = arith.constant 56 : index
    %404 = memref.load %arg4[%c56] : memref<72xf32, #tpu.memory_space<smem>>
    %405 = vector.broadcast %404 : f32 to vector<14x14xf32>
    %406 = arith.mulf %405, %153 : vector<14x14xf32>
    %407 = arith.addf %403, %406 : vector<14x14xf32>
    %c57 = arith.constant 57 : index
    %408 = memref.load %arg4[%c57] : memref<72xf32, #tpu.memory_space<smem>>
    %409 = vector.broadcast %408 : f32 to vector<14x14xf32>
    %410 = arith.mulf %409, %154 : vector<14x14xf32>
    %411 = arith.addf %407, %410 : vector<14x14xf32>
    %c58 = arith.constant 58 : index
    %412 = memref.load %arg4[%c58] : memref<72xf32, #tpu.memory_space<smem>>
    %413 = vector.broadcast %412 : f32 to vector<14x14xf32>
    %414 = arith.mulf %413, %155 : vector<14x14xf32>
    %415 = arith.addf %411, %414 : vector<14x14xf32>
    %c59 = arith.constant 59 : index
    %416 = memref.load %arg4[%c59] : memref<72xf32, #tpu.memory_space<smem>>
    %417 = vector.broadcast %416 : f32 to vector<14x14xf32>
    %418 = arith.mulf %417, %156 : vector<14x14xf32>
    %419 = arith.addf %415, %418 : vector<14x14xf32>
    %c60 = arith.constant 60 : index
    %420 = memref.load %arg4[%c60] : memref<72xf32, #tpu.memory_space<smem>>
    %421 = vector.broadcast %420 : f32 to vector<14x14xf32>
    %422 = arith.mulf %421, %157 : vector<14x14xf32>
    %423 = arith.addf %419, %422 : vector<14x14xf32>
    %c61 = arith.constant 61 : index
    %424 = memref.load %arg4[%c61] : memref<72xf32, #tpu.memory_space<smem>>
    %425 = vector.broadcast %424 : f32 to vector<14x14xf32>
    %426 = arith.mulf %425, %158 : vector<14x14xf32>
    %427 = arith.addf %423, %426 : vector<14x14xf32>
    %c62 = arith.constant 62 : index
    %428 = memref.load %arg4[%c62] : memref<72xf32, #tpu.memory_space<smem>>
    %429 = vector.broadcast %428 : f32 to vector<14x14xf32>
    %430 = arith.mulf %429, %159 : vector<14x14xf32>
    %431 = arith.addf %427, %430 : vector<14x14xf32>
    %c63 = arith.constant 63 : index
    %432 = memref.load %arg4[%c63] : memref<72xf32, #tpu.memory_space<smem>>
    %433 = vector.broadcast %432 : f32 to vector<14x14xf32>
    %434 = arith.mulf %433, %160 : vector<14x14xf32>
    %435 = arith.addf %431, %434 : vector<14x14xf32>
    %c64 = arith.constant 64 : index
    %436 = memref.load %arg4[%c64] : memref<72xf32, #tpu.memory_space<smem>>
    %437 = vector.broadcast %436 : f32 to vector<14x14xf32>
    %438 = arith.mulf %437, %161 : vector<14x14xf32>
    %439 = arith.addf %435, %438 : vector<14x14xf32>
    %c65 = arith.constant 65 : index
    %440 = memref.load %arg4[%c65] : memref<72xf32, #tpu.memory_space<smem>>
    %441 = vector.broadcast %440 : f32 to vector<14x14xf32>
    %442 = arith.mulf %441, %162 : vector<14x14xf32>
    %443 = arith.addf %439, %442 : vector<14x14xf32>
    %c66 = arith.constant 66 : index
    %444 = memref.load %arg4[%c66] : memref<72xf32, #tpu.memory_space<smem>>
    %445 = vector.broadcast %444 : f32 to vector<14x14xf32>
    %446 = arith.mulf %445, %163 : vector<14x14xf32>
    %447 = arith.addf %443, %446 : vector<14x14xf32>
    %c67 = arith.constant 67 : index
    %448 = memref.load %arg4[%c67] : memref<72xf32, #tpu.memory_space<smem>>
    %449 = vector.broadcast %448 : f32 to vector<14x14xf32>
    %450 = arith.mulf %449, %164 : vector<14x14xf32>
    %451 = arith.addf %447, %450 : vector<14x14xf32>
    %c68 = arith.constant 68 : index
    %452 = memref.load %arg4[%c68] : memref<72xf32, #tpu.memory_space<smem>>
    %453 = vector.broadcast %452 : f32 to vector<14x14xf32>
    %454 = arith.mulf %453, %165 : vector<14x14xf32>
    %455 = arith.addf %451, %454 : vector<14x14xf32>
    %c69 = arith.constant 69 : index
    %456 = memref.load %arg4[%c69] : memref<72xf32, #tpu.memory_space<smem>>
    %457 = vector.broadcast %456 : f32 to vector<14x14xf32>
    %458 = arith.mulf %457, %166 : vector<14x14xf32>
    %459 = arith.addf %455, %458 : vector<14x14xf32>
    %c70 = arith.constant 70 : index
    %460 = memref.load %arg4[%c70] : memref<72xf32, #tpu.memory_space<smem>>
    %461 = vector.broadcast %460 : f32 to vector<14x14xf32>
    %462 = arith.mulf %461, %167 : vector<14x14xf32>
    %463 = arith.addf %459, %462 : vector<14x14xf32>
    %c71 = arith.constant 71 : index
    %464 = memref.load %arg4[%c71] : memref<72xf32, #tpu.memory_space<smem>>
    %465 = vector.broadcast %464 : f32 to vector<14x14xf32>
    %466 = arith.mulf %465, %168 : vector<14x14xf32>
    %467 = arith.addf %463, %466 : vector<14x14xf32>
    %c3_56 = arith.constant 3 : index
    %468 = memref.load %arg5[%c3_56] : memref<4xf32, #tpu.memory_space<smem>>
    %469 = vector.broadcast %468 : f32 to vector<14x14xf32>
    %470 = arith.addf %467, %469 : vector<14x14xf32>
    %cst_57 = arith.constant 0.000000e+00 : f32
    %471 = vector.broadcast %cst_57 : f32 to vector<14x14xf32>
    %472 = arith.maximumf %470, %471 : vector<14x14xf32>
    %473 = tpu.iota {dimensions = array<i32: 0>} : vector<7x14xi32>
    %474 = tpu.iota {dimensions = array<i32: 1>} : vector<7x14xi32>
    %c0_i32_58 = arith.constant 0 : i32
    %475 = vector.broadcast %c0_i32_58 : i32 to vector<7x14xi32>
    %476 = arith.subi %473, %475 : vector<7x14xi32>
    %c2_i32_59 = arith.constant 2 : i32
    %477 = vector.broadcast %c2_i32_59 : i32 to vector<7x14xi32>
    %478 = arith.muli %477, %476 : vector<7x14xi32>
    %c0_i32_60 = arith.constant 0 : i32
    %479 = vector.broadcast %c0_i32_60 : i32 to vector<7x14xi32>
    %480 = arith.addi %478, %479 : vector<7x14xi32>
    %481 = arith.cmpi eq, %474, %480 : vector<7x14xi32>
    %cst_61 = arith.constant 1.000000e+00 : f32
    %cst_62 = arith.constant 0.000000e+00 : f32
    %482 = vector.broadcast %cst_61 : f32 to vector<7x14xf32>
    %483 = vector.broadcast %cst_62 : f32 to vector<7x14xf32>
    %484 = arith.select %481, %482, %483 : vector<7x14xi1>, vector<7x14xf32>
    %485 = tpu.iota {dimensions = array<i32: 0>} : vector<7x14xi32>
    %486 = tpu.iota {dimensions = array<i32: 1>} : vector<7x14xi32>
    %c0_i32_63 = arith.constant 0 : i32
    %487 = vector.broadcast %c0_i32_63 : i32 to vector<7x14xi32>
    %488 = arith.subi %485, %487 : vector<7x14xi32>
    %c2_i32_64 = arith.constant 2 : i32
    %489 = vector.broadcast %c2_i32_64 : i32 to vector<7x14xi32>
    %490 = arith.muli %489, %488 : vector<7x14xi32>
    %c1_i32_65 = arith.constant 1 : i32
    %491 = vector.broadcast %c1_i32_65 : i32 to vector<7x14xi32>
    %492 = arith.addi %490, %491 : vector<7x14xi32>
    %493 = arith.cmpi eq, %486, %492 : vector<7x14xi32>
    %cst_66 = arith.constant 1.000000e+00 : f32
    %cst_67 = arith.constant 0.000000e+00 : f32
    %494 = vector.broadcast %cst_66 : f32 to vector<7x14xf32>
    %495 = vector.broadcast %cst_67 : f32 to vector<7x14xf32>
    %496 = arith.select %493, %494, %495 : vector<7x14xi1>, vector<7x14xf32>
    %497 = tpu.iota {dimensions = array<i32: 0>} : vector<14x7xi32>
    %498 = tpu.iota {dimensions = array<i32: 1>} : vector<14x7xi32>
    %c0_i32_68 = arith.constant 0 : i32
    %499 = vector.broadcast %c0_i32_68 : i32 to vector<14x7xi32>
    %500 = arith.subi %498, %499 : vector<14x7xi32>
    %c2_i32_69 = arith.constant 2 : i32
    %501 = vector.broadcast %c2_i32_69 : i32 to vector<14x7xi32>
    %502 = arith.muli %501, %500 : vector<14x7xi32>
    %c0_i32_70 = arith.constant 0 : i32
    %503 = vector.broadcast %c0_i32_70 : i32 to vector<14x7xi32>
    %504 = arith.addi %502, %503 : vector<14x7xi32>
    %505 = arith.cmpi eq, %497, %504 : vector<14x7xi32>
    %cst_71 = arith.constant 1.000000e+00 : f32
    %cst_72 = arith.constant 0.000000e+00 : f32
    %506 = vector.broadcast %cst_71 : f32 to vector<14x7xf32>
    %507 = vector.broadcast %cst_72 : f32 to vector<14x7xf32>
    %508 = arith.select %505, %506, %507 : vector<14x7xi1>, vector<14x7xf32>
    %509 = tpu.iota {dimensions = array<i32: 0>} : vector<14x7xi32>
    %510 = tpu.iota {dimensions = array<i32: 1>} : vector<14x7xi32>
    %c0_i32_73 = arith.constant 0 : i32
    %511 = vector.broadcast %c0_i32_73 : i32 to vector<14x7xi32>
    %512 = arith.subi %510, %511 : vector<14x7xi32>
    %c2_i32_74 = arith.constant 2 : i32
    %513 = vector.broadcast %c2_i32_74 : i32 to vector<14x7xi32>
    %514 = arith.muli %513, %512 : vector<14x7xi32>
    %c1_i32_75 = arith.constant 1 : i32
    %515 = vector.broadcast %c1_i32_75 : i32 to vector<14x7xi32>
    %516 = arith.addi %514, %515 : vector<14x7xi32>
    %517 = arith.cmpi eq, %509, %516 : vector<14x7xi32>
    %cst_76 = arith.constant 1.000000e+00 : f32
    %cst_77 = arith.constant 0.000000e+00 : f32
    %518 = vector.broadcast %cst_76 : f32 to vector<14x7xf32>
    %519 = vector.broadcast %cst_77 : f32 to vector<14x7xf32>
    %520 = arith.select %517, %518, %519 : vector<14x7xi1>, vector<14x7xf32>
    %cst_78 = arith.constant dense<0.000000e+00> : vector<7x14xf32>
    %521 = tpu.matmul %484, %244, %cst_78 {dimension_numbers = #tpu.dot_dimension_numbers<[1], [0], [0], [1], [0, 0, 1, 1], [], []>} : vector<7x14xf32>, vector<14x14xf32>, vector<7x14xf32> -> vector<7x14xf32>
    %cst_79 = arith.constant dense<0.000000e+00> : vector<7x14xf32>
    %522 = tpu.matmul %496, %244, %cst_79 {dimension_numbers = #tpu.dot_dimension_numbers<[1], [0], [0], [1], [0, 0, 1, 1], [], []>} : vector<7x14xf32>, vector<14x14xf32>, vector<7x14xf32> -> vector<7x14xf32>
    %523 = arith.maximumf %521, %522 : vector<7x14xf32>
    %cst_80 = arith.constant dense<0.000000e+00> : vector<7x7xf32>
    %524 = tpu.matmul %523, %508, %cst_80 {dimension_numbers = #tpu.dot_dimension_numbers<[1], [0], [0], [1], [0, 0, 1, 1], [], []>} : vector<7x14xf32>, vector<14x7xf32>, vector<7x7xf32> -> vector<7x7xf32>
    %cst_81 = arith.constant dense<0.000000e+00> : vector<7x7xf32>
    %525 = tpu.matmul %523, %520, %cst_81 {dimension_numbers = #tpu.dot_dimension_numbers<[1], [0], [0], [1], [0, 0, 1, 1], [], []>} : vector<7x14xf32>, vector<14x7xf32>, vector<7x7xf32> -> vector<7x7xf32>
    %526 = arith.maximumf %524, %525 : vector<7x7xf32>
    %cst_82 = arith.constant dense<0.000000e+00> : vector<7x14xf32>
    %527 = tpu.matmul %484, %320, %cst_82 {dimension_numbers = #tpu.dot_dimension_numbers<[1], [0], [0], [1], [0, 0, 1, 1], [], []>} : vector<7x14xf32>, vector<14x14xf32>, vector<7x14xf32> -> vector<7x14xf32>
    %cst_83 = arith.constant dense<0.000000e+00> : vector<7x14xf32>
    %528 = tpu.matmul %496, %320, %cst_83 {dimension_numbers = #tpu.dot_dimension_numbers<[1], [0], [0], [1], [0, 0, 1, 1], [], []>} : vector<7x14xf32>, vector<14x14xf32>, vector<7x14xf32> -> vector<7x14xf32>
    %529 = arith.maximumf %527, %528 : vector<7x14xf32>
    %cst_84 = arith.constant dense<0.000000e+00> : vector<7x7xf32>
    %530 = tpu.matmul %529, %508, %cst_84 {dimension_numbers = #tpu.dot_dimension_numbers<[1], [0], [0], [1], [0, 0, 1, 1], [], []>} : vector<7x14xf32>, vector<14x7xf32>, vector<7x7xf32> -> vector<7x7xf32>
    %cst_85 = arith.constant dense<0.000000e+00> : vector<7x7xf32>
    %531 = tpu.matmul %529, %520, %cst_85 {dimension_numbers = #tpu.dot_dimension_numbers<[1], [0], [0], [1], [0, 0, 1, 1], [], []>} : vector<7x14xf32>, vector<14x7xf32>, vector<7x7xf32> -> vector<7x7xf32>
    %532 = arith.maximumf %530, %531 : vector<7x7xf32>
    %cst_86 = arith.constant dense<0.000000e+00> : vector<7x14xf32>
    %533 = tpu.matmul %484, %396, %cst_86 {dimension_numbers = #tpu.dot_dimension_numbers<[1], [0], [0], [1], [0, 0, 1, 1], [], []>} : vector<7x14xf32>, vector<14x14xf32>, vector<7x14xf32> -> vector<7x14xf32>
    %cst_87 = arith.constant dense<0.000000e+00> : vector<7x14xf32>
    %534 = tpu.matmul %496, %396, %cst_87 {dimension_numbers = #tpu.dot_dimension_numbers<[1], [0], [0], [1], [0, 0, 1, 1], [], []>} : vector<7x14xf32>, vector<14x14xf32>, vector<7x14xf32> -> vector<7x14xf32>
    %535 = arith.maximumf %533, %534 : vector<7x14xf32>
    %cst_88 = arith.constant dense<0.000000e+00> : vector<7x7xf32>
    %536 = tpu.matmul %535, %508, %cst_88 {dimension_numbers = #tpu.dot_dimension_numbers<[1], [0], [0], [1], [0, 0, 1, 1], [], []>} : vector<7x14xf32>, vector<14x7xf32>, vector<7x7xf32> -> vector<7x7xf32>
    %cst_89 = arith.constant dense<0.000000e+00> : vector<7x7xf32>
    %537 = tpu.matmul %535, %520, %cst_89 {dimension_numbers = #tpu.dot_dimension_numbers<[1], [0], [0], [1], [0, 0, 1, 1], [], []>} : vector<7x14xf32>, vector<14x7xf32>, vector<7x7xf32> -> vector<7x7xf32>
    %538 = arith.maximumf %536, %537 : vector<7x7xf32>
    %cst_90 = arith.constant dense<0.000000e+00> : vector<7x14xf32>
    %539 = tpu.matmul %484, %472, %cst_90 {dimension_numbers = #tpu.dot_dimension_numbers<[1], [0], [0], [1], [0, 0, 1, 1], [], []>} : vector<7x14xf32>, vector<14x14xf32>, vector<7x14xf32> -> vector<7x14xf32>
    %cst_91 = arith.constant dense<0.000000e+00> : vector<7x14xf32>
    %540 = tpu.matmul %496, %472, %cst_91 {dimension_numbers = #tpu.dot_dimension_numbers<[1], [0], [0], [1], [0, 0, 1, 1], [], []>} : vector<7x14xf32>, vector<14x14xf32>, vector<7x14xf32> -> vector<7x14xf32>
    %541 = arith.maximumf %539, %540 : vector<7x14xf32>
    %cst_92 = arith.constant dense<0.000000e+00> : vector<7x7xf32>
    %542 = tpu.matmul %541, %508, %cst_92 {dimension_numbers = #tpu.dot_dimension_numbers<[1], [0], [0], [1], [0, 0, 1, 1], [], []>} : vector<7x14xf32>, vector<14x7xf32>, vector<7x7xf32> -> vector<7x7xf32>
    %cst_93 = arith.constant dense<0.000000e+00> : vector<7x7xf32>
    %543 = tpu.matmul %541, %520, %cst_93 {dimension_numbers = #tpu.dot_dimension_numbers<[1], [0], [0], [1], [0, 0, 1, 1], [], []>} : vector<7x14xf32>, vector<14x7xf32>, vector<7x7xf32> -> vector<7x7xf32>
    %544 = arith.maximumf %542, %543 : vector<7x7xf32>
    %c0_94 = arith.constant 0 : index
    %c0_95 = arith.constant 0 : index
    %545 = vector.load %arg7[%c0_94, %c0_95] : memref<1x10xf32, #tpu.memory_space<vmem>>, vector<1x10xf32>
    %546 = vector.extract_strided_slice %526 {offsets = [0, 0], sizes = [1, 7], strides = [1, 1]} : vector<7x7xf32> to vector<1x7xf32>
    %c0_96 = arith.constant 0 : index
    %c0_97 = arith.constant 0 : index
    %c0_98 = arith.constant 0 : index
    %547 = vector.load %arg6[%c0_96, %c0_97, %c0_98] : memref<28x7x10xf32, #tpu.memory_space<vmem>>, vector<1x7x10xf32>
    %548 = vector.shape_cast %547 : vector<1x7x10xf32> to vector<7x10xf32>
    %cst_99 = arith.constant dense<0.000000e+00> : vector<1x10xf32>
    %549 = tpu.matmul %546, %548, %cst_99 {dimension_numbers = #tpu.dot_dimension_numbers<[1], [0], [0], [1], [0, 0, 1, 1], [], []>} : vector<1x7xf32>, vector<7x10xf32>, vector<1x10xf32> -> vector<1x10xf32>
    %550 = arith.addf %545, %549 : vector<1x10xf32>
    %551 = vector.extract_strided_slice %526 {offsets = [1, 0], sizes = [1, 7], strides = [1, 1]} : vector<7x7xf32> to vector<1x7xf32>
    %c1_100 = arith.constant 1 : index
    %c0_101 = arith.constant 0 : index
    %c0_102 = arith.constant 0 : index
    %552 = vector.load %arg6[%c1_100, %c0_101, %c0_102] : memref<28x7x10xf32, #tpu.memory_space<vmem>>, vector<1x7x10xf32>
    %553 = vector.shape_cast %552 : vector<1x7x10xf32> to vector<7x10xf32>
    %cst_103 = arith.constant dense<0.000000e+00> : vector<1x10xf32>
    %554 = tpu.matmul %551, %553, %cst_103 {dimension_numbers = #tpu.dot_dimension_numbers<[1], [0], [0], [1], [0, 0, 1, 1], [], []>} : vector<1x7xf32>, vector<7x10xf32>, vector<1x10xf32> -> vector<1x10xf32>
    %555 = arith.addf %550, %554 : vector<1x10xf32>
    %556 = vector.extract_strided_slice %526 {offsets = [2, 0], sizes = [1, 7], strides = [1, 1]} : vector<7x7xf32> to vector<1x7xf32>
    %c2_104 = arith.constant 2 : index
    %c0_105 = arith.constant 0 : index
    %c0_106 = arith.constant 0 : index
    %557 = vector.load %arg6[%c2_104, %c0_105, %c0_106] : memref<28x7x10xf32, #tpu.memory_space<vmem>>, vector<1x7x10xf32>
    %558 = vector.shape_cast %557 : vector<1x7x10xf32> to vector<7x10xf32>
    %cst_107 = arith.constant dense<0.000000e+00> : vector<1x10xf32>
    %559 = tpu.matmul %556, %558, %cst_107 {dimension_numbers = #tpu.dot_dimension_numbers<[1], [0], [0], [1], [0, 0, 1, 1], [], []>} : vector<1x7xf32>, vector<7x10xf32>, vector<1x10xf32> -> vector<1x10xf32>
    %560 = arith.addf %555, %559 : vector<1x10xf32>
    %561 = vector.extract_strided_slice %526 {offsets = [3, 0], sizes = [1, 7], strides = [1, 1]} : vector<7x7xf32> to vector<1x7xf32>
    %c3_108 = arith.constant 3 : index
    %c0_109 = arith.constant 0 : index
    %c0_110 = arith.constant 0 : index
    %562 = vector.load %arg6[%c3_108, %c0_109, %c0_110] : memref<28x7x10xf32, #tpu.memory_space<vmem>>, vector<1x7x10xf32>
    %563 = vector.shape_cast %562 : vector<1x7x10xf32> to vector<7x10xf32>
    %cst_111 = arith.constant dense<0.000000e+00> : vector<1x10xf32>
    %564 = tpu.matmul %561, %563, %cst_111 {dimension_numbers = #tpu.dot_dimension_numbers<[1], [0], [0], [1], [0, 0, 1, 1], [], []>} : vector<1x7xf32>, vector<7x10xf32>, vector<1x10xf32> -> vector<1x10xf32>
    %565 = arith.addf %560, %564 : vector<1x10xf32>
    %566 = vector.extract_strided_slice %526 {offsets = [4, 0], sizes = [1, 7], strides = [1, 1]} : vector<7x7xf32> to vector<1x7xf32>
    %c4_112 = arith.constant 4 : index
    %c0_113 = arith.constant 0 : index
    %c0_114 = arith.constant 0 : index
    %567 = vector.load %arg6[%c4_112, %c0_113, %c0_114] : memref<28x7x10xf32, #tpu.memory_space<vmem>>, vector<1x7x10xf32>
    %568 = vector.shape_cast %567 : vector<1x7x10xf32> to vector<7x10xf32>
    %cst_115 = arith.constant dense<0.000000e+00> : vector<1x10xf32>
    %569 = tpu.matmul %566, %568, %cst_115 {dimension_numbers = #tpu.dot_dimension_numbers<[1], [0], [0], [1], [0, 0, 1, 1], [], []>} : vector<1x7xf32>, vector<7x10xf32>, vector<1x10xf32> -> vector<1x10xf32>
    %570 = arith.addf %565, %569 : vector<1x10xf32>
    %571 = vector.extract_strided_slice %526 {offsets = [5, 0], sizes = [1, 7], strides = [1, 1]} : vector<7x7xf32> to vector<1x7xf32>
    %c5_116 = arith.constant 5 : index
    %c0_117 = arith.constant 0 : index
    %c0_118 = arith.constant 0 : index
    %572 = vector.load %arg6[%c5_116, %c0_117, %c0_118] : memref<28x7x10xf32, #tpu.memory_space<vmem>>, vector<1x7x10xf32>
    %573 = vector.shape_cast %572 : vector<1x7x10xf32> to vector<7x10xf32>
    %cst_119 = arith.constant dense<0.000000e+00> : vector<1x10xf32>
    %574 = tpu.matmul %571, %573, %cst_119 {dimension_numbers = #tpu.dot_dimension_numbers<[1], [0], [0], [1], [0, 0, 1, 1], [], []>} : vector<1x7xf32>, vector<7x10xf32>, vector<1x10xf32> -> vector<1x10xf32>
    %575 = arith.addf %570, %574 : vector<1x10xf32>
    %576 = vector.extract_strided_slice %526 {offsets = [6, 0], sizes = [1, 7], strides = [1, 1]} : vector<7x7xf32> to vector<1x7xf32>
    %c6_120 = arith.constant 6 : index
    %c0_121 = arith.constant 0 : index
    %c0_122 = arith.constant 0 : index
    %577 = vector.load %arg6[%c6_120, %c0_121, %c0_122] : memref<28x7x10xf32, #tpu.memory_space<vmem>>, vector<1x7x10xf32>
    %578 = vector.shape_cast %577 : vector<1x7x10xf32> to vector<7x10xf32>
    %cst_123 = arith.constant dense<0.000000e+00> : vector<1x10xf32>
    %579 = tpu.matmul %576, %578, %cst_123 {dimension_numbers = #tpu.dot_dimension_numbers<[1], [0], [0], [1], [0, 0, 1, 1], [], []>} : vector<1x7xf32>, vector<7x10xf32>, vector<1x10xf32> -> vector<1x10xf32>
    %580 = arith.addf %575, %579 : vector<1x10xf32>
    %581 = vector.extract_strided_slice %532 {offsets = [0, 0], sizes = [1, 7], strides = [1, 1]} : vector<7x7xf32> to vector<1x7xf32>
    %c7_124 = arith.constant 7 : index
    %c0_125 = arith.constant 0 : index
    %c0_126 = arith.constant 0 : index
    %582 = vector.load %arg6[%c7_124, %c0_125, %c0_126] : memref<28x7x10xf32, #tpu.memory_space<vmem>>, vector<1x7x10xf32>
    %583 = vector.shape_cast %582 : vector<1x7x10xf32> to vector<7x10xf32>
    %cst_127 = arith.constant dense<0.000000e+00> : vector<1x10xf32>
    %584 = tpu.matmul %581, %583, %cst_127 {dimension_numbers = #tpu.dot_dimension_numbers<[1], [0], [0], [1], [0, 0, 1, 1], [], []>} : vector<1x7xf32>, vector<7x10xf32>, vector<1x10xf32> -> vector<1x10xf32>
    %585 = arith.addf %580, %584 : vector<1x10xf32>
    %586 = vector.extract_strided_slice %532 {offsets = [1, 0], sizes = [1, 7], strides = [1, 1]} : vector<7x7xf32> to vector<1x7xf32>
    %c8_128 = arith.constant 8 : index
    %c0_129 = arith.constant 0 : index
    %c0_130 = arith.constant 0 : index
    %587 = vector.load %arg6[%c8_128, %c0_129, %c0_130] : memref<28x7x10xf32, #tpu.memory_space<vmem>>, vector<1x7x10xf32>
    %588 = vector.shape_cast %587 : vector<1x7x10xf32> to vector<7x10xf32>
    %cst_131 = arith.constant dense<0.000000e+00> : vector<1x10xf32>
    %589 = tpu.matmul %586, %588, %cst_131 {dimension_numbers = #tpu.dot_dimension_numbers<[1], [0], [0], [1], [0, 0, 1, 1], [], []>} : vector<1x7xf32>, vector<7x10xf32>, vector<1x10xf32> -> vector<1x10xf32>
    %590 = arith.addf %585, %589 : vector<1x10xf32>
    %591 = vector.extract_strided_slice %532 {offsets = [2, 0], sizes = [1, 7], strides = [1, 1]} : vector<7x7xf32> to vector<1x7xf32>
    %c9_132 = arith.constant 9 : index
    %c0_133 = arith.constant 0 : index
    %c0_134 = arith.constant 0 : index
    %592 = vector.load %arg6[%c9_132, %c0_133, %c0_134] : memref<28x7x10xf32, #tpu.memory_space<vmem>>, vector<1x7x10xf32>
    %593 = vector.shape_cast %592 : vector<1x7x10xf32> to vector<7x10xf32>
    %cst_135 = arith.constant dense<0.000000e+00> : vector<1x10xf32>
    %594 = tpu.matmul %591, %593, %cst_135 {dimension_numbers = #tpu.dot_dimension_numbers<[1], [0], [0], [1], [0, 0, 1, 1], [], []>} : vector<1x7xf32>, vector<7x10xf32>, vector<1x10xf32> -> vector<1x10xf32>
    %595 = arith.addf %590, %594 : vector<1x10xf32>
    %596 = vector.extract_strided_slice %532 {offsets = [3, 0], sizes = [1, 7], strides = [1, 1]} : vector<7x7xf32> to vector<1x7xf32>
    %c10_136 = arith.constant 10 : index
    %c0_137 = arith.constant 0 : index
    %c0_138 = arith.constant 0 : index
    %597 = vector.load %arg6[%c10_136, %c0_137, %c0_138] : memref<28x7x10xf32, #tpu.memory_space<vmem>>, vector<1x7x10xf32>
    %598 = vector.shape_cast %597 : vector<1x7x10xf32> to vector<7x10xf32>
    %cst_139 = arith.constant dense<0.000000e+00> : vector<1x10xf32>
    %599 = tpu.matmul %596, %598, %cst_139 {dimension_numbers = #tpu.dot_dimension_numbers<[1], [0], [0], [1], [0, 0, 1, 1], [], []>} : vector<1x7xf32>, vector<7x10xf32>, vector<1x10xf32> -> vector<1x10xf32>
    %600 = arith.addf %595, %599 : vector<1x10xf32>
    %601 = vector.extract_strided_slice %532 {offsets = [4, 0], sizes = [1, 7], strides = [1, 1]} : vector<7x7xf32> to vector<1x7xf32>
    %c11_140 = arith.constant 11 : index
    %c0_141 = arith.constant 0 : index
    %c0_142 = arith.constant 0 : index
    %602 = vector.load %arg6[%c11_140, %c0_141, %c0_142] : memref<28x7x10xf32, #tpu.memory_space<vmem>>, vector<1x7x10xf32>
    %603 = vector.shape_cast %602 : vector<1x7x10xf32> to vector<7x10xf32>
    %cst_143 = arith.constant dense<0.000000e+00> : vector<1x10xf32>
    %604 = tpu.matmul %601, %603, %cst_143 {dimension_numbers = #tpu.dot_dimension_numbers<[1], [0], [0], [1], [0, 0, 1, 1], [], []>} : vector<1x7xf32>, vector<7x10xf32>, vector<1x10xf32> -> vector<1x10xf32>
    %605 = arith.addf %600, %604 : vector<1x10xf32>
    %606 = vector.extract_strided_slice %532 {offsets = [5, 0], sizes = [1, 7], strides = [1, 1]} : vector<7x7xf32> to vector<1x7xf32>
    %c12_144 = arith.constant 12 : index
    %c0_145 = arith.constant 0 : index
    %c0_146 = arith.constant 0 : index
    %607 = vector.load %arg6[%c12_144, %c0_145, %c0_146] : memref<28x7x10xf32, #tpu.memory_space<vmem>>, vector<1x7x10xf32>
    %608 = vector.shape_cast %607 : vector<1x7x10xf32> to vector<7x10xf32>
    %cst_147 = arith.constant dense<0.000000e+00> : vector<1x10xf32>
    %609 = tpu.matmul %606, %608, %cst_147 {dimension_numbers = #tpu.dot_dimension_numbers<[1], [0], [0], [1], [0, 0, 1, 1], [], []>} : vector<1x7xf32>, vector<7x10xf32>, vector<1x10xf32> -> vector<1x10xf32>
    %610 = arith.addf %605, %609 : vector<1x10xf32>
    %611 = vector.extract_strided_slice %532 {offsets = [6, 0], sizes = [1, 7], strides = [1, 1]} : vector<7x7xf32> to vector<1x7xf32>
    %c13_148 = arith.constant 13 : index
    %c0_149 = arith.constant 0 : index
    %c0_150 = arith.constant 0 : index
    %612 = vector.load %arg6[%c13_148, %c0_149, %c0_150] : memref<28x7x10xf32, #tpu.memory_space<vmem>>, vector<1x7x10xf32>
    %613 = vector.shape_cast %612 : vector<1x7x10xf32> to vector<7x10xf32>
    %cst_151 = arith.constant dense<0.000000e+00> : vector<1x10xf32>
    %614 = tpu.matmul %611, %613, %cst_151 {dimension_numbers = #tpu.dot_dimension_numbers<[1], [0], [0], [1], [0, 0, 1, 1], [], []>} : vector<1x7xf32>, vector<7x10xf32>, vector<1x10xf32> -> vector<1x10xf32>
    %615 = arith.addf %610, %614 : vector<1x10xf32>
    %616 = vector.extract_strided_slice %538 {offsets = [0, 0], sizes = [1, 7], strides = [1, 1]} : vector<7x7xf32> to vector<1x7xf32>
    %c14_152 = arith.constant 14 : index
    %c0_153 = arith.constant 0 : index
    %c0_154 = arith.constant 0 : index
    %617 = vector.load %arg6[%c14_152, %c0_153, %c0_154] : memref<28x7x10xf32, #tpu.memory_space<vmem>>, vector<1x7x10xf32>
    %618 = vector.shape_cast %617 : vector<1x7x10xf32> to vector<7x10xf32>
    %cst_155 = arith.constant dense<0.000000e+00> : vector<1x10xf32>
    %619 = tpu.matmul %616, %618, %cst_155 {dimension_numbers = #tpu.dot_dimension_numbers<[1], [0], [0], [1], [0, 0, 1, 1], [], []>} : vector<1x7xf32>, vector<7x10xf32>, vector<1x10xf32> -> vector<1x10xf32>
    %620 = arith.addf %615, %619 : vector<1x10xf32>
    %621 = vector.extract_strided_slice %538 {offsets = [1, 0], sizes = [1, 7], strides = [1, 1]} : vector<7x7xf32> to vector<1x7xf32>
    %c15_156 = arith.constant 15 : index
    %c0_157 = arith.constant 0 : index
    %c0_158 = arith.constant 0 : index
    %622 = vector.load %arg6[%c15_156, %c0_157, %c0_158] : memref<28x7x10xf32, #tpu.memory_space<vmem>>, vector<1x7x10xf32>
    %623 = vector.shape_cast %622 : vector<1x7x10xf32> to vector<7x10xf32>
    %cst_159 = arith.constant dense<0.000000e+00> : vector<1x10xf32>
    %624 = tpu.matmul %621, %623, %cst_159 {dimension_numbers = #tpu.dot_dimension_numbers<[1], [0], [0], [1], [0, 0, 1, 1], [], []>} : vector<1x7xf32>, vector<7x10xf32>, vector<1x10xf32> -> vector<1x10xf32>
    %625 = arith.addf %620, %624 : vector<1x10xf32>
    %626 = vector.extract_strided_slice %538 {offsets = [2, 0], sizes = [1, 7], strides = [1, 1]} : vector<7x7xf32> to vector<1x7xf32>
    %c16_160 = arith.constant 16 : index
    %c0_161 = arith.constant 0 : index
    %c0_162 = arith.constant 0 : index
    %627 = vector.load %arg6[%c16_160, %c0_161, %c0_162] : memref<28x7x10xf32, #tpu.memory_space<vmem>>, vector<1x7x10xf32>
    %628 = vector.shape_cast %627 : vector<1x7x10xf32> to vector<7x10xf32>
    %cst_163 = arith.constant dense<0.000000e+00> : vector<1x10xf32>
    %629 = tpu.matmul %626, %628, %cst_163 {dimension_numbers = #tpu.dot_dimension_numbers<[1], [0], [0], [1], [0, 0, 1, 1], [], []>} : vector<1x7xf32>, vector<7x10xf32>, vector<1x10xf32> -> vector<1x10xf32>
    %630 = arith.addf %625, %629 : vector<1x10xf32>
    %631 = vector.extract_strided_slice %538 {offsets = [3, 0], sizes = [1, 7], strides = [1, 1]} : vector<7x7xf32> to vector<1x7xf32>
    %c17_164 = arith.constant 17 : index
    %c0_165 = arith.constant 0 : index
    %c0_166 = arith.constant 0 : index
    %632 = vector.load %arg6[%c17_164, %c0_165, %c0_166] : memref<28x7x10xf32, #tpu.memory_space<vmem>>, vector<1x7x10xf32>
    %633 = vector.shape_cast %632 : vector<1x7x10xf32> to vector<7x10xf32>
    %cst_167 = arith.constant dense<0.000000e+00> : vector<1x10xf32>
    %634 = tpu.matmul %631, %633, %cst_167 {dimension_numbers = #tpu.dot_dimension_numbers<[1], [0], [0], [1], [0, 0, 1, 1], [], []>} : vector<1x7xf32>, vector<7x10xf32>, vector<1x10xf32> -> vector<1x10xf32>
    %635 = arith.addf %630, %634 : vector<1x10xf32>
    %636 = vector.extract_strided_slice %538 {offsets = [4, 0], sizes = [1, 7], strides = [1, 1]} : vector<7x7xf32> to vector<1x7xf32>
    %c18_168 = arith.constant 18 : index
    %c0_169 = arith.constant 0 : index
    %c0_170 = arith.constant 0 : index
    %637 = vector.load %arg6[%c18_168, %c0_169, %c0_170] : memref<28x7x10xf32, #tpu.memory_space<vmem>>, vector<1x7x10xf32>
    %638 = vector.shape_cast %637 : vector<1x7x10xf32> to vector<7x10xf32>
    %cst_171 = arith.constant dense<0.000000e+00> : vector<1x10xf32>
    %639 = tpu.matmul %636, %638, %cst_171 {dimension_numbers = #tpu.dot_dimension_numbers<[1], [0], [0], [1], [0, 0, 1, 1], [], []>} : vector<1x7xf32>, vector<7x10xf32>, vector<1x10xf32> -> vector<1x10xf32>
    %640 = arith.addf %635, %639 : vector<1x10xf32>
    %641 = vector.extract_strided_slice %538 {offsets = [5, 0], sizes = [1, 7], strides = [1, 1]} : vector<7x7xf32> to vector<1x7xf32>
    %c19_172 = arith.constant 19 : index
    %c0_173 = arith.constant 0 : index
    %c0_174 = arith.constant 0 : index
    %642 = vector.load %arg6[%c19_172, %c0_173, %c0_174] : memref<28x7x10xf32, #tpu.memory_space<vmem>>, vector<1x7x10xf32>
    %643 = vector.shape_cast %642 : vector<1x7x10xf32> to vector<7x10xf32>
    %cst_175 = arith.constant dense<0.000000e+00> : vector<1x10xf32>
    %644 = tpu.matmul %641, %643, %cst_175 {dimension_numbers = #tpu.dot_dimension_numbers<[1], [0], [0], [1], [0, 0, 1, 1], [], []>} : vector<1x7xf32>, vector<7x10xf32>, vector<1x10xf32> -> vector<1x10xf32>
    %645 = arith.addf %640, %644 : vector<1x10xf32>
    %646 = vector.extract_strided_slice %538 {offsets = [6, 0], sizes = [1, 7], strides = [1, 1]} : vector<7x7xf32> to vector<1x7xf32>
    %c20_176 = arith.constant 20 : index
    %c0_177 = arith.constant 0 : index
    %c0_178 = arith.constant 0 : index
    %647 = vector.load %arg6[%c20_176, %c0_177, %c0_178] : memref<28x7x10xf32, #tpu.memory_space<vmem>>, vector<1x7x10xf32>
    %648 = vector.shape_cast %647 : vector<1x7x10xf32> to vector<7x10xf32>
    %cst_179 = arith.constant dense<0.000000e+00> : vector<1x10xf32>
    %649 = tpu.matmul %646, %648, %cst_179 {dimension_numbers = #tpu.dot_dimension_numbers<[1], [0], [0], [1], [0, 0, 1, 1], [], []>} : vector<1x7xf32>, vector<7x10xf32>, vector<1x10xf32> -> vector<1x10xf32>
    %650 = arith.addf %645, %649 : vector<1x10xf32>
    %651 = vector.extract_strided_slice %544 {offsets = [0, 0], sizes = [1, 7], strides = [1, 1]} : vector<7x7xf32> to vector<1x7xf32>
    %c21_180 = arith.constant 21 : index
    %c0_181 = arith.constant 0 : index
    %c0_182 = arith.constant 0 : index
    %652 = vector.load %arg6[%c21_180, %c0_181, %c0_182] : memref<28x7x10xf32, #tpu.memory_space<vmem>>, vector<1x7x10xf32>
    %653 = vector.shape_cast %652 : vector<1x7x10xf32> to vector<7x10xf32>
    %cst_183 = arith.constant dense<0.000000e+00> : vector<1x10xf32>
    %654 = tpu.matmul %651, %653, %cst_183 {dimension_numbers = #tpu.dot_dimension_numbers<[1], [0], [0], [1], [0, 0, 1, 1], [], []>} : vector<1x7xf32>, vector<7x10xf32>, vector<1x10xf32> -> vector<1x10xf32>
    %655 = arith.addf %650, %654 : vector<1x10xf32>
    %656 = vector.extract_strided_slice %544 {offsets = [1, 0], sizes = [1, 7], strides = [1, 1]} : vector<7x7xf32> to vector<1x7xf32>
    %c22_184 = arith.constant 22 : index
    %c0_185 = arith.constant 0 : index
    %c0_186 = arith.constant 0 : index
    %657 = vector.load %arg6[%c22_184, %c0_185, %c0_186] : memref<28x7x10xf32, #tpu.memory_space<vmem>>, vector<1x7x10xf32>
    %658 = vector.shape_cast %657 : vector<1x7x10xf32> to vector<7x10xf32>
    %cst_187 = arith.constant dense<0.000000e+00> : vector<1x10xf32>
    %659 = tpu.matmul %656, %658, %cst_187 {dimension_numbers = #tpu.dot_dimension_numbers<[1], [0], [0], [1], [0, 0, 1, 1], [], []>} : vector<1x7xf32>, vector<7x10xf32>, vector<1x10xf32> -> vector<1x10xf32>
    %660 = arith.addf %655, %659 : vector<1x10xf32>
    %661 = vector.extract_strided_slice %544 {offsets = [2, 0], sizes = [1, 7], strides = [1, 1]} : vector<7x7xf32> to vector<1x7xf32>
    %c23_188 = arith.constant 23 : index
    %c0_189 = arith.constant 0 : index
    %c0_190 = arith.constant 0 : index
    %662 = vector.load %arg6[%c23_188, %c0_189, %c0_190] : memref<28x7x10xf32, #tpu.memory_space<vmem>>, vector<1x7x10xf32>
    %663 = vector.shape_cast %662 : vector<1x7x10xf32> to vector<7x10xf32>
    %cst_191 = arith.constant dense<0.000000e+00> : vector<1x10xf32>
    %664 = tpu.matmul %661, %663, %cst_191 {dimension_numbers = #tpu.dot_dimension_numbers<[1], [0], [0], [1], [0, 0, 1, 1], [], []>} : vector<1x7xf32>, vector<7x10xf32>, vector<1x10xf32> -> vector<1x10xf32>
    %665 = arith.addf %660, %664 : vector<1x10xf32>
    %666 = vector.extract_strided_slice %544 {offsets = [3, 0], sizes = [1, 7], strides = [1, 1]} : vector<7x7xf32> to vector<1x7xf32>
    %c24_192 = arith.constant 24 : index
    %c0_193 = arith.constant 0 : index
    %c0_194 = arith.constant 0 : index
    %667 = vector.load %arg6[%c24_192, %c0_193, %c0_194] : memref<28x7x10xf32, #tpu.memory_space<vmem>>, vector<1x7x10xf32>
    %668 = vector.shape_cast %667 : vector<1x7x10xf32> to vector<7x10xf32>
    %cst_195 = arith.constant dense<0.000000e+00> : vector<1x10xf32>
    %669 = tpu.matmul %666, %668, %cst_195 {dimension_numbers = #tpu.dot_dimension_numbers<[1], [0], [0], [1], [0, 0, 1, 1], [], []>} : vector<1x7xf32>, vector<7x10xf32>, vector<1x10xf32> -> vector<1x10xf32>
    %670 = arith.addf %665, %669 : vector<1x10xf32>
    %671 = vector.extract_strided_slice %544 {offsets = [4, 0], sizes = [1, 7], strides = [1, 1]} : vector<7x7xf32> to vector<1x7xf32>
    %c25_196 = arith.constant 25 : index
    %c0_197 = arith.constant 0 : index
    %c0_198 = arith.constant 0 : index
    %672 = vector.load %arg6[%c25_196, %c0_197, %c0_198] : memref<28x7x10xf32, #tpu.memory_space<vmem>>, vector<1x7x10xf32>
    %673 = vector.shape_cast %672 : vector<1x7x10xf32> to vector<7x10xf32>
    %cst_199 = arith.constant dense<0.000000e+00> : vector<1x10xf32>
    %674 = tpu.matmul %671, %673, %cst_199 {dimension_numbers = #tpu.dot_dimension_numbers<[1], [0], [0], [1], [0, 0, 1, 1], [], []>} : vector<1x7xf32>, vector<7x10xf32>, vector<1x10xf32> -> vector<1x10xf32>
    %675 = arith.addf %670, %674 : vector<1x10xf32>
    %676 = vector.extract_strided_slice %544 {offsets = [5, 0], sizes = [1, 7], strides = [1, 1]} : vector<7x7xf32> to vector<1x7xf32>
    %c26_200 = arith.constant 26 : index
    %c0_201 = arith.constant 0 : index
    %c0_202 = arith.constant 0 : index
    %677 = vector.load %arg6[%c26_200, %c0_201, %c0_202] : memref<28x7x10xf32, #tpu.memory_space<vmem>>, vector<1x7x10xf32>
    %678 = vector.shape_cast %677 : vector<1x7x10xf32> to vector<7x10xf32>
    %cst_203 = arith.constant dense<0.000000e+00> : vector<1x10xf32>
    %679 = tpu.matmul %676, %678, %cst_203 {dimension_numbers = #tpu.dot_dimension_numbers<[1], [0], [0], [1], [0, 0, 1, 1], [], []>} : vector<1x7xf32>, vector<7x10xf32>, vector<1x10xf32> -> vector<1x10xf32>
    %680 = arith.addf %675, %679 : vector<1x10xf32>
    %681 = vector.extract_strided_slice %544 {offsets = [6, 0], sizes = [1, 7], strides = [1, 1]} : vector<7x7xf32> to vector<1x7xf32>
    %c27_204 = arith.constant 27 : index
    %c0_205 = arith.constant 0 : index
    %c0_206 = arith.constant 0 : index
    %682 = vector.load %arg6[%c27_204, %c0_205, %c0_206] : memref<28x7x10xf32, #tpu.memory_space<vmem>>, vector<1x7x10xf32>
    %683 = vector.shape_cast %682 : vector<1x7x10xf32> to vector<7x10xf32>
    %cst_207 = arith.constant dense<0.000000e+00> : vector<1x10xf32>
    %684 = tpu.matmul %681, %683, %cst_207 {dimension_numbers = #tpu.dot_dimension_numbers<[1], [0], [0], [1], [0, 0, 1, 1], [], []>} : vector<1x7xf32>, vector<7x10xf32>, vector<1x10xf32> -> vector<1x10xf32>
    %685 = arith.addf %680, %684 : vector<1x10xf32>
    %c0_208 = arith.constant 0 : index
    %c0_209 = arith.constant 0 : index
    %c0_210 = arith.constant 0 : index
    %686 = vector.load %arg8[%c0_208, %c0_209, %c0_210] : memref<1x1x10xf32, #tpu.memory_space<vmem>>, vector<1x1x10xf32>
    %687 = vector.shape_cast %686 : vector<1x1x10xf32> to vector<1x10xf32>
    %688 = vector.shape_cast %685 : vector<1x10xf32> to vector<1x1x10xf32>
    tpu.vector_store %arg8[%c0_208, %c0_209, %c0_210], %688 {strides = array<i32>} : memref<1x1x10xf32, #tpu.memory_space<vmem>>, vector<1x1x10xf32>,
    return
  }
  func.func @transform_0(%arg0: i32) -> (i32, i32, i32, i32) {
    %c0_i32 = arith.constant 0 : i32
    %c0_i32_0 = arith.constant 0 : i32
    %c0_i32_1 = arith.constant 0 : i32
    %c0_i32_2 = arith.constant 0 : i32
    return %arg0, %c0_i32, %c0_i32_0, %c0_i32_1 : i32, i32, i32, i32
  }
  func.func @transform_1(%arg0: i32) -> i32 {
    %c0_i32 = arith.constant 0 : i32
    %c0_i32_0 = arith.constant 0 : i32
    return %c0_i32 : i32
  }
  func.func @transform_2(%arg0: i32) -> i32 {
    %c0_i32 = arith.constant 0 : i32
    %c0_i32_0 = arith.constant 0 : i32
    return %c0_i32 : i32
  }
  func.func @transform_3(%arg0: i32) -> i32 {
    %c0_i32 = arith.constant 0 : i32
    %c0_i32_0 = arith.constant 0 : i32
    return %c0_i32 : i32
  }
  func.func @transform_4(%arg0: i32) -> i32 {
    %c0_i32 = arith.constant 0 : i32
    %c0_i32_0 = arith.constant 0 : i32
    return %c0_i32 : i32
  }
  func.func @transform_5(%arg0: i32) -> (i32, i32, i32) {
    %c0_i32 = arith.constant 0 : i32
    %c0_i32_0 = arith.constant 0 : i32
    %c0_i32_1 = arith.constant 0 : i32
    %c0_i32_2 = arith.constant 0 : i32
    return %c0_i32, %c0_i32_0, %c0_i32_1 : i32, i32, i32
  }
  func.func @transform_6(%arg0: i32) -> (i32, i32) {
    %c0_i32 = arith.constant 0 : i32
    %c0_i32_0 = arith.constant 0 : i32
    %c0_i32_1 = arith.constant 0 : i32
    return %c0_i32, %c0_i32_0 : i32, i32
  }
  func.func @transform_7(%arg0: i32) -> (i32, i32, i32) {
    %c0_i32 = arith.constant 0 : i32
    %c0_i32_0 = arith.constant 0 : i32
    %c0_i32_1 = arith.constant 0 : i32
    return %arg0, %c0_i32, %c0_i32_0 : i32, i32, i32
  }
}

</mosaic_0001>

<bundles_post_ra>
// kernel: cnn_forward.1
= control target key start
LH: loop header
LB: loop body
LE: loop exit
PB: predicated region body
PF: predicated region fallthrough
CT: control target
= control target key end

     0   :  { %s9189_s0 = inlined_call_operand.vmem [shape: f32[2,1,30,30], index: 0, kind: input, shape index: {}]   ;;  %s9190_s1 = inlined_call_operand.vmem [shape: f32[18], index: 1, kind: input, shape index: {}]   ;;  %s9191_s2 = inlined_call_operand.vmem [shape: f32[2], index: 2, kind: input, shape index: {}]   ;;  %s9192_s3 = inlined_call_operand.vmem [shape: f32[72], index: 3, kind: input, shape index: {}]   ;;  %s9193_s4 = inlined_call_operand.vmem [shape: f32[4], index: 4, kind: input, shape index: {}]   ;;  %s9194_s5 = inlined_call_operand.vmem [shape: f32[28,7,10], index: 5, kind: input, shape index: {}]   ;;  %s9195_s6 = inlined_call_operand.vmem [shape: f32[1,10], index: 6, kind: input, shape index: {}]   ;;  %s9196_s7 = inlined_call_operand.hbm [shape: f32[2,1,10], index: 7, kind: output, shape index: {}]  }
   0x1   :  { %9261 = sst [smem:[#allocation43_spill]] %s9189_s0 }
   0x2   :  { %9262 = sst [smem:[#allocation44_spill]] %s9190_s1 }
   0x3   :  { %12 = vsyncpa [#allocation4], 0 }
   0x4   :  { %13 = vsyncpa [#allocation6], 0 }
   0x5   :  { %14 = vsyncpa [#allocation9], 0 }
   0x6   :  { %15 = vsyncpa [#allocation3], 0 }
   0x7   :  { %17 = vsyncpa [#allocation3 + $0x1], 0  ;;  %s7305_s24 = smov 0   ;;  %s7307_s25 = smov 0  }
   0x8   :  { %s7309_s26 = smov 0   ;;  %s7311_s27 = smov 0  }
   0x9 LB: > { %s7326_s28 = sadd.s32 4294967295, %s7250_s27   ;;  %s6065_s29 = sadd.s32 4294967294, %s7250_s27   ;;  %s7250_s27 = sphi %s7311_s27, %s9413_s27   ;;  %s7246_s26 = sphi %s7309_s26, %s9412_s26   ;;  %s7242_s25 = sphi %s7307_s25, %s9411_s25   ;;  %s7238_s24 = sphi %s7305_s24, %s9410_s24  }
   0xa   : > { %s7330_s30 = sadd.s32 1, %s7250_s27   ;;  %s182_s8 = sadd.s32 1, %s7246_s26 }
   0xb   : > { %s179_s9 = ssub.s32 %s7250_s27, %s7330_s30  ;;  %p192_p0 = scmp.ne.s32.totalorder %s7246_s26, %s7242_s25 }
   0xc   : > { %p180_p1 = scmp.eq.s32.totalorder %s179_s9, 0  ;;  %p193_p2 = scmp.eq.s32.totalorder %s7326_s28, 1 }
   0xd   : > { %p198_p3 = scmp.ne.s32.totalorder %s7242_s25, %s7238_s24  ;;  %p199_p4 = scmp.eq.s32.totalorder %s6065_s29, 1 }
   0xe   : > { %s7341_s10 = scalar_select %p180_p1, %s7246_s26, %s182_s8  }
   0xf   : > { %p7343_p5 = por %p193_p2, %p192_p0  ;;  %p7347_p6 = por %p199_p4, %p198_p3 }
  0x10   : > { %p6066_p7 = scmp.ge.s32.totalorder %s7250_s27, 1  ;;  %p206_p8 = scmp.lt.s32.totalorder %s7250_s27, 3 }
  0x11   : > { %s9263_s11 = scalar_select %p7343_p5, 1, 0 }
  0x12   : > { %s9264_s12 = scalar_select %p7347_p6, 1, 0 }
  0x13   : > { %p9197_p9 = scmp.eq.s32.totalorder %s7326_s28, 0  ;;  %p7354_p10 = pnand %p6066_p7, %p206_p8 }
  0x14   : > { %s230_s16 = sshll.u32 %s9191_s2, 4  ;;  %s9266_s1 = sld [smem:[#allocation44_spill]]  ;;  %s231_s16 = int_to_ptr.vmem [resolvable:$true] %s230_s16 }
  0x15   : > { %s9265_s13 = scalar_select %p7354_p10, 1, 0 }
  0x16   : > { %p7046_p11 = pneg %p7354_p10  ;;  %s241_s23 = sshll.u32 %s9192_s3, 4  ;;  %s7375_s23 = int_to_ptr.vmem [resolvable:$true] %s241_s23 }
  0x17   : > { %s252_s9 = sshll.u32 %s9193_s4, 4  ;;  %s7116_s14 = scalar_lea.vmem %s231_s16, 16  ;;  %s253_s9 = int_to_ptr.vmem [resolvable:$true] %s252_s9 }
  0x18   : > { %p7368_p12 = pnand %p9197_p9, %p7046_p11  ;;  %p7117_p13 = scmp.ne.s32.totalorder %s231_s16, %s7116_s14 }
  0x19   : > { %p7124_p3 = scmp.lt.s32.totalorder %s231_s16, %s231_s16  ;;  %p7125_p4 = scmp.lt.s32.totalorder %s7116_s14, %s7116_s14 }
  0x1a   : > { %s219_s19 = sshll.u32 %s9266_s1, 4  ;;  %p7118_p0 = pneg %p7368_p12  ;;  %s220_s19 = int_to_ptr.vmem [resolvable:$true] %s219_s19 }
  0x1b   : > { %p7126_p7 = por %p7125_p4, %p7124_p3 }
  0x1c   : > { %p7119_p1 = pnand %p7118_p0, %p7117_p13 }
  0x1e   : > { %p7120_p2 = pneg %p7119_p1 }
  0x20   : > { %p7127_p8 = pnand %p7126_p7, %p7120_p2 }
  0x22   : > { %7130 = shalt.err (!%p7127_p8)
}
  0x23   : > { %s7252_s15 = smov [#allocation5]   ;;  %s7131_s17 = scalar_lea.vmem %s220_s19, 16 }
  0x24   : > { %7052 = dma.vmem_to_smem (!%p7368_p12), %s231_s16, 16, %s7252_s15, [#allocation6]  }
  0x25   : > { %p7132_p11 = scmp.ne.s32.totalorder %s220_s19, %s7131_s17  ;;  %p7139_p5 = scmp.lt.s32.totalorder %s220_s19, %s220_s19 }
  0x26   : > { %p7140_p10 = scmp.lt.s32.totalorder %s7131_s17, %s7131_s17 }
  0x27   : > { %p7134_p9 = pnand %p7132_p11, %p7118_p0 }
  0x28   : > { %p7141_p13 = por %p7140_p10, %p7139_p5 }
  0x29   : > { %p7135_p6 = pneg %p7134_p9 }
  0x2b   : > { %p7142_p1 = pnand %p7141_p13, %p7135_p6 }
  0x2d   : > { %7145 = shalt.err (!%p7142_p1)
}
  0x2e   : > { %s7253_s18 = smov [#allocation2]   ;;  %s7146_s16 = scalar_lea.vmem %s7375_s23, 16 }
  0x2f   : > { %7049 = dma.vmem_to_smem (!%p7368_p12), %s220_s19, 16, %s7253_s18, [#allocation4]  }
  0x30   : > { %p7147_p2 = scmp.ne.s32.totalorder %s7375_s23, %s7146_s16  ;;  %p7154_p9 = scmp.lt.s32.totalorder %s7375_s23, %s7375_s23 }
  0x31   : > { %p7155_p7 = scmp.lt.s32.totalorder %s7146_s16, %s7146_s16 }
  0x32   : > { %p7149_p3 = pnand %p7147_p2, %p7118_p0 }
  0x33   : > { %p7156_p5 = por %p7155_p7, %p7154_p9 }
  0x34   : > { %p7150_p4 = pneg %p7149_p3 }
  0x36   : > { %p7157_p6 = pnand %p7156_p5, %p7150_p4 }
  0x38   : > { %7160 = shalt.err (!%p7157_p6)
}
  0x39   : > { %s7254_s21 = smov [#allocation7]   ;;  %s7161_s29 = scalar_lea.vmem %s253_s9, 16 }
  0x3a   : > { %7055 = dma.vmem_to_smem (!%p7368_p12), %s7375_s23, 16, %s7254_s21, [#allocation6]  }
  0x3b   : > { %p7162_p10 = scmp.ne.s32.totalorder %s253_s9, %s7161_s29  ;;  %p7169_p13 = scmp.lt.s32.totalorder %s253_s9, %s253_s9 }
  0x3c   : > { %p7170_p1 = scmp.lt.s32.totalorder %s7161_s29, %s7161_s29 }
  0x3d   : > { %p7164_p8 = pnand %p7162_p10, %p7118_p0 }
  0x3e   : > { %p7171_p2 = por %p7170_p1, %p7169_p13 }
  0x3f   : > { %p7165_p11 = pneg %p7164_p8 }
  0x41   : > { %p7172_p3 = pnand %p7171_p2, %p7165_p11 }
  0x43   : > { %7175 = shalt.err (!%p7172_p3)
}
  0x44   : > { %s7255_s8 = smov [#allocation8]   ;;  %p9268_p4 = scmp.ne.s32.totalorder %s9265_s13, 0 }
  0x45   : > { %7058 = dma.vmem_to_smem (!%p7368_p12), %s253_s9, 16, %s7255_s8, [#allocation9]  }
  0x46   : > { %279 = sbr.rel (%p9268_p4) target bundleno = 2493 (0x9bd), region = 48 }
  0x4d   : > { %p9269_p9 = scmp.eq.s32.totalorder %s7326_s28, 0 }
  0x4f   : > { %7221 = dma.done.wait (%p9269_p9), [#allocation4], 16   ;;  %p9270_p7 = pmov %p9269_p9 }
  0x51   : > { %7223 = vsyncadd (%p9270_p7), [#allocation4], 4294967280  ;;  %p9271_p0 = pmov %p9270_p7 }
  0x53   : > { %7225 = dma.done.wait (%p9271_p0), [#allocation6], 32   ;;  %p9272_p5 = pmov %p9271_p0 }
  0x54   : > { %p9273_p6 = pmov %p9271_p0 }
  0x55   : > { %7227 = vsyncadd (%p9272_p5), [#allocation6], 4294967264 }
  0x56   : > { %7229 = dma.done.wait (%p9273_p6), [#allocation9], 16   ;;  %p9274_p12 = pmov %p9271_p0 }
  0x58   : > { %7231 = vsyncadd (%p9274_p12), [#allocation9], 4294967280 }
  0x59   : > { %297 = sfence }
  0x5a   : > { %p323_p10 = scmp.lt.s32.totalorder %s7326_s28, 1  ;;  %s6080_s13 = sld [smem:[#allocation2 + $0x2]]  ;;  %vm400_vm0 = vcmask 1046528   ;;  %vm492_vm1 = vcmask 1045504   ;;  %v834_v55 = vlaneseq  ;;  %vm874_vm3 = vcmask 228352  }
  0x5b   : > { %s6079_s20 = sld [smem:[#allocation2 + $0x1]]  ;;  %s6082_s9 = sld [smem:[#allocation2 + $0x4]]  ;;  %vm881_vm4 = vcmask 1043456   ;;  %vm7259_vm5 = vmmov 1  }
  0x5c   : > { %s324_s23 = scalar_select %p323_p10, %s7326_s28, 1  ;;  %v7490_v60 = vshrl.u32 %v834_v55, 7  ;;  %vm7600_vm6 = vmpackc.low %vm881_vm4, %vm7259_vm5 }
  0x5d   : > { %s9275_s0 = sld [smem:[#allocation43_spill]]  ;;  %s6083_s16 = sld [smem:[#allocation2 + $0x5]] }
  0x5e   : > { %s6336_s14 = sshll.u32 %s324_s23, 5  ;;  %s9220_s21 = smov 126   ;;  %9276 = vst [vmem:[#allocation15_spill] sm:$0xff] %v7490_v60  ;;  %v7495_v61 = vadd.s32 4294967295, %v7490_v60 }
  0x5f   : > { %s9222_s22 = smov 127   ;;  %s6085_s19 = sld [smem:[#allocation2 + $0x7]] }
  0x60   : > { %v365_v1 = vstv %s6080_s13  ;;  %s6086_s29 = sld [smem:[#allocation2 + $0x8]]  ;;  %s6088_s8 = sld [smem:[#allocation2 + $0xa]] }
  0x61   : > { %v339_v4 = vstv %s6079_s20  ;;  %v417_v10 = vstv %s6082_s9  ;;  %s6089_s13 = sld [smem:[#allocation2 + $0xb]]  ;;  %s6091_s20 = sld [smem:[#allocation2 + $0xd]] }
  0x62   : > { %s6092_s23 = sld [smem:[#allocation2 + $0xe]]  ;;  %s6094_s9 = sld [smem:[#allocation2 + $0x10]] }
  0x63   : > { %s327_s18 = scalar_lea.vmem %s9275_s0, %s6336_s14  ;;  %v450_v16 = vstv %s6083_s16  ;;  %s6095_s14 = sld [smem:[#allocation2 + $0x11]] }
  0x64   : > { %v7430_v0 = vld [vmem:[%s327_s18] sm:$0xff]  ;;  %v7432_v2 = vld [vmem:[%s327_s18 + $0x8] sm:$0xff]  ;;  %v7440_v8 = vld [vmem:[%s327_s18 + $0x18] sm:$0x3f]  ;;  %s332_s15 = sld [smem:[#allocation2]]  ;;  %s6081_s17 = sld [smem:[#allocation2 + $0x3]] }
  0x65   : > { %v366_v3 = vmul.f32 %v365_v1, %v7430_v0  ;;  %v340_v5 = vmul.f32 %v339_v4, %v7430_v0  ;;  %v367_v6 = vmul.f32 %v365_v1, %v7432_v2  ;;  %v341_v7 = vmul.f32 %v339_v4, %v7432_v2  ;;  %v7442_v9 = vld [vmem:[%s327_s18 + $0x10] sm:$0xff]  ;;  %s6084_s18 = sld [smem:[#allocation2 + $0x6]]  ;;  %s574_s16 = sld [smem:[#allocation5]] }
  0x66   : > { %v343_v11 = vmul.f32 %v339_v4, %v7440_v8  ;;  %v342_v12 = vmul.f32 %v339_v4, %v7442_v9  ;;  %v419_v13 = vmul.f32 %v417_v10, %v7432_v2  ;;  %v420_v14 = vmul.f32 %v417_v10, %v7442_v9  ;;  %s8144_s0 = sld [smem:[#allocation7 + $0x9]]  ;;  %s8146_s1 = sld [smem:[#allocation7 + $0x35]] }
  0x67   : > { %374 = vrot.lane.b32.xlu1 %v366_v3, %s9220_s21  ;;  %348 = vrot.lane.b32.xlu0 %v340_v5, %s9222_s22  ;;  %v418_v15 = vmul.f32 %v417_v10, %v7430_v0  ;;  %v369_v17 = vmul.f32 %v365_v1, %v7440_v8  ;;  %v368_v18 = vmul.f32 %v365_v1, %v7442_v9  ;;  %v509_v35 = vstv %s6085_s19  ;;  %s6087_s19 = sld [smem:[#allocation2 + $0x9]]  ;;  %p9408_p11 = scmp.ne.s32.totalorder %s9263_s11, 0 }
  0x68   : > { %v427_v19 = vrot.slane %v419_v13, 1  ;;  %v429_v20 = vrot.slane %v420_v14, 1  ;;  %v452_v21 = vmul.f32 %v450_v16, %v7432_v2  ;;  %v453_v22 = vmul.f32 %v450_v16, %v7442_v9 }
  0x69   : > { %v426_v23 = vrot.slane %v418_v15, 1  ;;  %v451_v24 = vmul.f32 %v450_v16, %v7430_v0  ;;  %v421_v30 = vmul.f32 %v417_v10, %v7440_v8  ;;  %v454_v34 = vmul.f32 %v450_v16, %v7440_v8 }
  0x6a   : > { %v430_v25 = vsel %vm400_vm0, %v427_v19, %v429_v20  ;;  %v460_v26 = vrot.slane %v452_v21, 1  ;;  %v462_v27 = vrot.slane %v453_v22, 1  ;;  %v511_v36 = vmul.f32 %v509_v35, %v7432_v2 }
  0x6b   : > { %376 = vrot.lane.b32.xlu1 %v367_v6, %s9220_s21  ;;  %350 = vrot.lane.b32.xlu0 %v341_v7, %s9222_s22  ;;  %v428_v28 = vsel %vm400_vm0, %v426_v23, %v427_v19  ;;  %v459_v29 = vrot.slane %v451_v24, 1  ;;  %v431_v33 = vrot.slane %v421_v30, 1  ;;  %v512_v37 = vmul.f32 %v509_v35, %v7442_v9 }
  0x6c   : > { %v463_v31 = vsel %vm400_vm0, %v460_v26, %v462_v27  ;;  %v464_v39 = vrot.slane %v454_v34, 1  ;;  %v510_v40 = vmul.f32 %v509_v35, %v7430_v0  ;;  %v542_v41 = vstv %s6086_s29  ;;  %s6090_s29 = sld [smem:[#allocation2 + $0xc]] }
  0x6d   : > { %v461_v32 = vsel %vm400_vm0, %v459_v29, %v460_v26  ;;  %v432_v38 = vsel %vm400_vm0, %v429_v20, %v431_v33  ;;  %v519_v42 = vrot.slane %v511_v36, 2  ;;  %v521_v43 = vrot.slane %v512_v37, 2 }
  0x6e   : > { %v544_v44 = vmul.f32 %v542_v41, %v7432_v2  ;;  %v545_v45 = vmul.f32 %v542_v41, %v7442_v9  ;;  %v465_v46 = vsel %vm400_vm0, %v462_v27, %v464_v39  ;;  %v518_v47 = vrot.slane %v510_v40, 2 }
  0x6f   : > { %354 = vrot.lane.b32.xlu1 %v343_v11, %s9222_s22  ;;  %352 = vrot.lane.b32.xlu0 %v342_v12, %s9222_s22  ;;  %v543_v48 = vmul.f32 %v542_v41, %v7430_v0  ;;  %v522_v49 = vsel %vm492_vm1, %v519_v42, %v521_v43  ;;  %v513_v54 = vmul.f32 %v509_v35, %v7440_v8  ;;  %v7498_v1 = vand.u32 127, %v834_v55 }
  0x70   : > { %v552_v50 = vrot.slane %v544_v44, 2  ;;  %v554_v51 = vrot.slane %v545_v45, 2  ;;  %v520_v52 = vsel %vm492_vm1, %v518_v47, %v519_v42  ;;  %v546_v59 = vmul.f32 %v542_v41, %v7440_v8 }
  0x71   : > { %v551_v53 = vrot.slane %v543_v48, 2  ;;  %v523_v58 = vrot.slane %v513_v54, 2  ;;  %9277 = vst [vmem:[#allocation16_spill] sm:$0xff] %v7498_v1  ;;  %v841_v3 = vmul.u32 2, %v7495_v61  ;;  %v9224_v5 = vmov 0.0  }
  0x72   : > { %v555_v56 = vsel %vm492_vm1, %v552_v50, %v554_v51  ;;  %v556_v63 = vrot.slane %v546_v59, 2  ;;  %v591_v7 = vstv %s6088_s8  ;;  %v617_v10 = vstv %s6089_s13  ;;  %s6093_s8 = sld [smem:[#allocation2 + $0xf]]  ;;  %s6096_s13 = sld [smem:[#allocation5 + $0x1]] }
  0x73   : > { %380 = vrot.lane.b32.xlu1 %v369_v17, %s9220_s21  ;;  %378 = vrot.lane.b32.xlu0 %v368_v18, %s9220_s21  ;;  %v553_v57 = vsel %vm492_vm1, %v551_v53, %v552_v50  ;;  %v524_v62 = vsel %vm492_vm1, %v521_v43, %v523_v58  ;;  %vm843_vm2 = vcmp.eq.s32.totalorder %v7498_v1, %v841_v3  ;;  %v668_v15 = vstv %s6091_s20  ;;  %s7760_s20 = sld [smem:[#allocation7 + $0x1]] }
  0x74   : > { %v557_v4 = vsel %vm492_vm1, %v554_v51, %v556_v63  ;;  %v7508_v6 = vsel %vm843_vm2, 1.0, %v9224_v5  ;;  %v593_v11 = vmul.f32 %v591_v7, %v7432_v2  ;;  %v592_v12 = vmul.f32 %v591_v7, %v7430_v0 }
  0x75   : > { %6497 = vmatprep.mubr.msk.f32.mxu1 %vm874_vm3, %v7508_v6  ;;  %v619_v13 = vmul.f32 %v617_v10, %v7432_v2  ;;  %v618_v14 = vmul.f32 %v617_v10, %v7430_v0  ;;  %v595_v16 = vmul.f32 %v591_v7, %v7440_v8  ;;  %v594_v17 = vmul.f32 %v591_v7, %v7442_v9 }
  0x76   : > { %v670_v18 = vmul.f32 %v668_v15, %v7432_v2  ;;  %v671_v19 = vmul.f32 %v668_v15, %v7442_v9  ;;  %v669_v20 = vmul.f32 %v668_v15, %v7430_v0  ;;  %v701_v21 = vstv %s6092_s23  ;;  %s7762_s23 = sld [smem:[#allocation7 + $0x2]] }
  0x77   : > { %435 = vrot.lane.b32.xlu1 %v430_v25, %s9222_s22  ;;  %433 = vrot.lane.b32.xlu0 %v428_v28, %s9222_s22  ;;  %v621_v22 = vmul.f32 %v617_v10, %v7440_v8  ;;  %v620_v23 = vmul.f32 %v617_v10, %v7442_v9  ;;  %v703_v24 = vmul.f32 %v701_v21, %v7432_v2  ;;  %v759_v40 = vstv %s6094_s9  ;;  %s6139_s9 = sld [smem:[#allocation7 + $0x4]] }
  0x78   : > { %v704_v25 = vmul.f32 %v701_v21, %v7442_v9  ;;  %v678_v26 = vrot.slane %v670_v18, 1  ;;  %v680_v27 = vrot.slane %v671_v19, 1  ;;  %v677_v28 = vrot.slane %v669_v20, 1 }
  0x79   : > { %v702_v29 = vmul.f32 %v701_v21, %v7430_v0  ;;  %v711_v30 = vrot.slane %v703_v24, 1  ;;  %v705_v36 = vmul.f32 %v701_v21, %v7440_v8  ;;  %v792_v42 = vstv %s6095_s14  ;;  %s6140_s14 = sld [smem:[#allocation7 + $0x5]] }
  0x7a   : > { %v713_v34 = vrot.slane %v704_v25, 1  ;;  %v761_v44 = vmul.f32 %v759_v40, %v7432_v2  ;;  %v762_v45 = vmul.f32 %v759_v40, %v7442_v9  ;;  %v794_v48 = vmul.f32 %v792_v42, %v7432_v2 }
  0x7b   : > { %468 = vrot.lane.b32.xlu1 %v463_v31, %s9220_s21  ;;  %466 = vrot.lane.b32.xlu0 %v461_v32, %s9220_s21  ;;  %v672_v31 = vmul.f32 %v668_v15, %v7440_v8  ;;  %v681_v32 = vsel %vm400_vm0, %v678_v26, %v680_v27  ;;  %v710_v35 = vrot.slane %v702_v29, 1  ;;  %v715_v41 = vrot.slane %v705_v36, 1 }
  0x7c   : > { %v714_v37 = vsel %vm400_vm0, %v711_v30, %v713_v34  ;;  %v769_v50 = vrot.slane %v761_v44, 2  ;;  %v771_v51 = vrot.slane %v762_v45, 2  ;;  %v793_v53 = vmul.f32 %v792_v42, %v7430_v0 }
  0x7d   : > { %v716_v47 = vsel %vm400_vm0, %v713_v34, %v715_v41  ;;  %v802_v54 = vrot.slane %v794_v48, 2  ;;  %v763_v55 = vmul.f32 %v759_v40, %v7440_v8  ;;  %v796_v7 = vmul.f32 %v792_v42, %v7440_v8 }
  0x7e   : > { %v801_v59 = vrot.slane %v793_v53, 2  ;;  %v333_v19 = vstv %s332_s15  ;;  %v391_v21 = vstv %s6081_s17  ;;  %s7764_s15 = sld [smem:[#allocation7 + $0x7]]  ;;  %s7766_s17 = sld [smem:[#allocation7 + $0x8]] }
  0x7f   : > { %439 = vrot.lane.b32.xlu1 %v431_v33, %s9222_s22  ;;  %437 = vrot.lane.b32.xlu0 %v432_v38, %s9222_s22  ;;  %v679_v33 = vsel %vm400_vm0, %v677_v28, %v678_v26  ;;  %v712_v38 = vsel %vm400_vm0, %v710_v35, %v711_v30  ;;  %v334_v24 = vmul.f32 %v333_v19, %v7430_v0  ;;  %v483_v35 = vstv %s6084_s18  ;;  %s7768_s18 = sld [smem:[#allocation7 + $0x3]] }
  0x80   : > { %v394_v25 = vmul.f32 %v391_v21, %v7442_v9  ;;  %v393_v26 = vmul.f32 %v391_v21, %v7432_v2  ;;  %v395_v45 = vmul.f32 %v391_v21, %v7440_v8 }
  0x83   : > { %472 = vrot.lane.b32.xlu1 %v464_v39, %s9220_s21  ;;  %470 = vrot.lane.b32.xlu0 %v465_v46, %s9220_s21  ;;  %v682_v39 = vrot.slane %v672_v31, 1  ;;  %v760_v46 = vmul.f32 %v759_v40, %v7430_v0 }
  0x85   : > { %v683_v43 = vsel %vm400_vm0, %v680_v27, %v682_v39  ;;  %v392_v27 = vmul.f32 %v391_v21, %v7430_v0 }
  0x87   : > { %527 = vrot.lane.b32.xlu1 %v522_v49, %s9222_s22  ;;  %525 = vrot.lane.b32.xlu0 %v520_v52, %s9222_s22  ;;  %v795_v49 = vmul.f32 %v792_v42, %v7442_v9  ;;  %v768_v52 = vrot.slane %v760_v46, 2  ;;  %v401_v34 = vrot.slane %v392_v27, 1  ;;  %v486_v42 = vmul.f32 %v483_v35, %v7442_v9 }
  0x88   : > { %v484_v46 = vmul.f32 %v483_v35, %v7430_v0  ;;  %v575_v27 = vstv %s574_s16  ;;  %s7770_s16 = sld [smem:[#allocation7 + $0x6]] }
  0x89   : > { %v496_v53 = vrot.slane %v486_v42, 2 }
  0x8b   : > { %560 = vrot.lane.b32.xlu1 %v555_v56, %s9220_s21  ;;  %558 = vrot.lane.b32.xlu0 %v553_v57, %s9220_s21  ;;  %v772_v56 = vsel %vm492_vm1, %v769_v50, %v771_v51  ;;  %v770_v57 = vsel %vm492_vm1, %v768_v52, %v769_v50 }
  0x8f   : > { %531 = vrot.lane.b32.xlu1 %v523_v58, %s9222_s22  ;;  %529 = vrot.lane.b32.xlu0 %v524_v62, %s9222_s22  ;;  %v804_v58 = vrot.slane %v795_v49, 2 }
  0x91   : > { %v805_v62 = vsel %vm492_vm1, %v802_v54, %v804_v58 }
  0x93   : > { %564 = vrot.lane.b32.xlu1 %v556_v63, %s9220_s21  ;;  %562 = vrot.lane.b32.xlu0 %v557_v4, %s9220_s21  ;;  %v803_v63 = vsel %vm492_vm1, %v801_v59, %v802_v54  ;;  %v773_v4 = vrot.slane %v763_v55, 2 }
  0x95   : > { %v774_v10 = vsel %vm492_vm1, %v771_v51, %v773_v4 }
  0x97   : > { %602 = vrot.lane.b32.xlu1 %v593_v11, %s9222_s22  ;;  %600 = vrot.lane.b32.xlu0 %v592_v12, %s9222_s22  ;;  %v806_v11 = vrot.slane %v796_v7, 2 }
  0x99   : > { %v807_v12 = vsel %vm492_vm1, %v804_v58, %v806_v11 }
  0x9b   : > { %628 = vrot.lane.b32.xlu1 %v619_v13, %s9220_s21  ;;  %626 = vrot.lane.b32.xlu0 %v618_v14, %s9220_s21 }
  0x9f   : > { %606 = vrot.lane.b32.xlu1 %v595_v16, %s9222_s22  ;;  %604 = vrot.lane.b32.xlu0 %v594_v17, %s9222_s22 }
  0xa3   : > { %632 = vrot.lane.b32.xlu1 %v621_v22, %s9220_s21  ;;  %630 = vrot.lane.b32.xlu0 %v620_v23, %s9220_s21  ;;  %v335_v22 = vmul.f32 %v333_v19, %v7432_v2 }
  0xa7   : > { %686 = vrot.lane.b32.xlu1 %v681_v32, %s9222_s22  ;;  %684 = vrot.lane.b32.xlu0 %v679_v33, %s9222_s22  ;;  %v404_v32 = vrot.slane %v394_v25, 1  ;;  %v402_v33 = vrot.slane %v393_v26, 1 }
  0xa9   : > { %v405_v40 = vsel %vm400_vm0, %v402_v33, %v404_v32  ;;  %v403_v44 = vsel %vm400_vm0, %v401_v34, %v402_v33 }
  0xab   : > { %719 = vrot.lane.b32.xlu1 %v714_v37, %s9220_s21  ;;  %717 = vrot.lane.b32.xlu0 %v712_v38, %s9220_s21 }
  0xaf   : > { %690 = vrot.lane.b32.xlu1 %v682_v39, %s9222_s22  ;;  %688 = vrot.lane.b32.xlu0 %v683_v43, %s9222_s22  ;;  %v337_v43 = vmul.f32 %v333_v19, %v7440_v8 }
  0xb3   : > { %723 = vrot.lane.b32.xlu1 %v715_v41, %s9220_s21  ;;  %721 = vrot.lane.b32.xlu0 %v716_v47, %s9220_s21  ;;  %v485_v41 = vmul.f32 %v483_v35, %v7432_v2  ;;  %v336_v47 = vmul.f32 %v333_v19, %v7442_v9 }
  0xb5   : > { %v494_v52 = vrot.slane %v485_v41, 2 }
  0xb7   : > { %777 = vrot.lane.b32.xlu1 %v772_v56, %s9222_s22  ;;  %775 = vrot.lane.b32.xlu0 %v770_v57, %s9222_s22  ;;  %v406_v56 = vrot.slane %v395_v45, 1  ;;  %v493_v57 = vrot.slane %v484_v46, 2 }
  0xbb   : > { %810 = vrot.lane.b32.xlu1 %v805_v62, %s9220_s21  ;;  %808 = vrot.lane.b32.xlu0 %v803_v63, %s9220_s21 }
  0xbf   : > { %781 = vrot.lane.b32.xlu1 %v773_v4, %s9222_s22  ;;  %779 = vrot.lane.b32.xlu0 %v774_v10, %s9222_s22 }
  0xc3   : > { %814 = vrot.lane.b32.xlu1 %v806_v11, %s9220_s21  ;;  %812 = vrot.lane.b32.xlu0 %v807_v12, %s9220_s21  ;;  %v497_v12 = vsel %vm492_vm1, %v494_v52, %v496_v53 }
  0xd9   : > { %v375_v13 = vpop.permute.xlu1 %374  ;;  %v349_v14 = vpop.permute.xlu0 %348 }
  0xda   : > { %v360_v31 = vadd.f32 %v349_v14, %v334_v24  ;;  %v495_v14 = vsel %vm492_vm1, %v493_v57, %v494_v52 }
  0xdc   : > { %v386_v39 = vadd.f32 %v375_v13, %v360_v31  ;;  %v407_v13 = vsel %vm400_vm0, %v404_v32, %v406_v56 }
  0xdd   : > { %v377_v15 = vpop.permute.xlu1 %376  ;;  %v351_v16 = vpop.permute.xlu0 %350 }
  0xde   : > { %v361_v29 = vadd.f32 %v351_v16, %v335_v22  ;;  %v412_v51 = vadd.f32 %v403_v44, %v386_v39 }
  0xe0   : > { %v387_v37 = vadd.f32 %v377_v15, %v361_v29  ;;  %v487_v15 = vmul.f32 %v483_v35, %v7440_v8 }
  0xe1   : > { %v355_v17 = vpop.permute.xlu1 %354  ;;  %v353_v18 = vpop.permute.xlu0 %352 }
  0xe2   : > { %v413_v49 = vadd.f32 %v405_v40, %v387_v37  ;;  %v363_v54 = vadd.f32 %v355_v17, %v337_v43  ;;  %v362_v58 = vadd.f32 %v353_v18, %v336_v47  ;;  %v498_v25 = vrot.slane %v487_v15, 2 }
  0xe3   : > { %v9200_v15 = vmov 1.0  }
  0xe4   : > { %v499_v35 = vsel %vm492_vm1, %v496_v53, %v498_v25 }
  0xe5   : > { %v381_v20 = vpop.permute.xlu1 %380  ;;  %v379_v23 = vpop.permute.xlu0 %378 }
  0xe6   : > { %v389_v63 = vadd.f32 %v381_v20, %v363_v54  ;;  %v388_v10 = vadd.f32 %v379_v23, %v362_v58 }
  0xe8   : > { %v415_v17 = vadd.f32 %v406_v56, %v389_v63  ;;  %v414_v21 = vadd.f32 %v407_v13, %v388_v10  ;;  %v847_v56 = vadd.s32 1, %v841_v3  ;;  %v7634_v10 = vadd.s32 24, %v7490_v60 }
  0xe9   : > { %v436_v28 = vpop.permute.xlu1 %435  ;;  %v434_v30 = vpop.permute.xlu0 %433  ;;  %v7644_v13 = vadd.s32 16, %v7490_v60 }
  0xea   : > { %v446_v55 = vadd.f32 %v436_v28, %v413_v49  ;;  %v445_v59 = vadd.f32 %v434_v30, %v412_v51  ;;  %vm849_vm8 = vcmp.eq.s32.totalorder %v7498_v1, %v847_v56  ;;  %v734_v56 = vstv %s6093_s8  ;;  %s7786_s8 = sld [smem:[#allocation7 + $0x19]] }
  0xed   : > { %v469_v36 = vpop.permute.xlu1 %468  ;;  %v467_v38 = vpop.permute.xlu0 %466 }
  0xee   : > { %v479_v4 = vadd.f32 %v469_v36, %v446_v55  ;;  %v478_v11 = vadd.f32 %v467_v38, %v445_v59  ;;  %v7593_v38 = vadd.s32 8, %v7490_v60 }
  0xf0   : > { %v505_v19 = vadd.f32 %v497_v12, %v479_v4  ;;  %v504_v22 = vadd.f32 %v495_v14, %v478_v11  ;;  %9278 = vst [vmem:[#allocation17_spill] sm:$0xff] %v7593_v38  ;;  %v6099_v4 = vadd.s32 4294967295, %v7498_v1  ;;  %v7260_v12 = vmov 1.0|1.0  }
  0xf1   : > { %v440_v48 = vpop.permute.xlu1 %439  ;;  %v438_v50 = vpop.permute.xlu0 %437  ;;  %v1583_v11 = vstv %s6140_s14  ;;  %s7838_s14 = sld [smem:[#allocation7 + $0x2c]] }
  0xf2   : > { %v448_v24 = vadd.f32 %v440_v48, %v415_v17  ;;  %v447_v26 = vadd.f32 %v438_v50, %v414_v21  ;;  %v6098_v48 = vadd.s32 4294967295, %v7593_v38 }
  0xf4   : > { %v842_v54 = vmul.u32 2, %v6098_v48 }
  0xf5   : > { %v473_v62 = vpop.permute.xlu1 %472  ;;  %v471_v7 = vpop.permute.xlu0 %470 }
  0xf6   : > { %v481_v29 = vadd.f32 %v473_v62, %v448_v24  ;;  %v480_v32 = vadd.f32 %v471_v7, %v447_v26  ;;  %vm844_vm7 = vcmp.eq.s32.totalorder %v7498_v1, %v842_v54  ;;  %v848_v3 = vadd.s32 1, %v842_v54 }
  0xf7   : > { %v7611_v61 = vsel %vm844_vm7, 1.0, %v9224_v5  ;;  %v7614_v62 = vsel %vm849_vm8, 1.0, %v9224_v5  ;;  %v856_v7 = vmul.u32 2, %v6099_v4 }
  0xf8   : > { %v507_v40 = vadd.f32 %v498_v25, %v481_v29  ;;  %v506_v43 = vadd.f32 %v499_v35, %v480_v32  ;;  %vm850_vm9 = vcmp.eq.s32.totalorder %v7498_v1, %v848_v3 }
  0xf9   : > { %v528_v16 = vpop.permute.xlu1 %527  ;;  %v526_v18 = vpop.permute.xlu0 %525  ;;  %v7626_v63 = vsel %vm850_vm9, 1.0, %v9224_v5  ;;  %vm857_vm10 = vcmp.eq.s32.totalorder %v7490_v60, %v856_v7  ;;  %vm858_vm11 = vcmp.eq.s32.totalorder %v7593_v38, %v856_v7  ;;  %vm860_vm13 = vcmp.eq.s32.totalorder %v7634_v10, %v856_v7 }
  0xfa   : > { %v538_v20 = vadd.f32 %v528_v16, %v505_v19  ;;  %v537_v23 = vadd.f32 %v526_v18, %v504_v22  ;;  %vm7636_vm12 = vmpackc.low %vm858_vm11, %vm857_vm10  ;;  %v864_v14 = vsel %vm860_vm13, 1.0, %v9224_v5  ;;  %vm859_vm14 = vcmp.eq.s32.totalorder %v7644_v13, %v856_v7 }
  0xfb   : > { %v7653_v16 = vpack.c.bf16 %v864_v14, %v9200_v15  ;;  %vm7656_vm15 = vmpackc.low %vm881_vm4, %vm859_vm14  ;;  %v7663_v19 = vadd.s32 1, %v856_v7  ;;  %v736_v7 = vmul.f32 %v734_v56, %v7432_v2 }
  0xfd   : > { %v561_v28 = vpop.permute.xlu1 %560  ;;  %v559_v31 = vpop.permute.xlu0 %558  ;;  %vm866_vm2 = vcmp.eq.s32.totalorder %v7490_v60, %v7663_v19  ;;  %vm867_vm7 = vcmp.eq.s32.totalorder %v7593_v38, %v7663_v19  ;;  %vm869_vm9 = vcmp.eq.s32.totalorder %v7634_v10, %v7663_v19  ;;  %vm868_vm10 = vcmp.eq.s32.totalorder %v7644_v13, %v7663_v19 }
  0xfe   : > { %v571_v30 = vadd.f32 %v561_v28, %v538_v20  ;;  %v570_v33 = vadd.f32 %v559_v31, %v537_v23  ;;  %vm7672_vm8 = vmpackc.low %vm867_vm7, %vm866_vm2  ;;  %v643_v31 = vstv %s6090_s29  ;;  %s7774_s29 = sld [smem:[#allocation7 + $0x17]] }
  0xff   : > { %v645_v35 = vmul.f32 %v643_v31, %v7432_v2  ;;  %vm7713_vm11 = vmpackc.low %vm881_vm4, %vm868_vm10 }
 0x100   : > { %v577_v34 = vadd.f32 %v575_v27, %v571_v30  ;;  %v576_v36 = vadd.f32 %v575_v27, %v570_v33  ;;  %v585_v30 = vstv %s6087_s19  ;;  %s7772_s19 = sld [smem:[#allocation7 + $0x16]]  ;;  %vm8655_vm4 = vmpackc.low %vm492_vm1, %vm7259_vm5  ;;  %vm2576_vm5 = vcmask 113664  }
 0x101   : > { %v532_v37 = vpop.permute.xlu1 %531  ;;  %v530_v41 = vpop.permute.xlu0 %529 }
 0x102   : > { %v581_v39 = vmax.f32 %v577_v34, 0.0  ;;  %v580_v42 = vmax.f32 %v576_v36, 0.0  ;;  %v540_v44 = vadd.f32 %v532_v37, %v507_v40  ;;  %v539_v46 = vadd.f32 %v530_v41, %v506_v43 }
 0x103   : > { %v587_v34 = vmul.f32 %v585_v30, %v7432_v2  ;;  %v646_v36 = vmul.f32 %v643_v31, %v7442_v9  ;;  %v586_v37 = vmul.f32 %v585_v30, %v7430_v0  ;;  %v738_v2 = vmul.f32 %v734_v56, %v7440_v8 }
 0x104   : > { %v6829_v45 = vpack.c.bf16 %v581_v39, %v580_v42  ;;  %v644_v39 = vmul.f32 %v643_v31, %v7430_v0  ;;  %v653_v42 = vrot.slane %v645_v35, 1 }
 0x105   : > { %v565_v47 = vpop.permute.xlu1 %564  ;;  %v563_v50 = vpop.permute.xlu0 %562  ;;  %v655_v43 = vrot.slane %v646_v36, 1 }
 0x106   : > { %v573_v49 = vadd.f32 %v565_v47, %v540_v44  ;;  %v572_v51 = vadd.f32 %v563_v50, %v539_v46  ;;  %6830 = vmatprep.subr.bf16.mxu1 %v6829_v45  ;;  %v589_v46 = vmul.f32 %v585_v30, %v7440_v8  ;;  %v588_v47 = vmul.f32 %v585_v30, %v7442_v9 }
 0x107   : > { %6832 = vmatpush3.bf16.msra.mxu1 %v6829_v45  ;;  %v652_v48 = vrot.slane %v644_v39, 1  ;;  %v737_v30 = vmul.f32 %v734_v56, %v7442_v9 }
 0x108   : > { %v579_v52 = vadd.f32 %v575_v27, %v573_v49  ;;  %v578_v53 = vadd.f32 %v575_v27, %v572_v51  ;;  %v647_v49 = vmul.f32 %v643_v31, %v7440_v8  ;;  %v656_v51 = vsel %vm400_vm0, %v653_v42, %v655_v43 }
 0x109   : > { %v603_v21 = vpop.permute.xlu1 %602  ;;  %v601_v22 = vpop.permute.xlu0 %600  ;;  %v744_v31 = vrot.slane %v736_v7, 2  ;;  %v746_v39 = vrot.slane %v737_v30, 2 }
 0x10a   : > { %v583_v55 = vmax.f32 %v579_v52, 0.0  ;;  %v582_v57 = vmax.f32 %v578_v53, 0.0  ;;  %v613_v41 = vadd.f32 %v603_v21, %v587_v34 }
 0x10b   : > { %v747_v9 = vsel %vm492_vm1, %v744_v31, %v746_v39 }
 0x10c   : > { %v6833_v59 = vpack.c.bf16 %v583_v55, %v582_v57  ;;  %v654_v57 = vsel %vm400_vm0, %v652_v48, %v653_v42 }
 0x10d   : > { %v629_v24 = vpop.permute.xlu1 %628  ;;  %v627_v20 = vpop.permute.xlu0 %626 }
 0x10e   : > { %6835 = vmatprep.subr.msk.bf16.mxu1 %vm7600_vm6, %v6833_v59  ;;  %v639_v50 = vadd.f32 %v629_v24, %v613_v41 }
 0x10f   : > { %6838 = vmatpush3.bf16.msk.msra.mxu1 %vm7600_vm6, %v6833_v59 }
 0x110   : > { %6840 = vmatprep.subr.bf16.mxu1 %v6829_v45  ;;  %v664_v4 = vadd.f32 %v656_v51, %v639_v50 }
 0x111   : > { %v607_v25 = vpop.permute.xlu1 %606  ;;  %v605_v26 = vpop.permute.xlu0 %604 }
 0x112   : > { %6498 = vmatmul.mubr.msk.f32.vlgmr.msra.gmra.mrb[0].mxu1 %vm874_vm3, %v7611_v61  ;;  %v615_v53 = vadd.f32 %v607_v25, %v589_v46  ;;  %v614_v54 = vadd.f32 %v605_v26, %v588_v47 }
 0x113   : > { %6842 = vmatpush3.bf16.msra.mxu1 %v6829_v45  ;;  %6508 = vmatprep.mubr.msk.f32.mxu1 %vm874_vm3, %v7614_v62  ;;  %v612_v45 = vadd.f32 %v601_v22, %v586_v37 }
 0x114   : > { %6845 = vmatprep.subr.msk.bf16.mxu1 %vm7600_vm6, %v6833_v59 }
 0x115   : > { %v633_v23 = vpop.permute.xlu1 %632  ;;  %v631_v27 = vpop.permute.xlu0 %630  ;;  %v638_v52 = vadd.f32 %v627_v20, %v612_v45  ;;  %v735_v20 = vmul.f32 %v734_v56, %v7430_v0  ;;  %v825_v56 = vstv %s6096_s13  ;;  %s7788_s13 = sld [smem:[#allocation7 + $0x1a]] }
 0x116   : > { %v641_v14 = vadd.f32 %v633_v23, %v615_v53  ;;  %v640_v21 = vadd.f32 %v631_v27, %v614_v54 }
 0x117   : > { %6848 = vmatpush3.bf16.msk.msra.mxu1 %vm7600_vm6, %v6833_v59  ;;  %v657_v59 = vrot.slane %v647_v49, 1  ;;  %v663_v22 = vadd.f32 %v654_v57, %v638_v52  ;;  %v743_v41 = vrot.slane %v735_v20, 2 }
 0x118   : > { %6850 = vmatprep.subr.msk.bf16.mxu1 %vm7636_vm12, %v7260_v12 }
 0x119   : > { %v687_v28 = vpop.permute.xlu1 %686  ;;  %v685_v29 = vpop.permute.xlu0 %684  ;;  %v658_v24 = vsel %vm400_vm0, %v655_v43, %v657_v59  ;;  %v666_v36 = vadd.f32 %v657_v59, %v641_v14  ;;  %v745_v0 = vsel %vm492_vm1, %v743_v41, %v744_v31 }
 0x11a   : > { %6509 = vmatmul.mubr.msk.f32.vlgmr.msra.gmra.mrb[2].mxu1 %vm874_vm3, %v7626_v63  ;;  %v697_v26 = vadd.f32 %v687_v28, %v664_v4  ;;  %v696_v35 = vadd.f32 %v685_v29, %v663_v22  ;;  %v665_v37 = vadd.f32 %v658_v24, %v640_v21  ;;  %v748_v28 = vrot.slane %v738_v2, 2 }
 0x11b   : > { %6852 = vmatpush3.bf16.msk.msra.mxu1 %vm7636_vm12, %v7260_v12  ;;  %v873_v21 = vsel %vm869_vm9, 1.0, %v9224_v5  ;;  %v1539_v2 = vstv %s7762_s23  ;;  %s7802_s23 = sld [smem:[#allocation7 + $0x29]]  ;;  %vm5954_vm9 = vcmask 73728  }
 0x11c   : > { %6855 = vmatprep.subr.msk.bf16.mxu1 %vm7656_vm15, %v7653_v16  ;;  %v749_v50 = vsel %vm492_vm1, %v746_v39, %v748_v28  ;;  %v7706_v31 = vpack.c.bf16 %v873_v21, %v9200_v15 }
 0x11d   : > { %v720_v32 = vpop.permute.xlu1 %719  ;;  %v718_v33 = vpop.permute.xlu0 %717 }
 0x11e   : > { %v730_v23 = vadd.f32 %v720_v32, %v697_v26  ;;  %v729_v27 = vadd.f32 %v718_v33, %v696_v35 }
 0x11f   : > { %6858 = vmatpush3.bf16.msk.msra.mxu1 %vm7656_vm15, %v7653_v16 }
 0x120   : > { %6860 = vmatprep.subr.msk.bf16.mxu1 %vm7672_vm8, %v7260_v12  ;;  %v755_v47 = vadd.f32 %v747_v9, %v730_v23  ;;  %v754_v49 = vadd.f32 %v745_v0, %v729_v27  ;;  %v1613_v23 = vstv %s7764_s15  ;;  %v1600_v9 = vstv %s7770_s16  ;;  %s7849_s15 = sld [smem:[#allocation7 + $0x3a]]  ;;  %s7889_s16 = sld [smem:[#allocation7 + $0x3e]] }
 0x121   : > { %v691_v40 = vpop.permute.xlu1 %690  ;;  %v689_v44 = vpop.permute.xlu0 %688 }
 0x122   : > { %v699_v42 = vadd.f32 %v691_v40, %v666_v36  ;;  %v698_v45 = vadd.f32 %v689_v44, %v665_v37 }
 0x125   : > { %v724_v55 = vpop.permute.xlu1 %723  ;;  %v722_v3 = vpop.permute.xlu0 %721 }
 0x126   : > { %v732_v48 = vadd.f32 %v724_v55, %v699_v42  ;;  %v731_v29 = vadd.f32 %v722_v3, %v698_v45  ;;  %v1630_v42 = vstv %s7766_s17  ;;  %v1553_v45 = vstv %s7768_s18  ;;  %s7854_s17 = sld [smem:[#allocation7 + $0x3b]]  ;;  %s7882_s18 = sld [smem:[#allocation7 + $0x3d]] }
 0x128   : > { %v757_v44 = vadd.f32 %v748_v28, %v732_v48  ;;  %v756_v52 = vadd.f32 %v749_v50, %v731_v29  ;;  %v1826_v28 = vstv %s7772_s19  ;;  %s7898_s19 = sld [smem:[#allocation7 + $0x15]] }
 0x129   : > { %v778_v25 = vpop.permute.xlu1 %777  ;;  %v776_v34 = vpop.permute.xlu0 %775 }
 0x12a   : > { %v788_v8 = vadd.f32 %v778_v25, %v755_v47  ;;  %v787_v40 = vadd.f32 %v776_v34, %v754_v49  ;;  %v1843_v49 = vstv %s7774_s29  ;;  %s7912_s29 = sld [smem:[#allocation7 + $0x18]] }
 0x12d   : > { %v811_v43 = vpop.permute.xlu1 %810  ;;  %v809_v46 = vpop.permute.xlu0 %808 }
 0x12e   : > { %v821_v54 = vadd.f32 %v811_v43, %v788_v8  ;;  %v820_v57 = vadd.f32 %v809_v46, %v787_v40 }
 0x130   : > { %v827_v3 = vadd.f32 %v825_v56, %v821_v54  ;;  %v826_v22 = vadd.f32 %v825_v56, %v820_v57 }
 0x131   : > { %v782_v51 = vpop.permute.xlu1 %781  ;;  %v780_v32 = vpop.permute.xlu0 %779 }
 0x132   : > { %v790_v59 = vadd.f32 %v782_v51, %v757_v44  ;;  %v789_v4 = vadd.f32 %v780_v32, %v756_v52  ;;  %v831_v10 = vmax.f32 %v827_v3, 0.0  ;;  %v830_v35 = vmax.f32 %v826_v22, 0.0 }
 0x134   : > { %v6869_v13 = vpack.c.bf16 %v831_v10, %v830_v35  ;;  %v1890_v10 = vstv %s7788_s13  ;;  %s7942_s13 = sld [smem:[#allocation7 + $0x2a]] }
 0x135   : > { %v815_v7 = vpop.permute.xlu1 %814  ;;  %v813_v55 = vpop.permute.xlu0 %812 }
 0x136   : > { %v823_v30 = vadd.f32 %v815_v7, %v790_v59  ;;  %v822_v24 = vadd.f32 %v813_v55, %v789_v4 }
 0x138   : > { %v829_v36 = vadd.f32 %v825_v56, %v823_v30  ;;  %v828_v37 = vadd.f32 %v825_v56, %v822_v24 }
 0x13a   : > { %v833_v19 = vmax.f32 %v829_v36, 0.0  ;;  %v832_v39 = vmax.f32 %v828_v37, 0.0 }
 0x13c   : > { %v6873_v41 = vpack.c.bf16 %v833_v19, %v832_v39 }
 0x1e5   : > { %v6499_v33 = vpop.f32.mrb[0].mxu1 }
 0x1e6   : > { %v951_v53 = vpop.f32.mrb[1].mxu1 }
 0x1ed   : > { %v6510_v14 = vpop.f32.mrb[2].mxu1 }
 0x1ee   : > { %v1042_v20 = vmax.f32 %v6499_v33, %v6510_v14  ;;  %v1032_v25 = vpop.f32.mrb[3].mxu1 }
 0x1ef   : > { %v1041_v26 = vmax.f32 %v951_v53, %v1032_v25 }
 0x1f1   : > { %6519 = vmatprep.mubr.msk.f32.mxu1 %vm874_vm3, %v1041_v26 }
 0x1f2   : > { %6520 = vmatmul.mubr.msk.f32.vlgmr.msra.gmra.mrb[4].mxu1 %vm874_vm3, %v1042_v20 }
 0x1f3   : > { %6862 = vmatpush3.bf16.msk.msra.mxu1 %vm7672_vm8, %v7260_v12  ;;  %6530 = vmatprep.mubr.msk.f32.mxu1 %vm874_vm3, %v1041_v26  ;;  %v1873_v26 = vstv %s7786_s8  ;;  %s7929_s8 = sld [smem:[#allocation7 + $0x27]] }
 0x1f4   : > { %6865 = vmatprep.subr.msk.bf16.mxu1 %vm7713_vm11, %v7706_v31 }
 0x1f7   : > { %6868 = vmatpush3.bf16.msk.msra.mxu1 %vm7713_vm11, %v7706_v31 }
 0x1f8   : > { %6870 = vmatprep.subr.bf16.mxu1 %v6869_v13 }
 0x1fa   : > { %6531 = vmatmul.mubr.msk.f32.vlgmr.msra.gmra.mrb[6].mxu1 %vm874_vm3, %v1042_v20 }
 0x1fb   : > { %6872 = vmatpush3.bf16.msra.mxu1 %v6869_v13  ;;  %6541 = vmatprep.mubr.msk.f32.mxu1 %vm874_vm3, %v7508_v6 }
 0x1fc   : > { %6875 = vmatprep.subr.msk.bf16.mxu1 %vm7600_vm6, %v6873_v41 }
 0x1ff   : > { %6878 = vmatpush3.bf16.msk.msra.mxu1 %vm7600_vm6, %v6873_v41 }
 0x200   : > { %6880 = vmatprep.subr.bf16.mxu1 %v6869_v13 }
 0x202   : > { %6542 = vmatmul.mubr.msk.f32.vlgmr.msra.gmra.mrb[8].mxu1 %vm874_vm3, %v7611_v61 }
 0x203   : > { %6882 = vmatpush3.bf16.msra.mxu1 %v6869_v13  ;;  %6552 = vmatprep.mubr.msk.f32.mxu1 %vm874_vm3, %v7614_v62  ;;  %v1525_v62 = vstv %s7760_s20  ;;  %s7796_s20 = sld [smem:[#allocation7 + $0x28]] }
 0x204   : > { %6885 = vmatprep.subr.msk.bf16.mxu1 %vm7600_vm6, %v6873_v41 }
 0x207   : > { %6888 = vmatpush3.bf16.msk.msra.mxu1 %vm7600_vm6, %v6873_v41 }
 0x208   : > { %6890 = vmatprep.subr.msk.bf16.mxu1 %vm7636_vm12, %v7260_v12 }
 0x209   : > { %v2086_v13 = vstv %s7796_s20  ;;  %s7984_s20 = sld [smem:[#allocation7 + $0x39]] }
 0x20a   : > { %6553 = vmatmul.mubr.msk.f32.vlgmr.msra.gmra.mrb[10].mxu1 %vm874_vm3, %v7626_v63  ;;  %v1566_v63 = vstv %s6139_s9  ;;  %s7823_s9 = sld [smem:[#allocation7 + $0x2b]] }
 0x20b   : > { %6892 = vmatpush3.bf16.msk.msra.mxu1 %vm7636_vm12, %v7260_v12 }
 0x20c   : > { %6895 = vmatprep.subr.msk.bf16.mxu1 %vm7656_vm15, %v7653_v16 }
 0x20f   : > { %6898 = vmatpush3.bf16.msk.msra.mxu1 %vm7656_vm15, %v7653_v16 }
 0x210   : > { %6900 = vmatprep.subr.msk.bf16.mxu1 %vm7672_vm8, %v7260_v12 }
 0x2c5   : > { %v6521_v6 = vpop.f32.mrb[4].mxu1 }
 0x2c6   : > { %v1118_v58 = vpop.f32.mrb[5].mxu1 }
 0x2cd   : > { %v6532_v61 = vpop.f32.mrb[6].mxu1 }
 0x2ce   : > { %v7777_v16 = vmax.f32 %v6521_v6, %v6532_v61  ;;  %v1196_v17 = vpop.f32.mrb[7].mxu1  ;;  %v2103_v6 = vstv %s7802_s23  ;;  %s8010_s23 = sld [smem:[#allocation7 + $0x3c]] }
 0x2cf   : > { %v7781_v27 = vmax.f32 %v1118_v58, %v1196_v17 }
 0x2d0   : > { %v1527_v43 = vmul.f32 %v1525_v62, %v7777_v16  ;;  %v1568_v0 = vmul.f32 %v1566_v63, %v7777_v16  ;;  %v7793_v46 = vmul.f32 %v1583_v11, %v7777_v16  ;;  %v7807_v8 = vmul.f32 %v1613_v23, %v7777_v16 }
 0x2d1   : > { %v1526_v47 = vmul.f32 %v1525_v62, %v7781_v27  ;;  %v1567_v48 = vmul.f32 %v1566_v63, %v7781_v27  ;;  %v1584_v29 = vmul.f32 %v1583_v11, %v7781_v27  ;;  %v1614_v32 = vmul.f32 %v1613_v23, %v7781_v27 }
 0x2d2   : > { %1532 = vrot.lane.b32.xlu1 %v1527_v43, %s9222_s22  ;;  %v1572_v50 = vrot.slane %v1568_v0, 1  ;;  %v1589_v51 = vrot.slane %v7793_v46, 1  ;;  %v7812_v44 = vmul.f32 %v1630_v42, %v7777_v16  ;;  %v1631_v52 = vmul.f32 %v1630_v42, %v7781_v27 }
 0x2d3   : > { %1530 = vrot.lane.b32.xlu0 %v1526_v47, %s9222_s22  ;;  %v1571_v33 = vrot.slane %v1567_v48, 1  ;;  %v1588_v40 = vrot.slane %v1584_v29, 1  ;;  %v1541_v53 = vmul.f32 %v1539_v2, %v7777_v16  ;;  %v1540_v54 = vmul.f32 %v1539_v2, %v7781_v27 }
 0x2d4   : > { %v1619_v56 = vrot.slane %v7807_v8, 2  ;;  %v1618_v57 = vrot.slane %v1614_v32, 2  ;;  %v1636_v55 = vrot.slane %v7812_v44, 2  ;;  %v1635_v3 = vrot.slane %v1631_v52, 2 }
 0x2d5   : > { %v6543_v59 = vpop.f32.mrb[8].mxu1  ;;  %v1573_v4 = vsel %vm400_vm0, %v1571_v33, %v1572_v50  ;;  %v1590_v7 = vsel %vm400_vm0, %v1588_v40, %v1589_v51  ;;  %v7832_v22 = vmul.f32 %v1553_v45, %v7777_v16  ;;  %v1554_v30 = vmul.f32 %v1553_v45, %v7781_v27 }
 0x2d6   : > { %1546 = vrot.lane.b32.xlu1 %v1541_v53, %s9220_s21  ;;  %v1276_v14 = vpop.f32.mrb[9].mxu1  ;;  %v7829_v21 = vsel %vm492_vm1, %v1618_v57, %v1619_v56  ;;  %v7836_v24 = vmul.f32 %v1600_v9, %v7777_v16  ;;  %v7844_v20 = vsel %vm492_vm1, %v1635_v3, %v1636_v55  ;;  %v1601_v25 = vmul.f32 %v1600_v9, %v7781_v27 }
 0x2d7   : > { %1544 = vrot.lane.b32.xlu0 %v1540_v54, %s9220_s21  ;;  %v1559_v35 = vrot.slane %v7832_v22, 1  ;;  %v1558_v36 = vrot.slane %v1554_v30, 1  ;;  %v7857_v39 = vmul.f32 %v1826_v28, %v7777_v16  ;;  %v1827_v41 = vmul.f32 %v1826_v28, %v7781_v27 }
 0x2d8   : > { %v9226_v37 = vrot.slane %v7836_v24, 2  ;;  %v1605_v19 = vrot.slane %v1601_v25, 2  ;;  %v7868_v61 = vmul.f32 %v1843_v49, %v7777_v16  ;;  %v1844_v62 = vmul.f32 %v1843_v49, %v7781_v27 }
 0x2d9   : > { %v7865_v58 = vsel %vm400_vm0, %v1558_v36, %v1559_v35  ;;  %v7872_v63 = vmul.f32 %v1873_v26, %v7777_v16  ;;  %v9219_v17 = vrot.slane %v7857_v39, 1  ;;  %v1831_v2 = vrot.slane %v1827_v41, 1 }
 0x2da   : > { %1576 = vrot.lane.b32.xlu1 %v1572_v50, %s9222_s22  ;;  %v7878_v11 = vsel %vm492_vm1, %v1605_v19, %v9226_v37  ;;  %v1874_v23 = vmul.f32 %v1873_v26, %v7781_v27  ;;  %v9217_v42 = vrot.slane %v7868_v61, 1  ;;  %v1848_v45 = vrot.slane %v1844_v62, 1 }
 0x2db   : > { %1574 = vrot.lane.b32.xlu0 %v1573_v4, %s9222_s22  ;;  %v9215_v9 = vrot.slane %v7872_v63, 2  ;;  %v7887_v43 = vmul.f32 %v1890_v10, %v7777_v16  ;;  %v7894_v28 = vsel %vm400_vm0, %v1831_v2, %v9219_v17  ;;  %v1891_v48 = vmul.f32 %v1890_v10, %v7781_v27 }
 0x2dc   : > { %v1878_v47 = vrot.slane %v1874_v23, 2  ;;  %v2133_v29 = vstv %s7823_s9  ;;  %v7908_v32 = vsel %vm400_vm0, %v1848_v45, %v9217_v42  ;;  %v2150_v40 = vstv %s7838_s14  ;;  %s1520_s9 = sld [smem:[#allocation7]]  ;;  %s8114_s14 = sld [smem:[#allocation7 + $0x13]] }
 0x2dd   : > { %v6554_v0 = vpop.f32.mrb[10].mxu1  ;;  %v9214_v33 = vrot.slane %v7887_v43, 2  ;;  %v1895_v46 = vrot.slane %v1891_v48, 2  ;;  %v7922_v54 = vmul.f32 %v2086_v13, %v7777_v16  ;;  %v2087_v57 = vmul.f32 %v2086_v13, %v7781_v27 }
 0x2de   : > { %v7900_v49 = vmax.f32 %v6543_v59, %v6554_v0  ;;  %1593 = vrot.lane.b32.xlu1 %v1589_v51, %s9220_s21  ;;  %v1351_v50 = vpop.f32.mrb[11].mxu1  ;;  %v7918_v53 = vsel %vm492_vm1, %v1878_v47, %v9215_v9  ;;  %v2346_v51 = vstv %s7849_s15  ;;  %v7926_v59 = vmul.f32 %v2103_v6, %v7777_v16  ;;  %s8116_s15 = sld [smem:[#allocation7 + $0xa]] }
 0x2df   : > { %v1360_v52 = vmax.f32 %v1276_v14, %v1351_v50  ;;  %1591 = vrot.lane.b32.xlu0 %v1590_v7, %s9220_s21  ;;  %v2363_v4 = vstv %s7854_s17  ;;  %v7935_v7 = vsel %vm492_vm1, %v1895_v46, %v9214_v33  ;;  %v2104_v3 = vmul.f32 %v2103_v6, %v7781_v27  ;;  %s8118_s17 = sld [smem:[#allocation7 + $0xb]] }
 0x2e0   : > { %v7939_v14 = vmul.f32 %v2133_v29, %v7777_v16  ;;  %v2134_v30 = vmul.f32 %v2133_v29, %v7781_v27  ;;  %v9213_v25 = vrot.slane %v7922_v54, 1  ;;  %v2091_v26 = vrot.slane %v2087_v57, 1 }
 0x2e1   : > { %6563 = vmatprep.mubr.msk.f32.mxu1 %vm874_vm3, %v1360_v52  ;;  %v9212_v10 = vrot.slane %v7926_v59, 1  ;;  %v7952_v36 = vmul.f32 %v2150_v40, %v7777_v16  ;;  %v2108_v8 = vrot.slane %v2104_v3, 1  ;;  %v2151_v19 = vmul.f32 %v2150_v40, %v7781_v27 }
 0x2e2   : > { %1623 = vrot.lane.b32.xlu1 %v1619_v56, %s9222_s22  ;;  %6564 = vmatmul.mubr.msk.f32.vlgmr.msra.gmra.mrb[12].mxu1 %vm874_vm3, %v7900_v49  ;;  %v9211_v56 = vrot.slane %v7939_v14, 2  ;;  %v2138_v13 = vrot.slane %v2134_v30, 2  ;;  %v2393_v41 = vstv %s7882_s18  ;;  %v2410_v6 = vstv %s7889_s16  ;;  %s8120_s18 = sld [smem:[#allocation7 + $0xd]]  ;;  %s8122_s16 = sld [smem:[#allocation7 + $0xe]] }
 0x2e3   : > { %6902 = vmatpush3.bf16.msk.msra.mxu1 %vm7672_vm8, %v7260_v12  ;;  %6574 = vmatprep.mubr.msk.f32.mxu1 %vm874_vm3, %v1360_v52  ;;  %v7968_v12 = vsel %vm400_vm0, %v2091_v26, %v9213_v25  ;;  %v9208_v18 = vrot.slane %v7952_v36, 2  ;;  %v7976_v62 = vsel %vm400_vm0, %v2108_v8, %v9212_v10  ;;  %v2155_v2 = vrot.slane %v2151_v19, 2 }
 0x2e4   : > { %1621 = vrot.lane.b32.xlu0 %v7829_v21, %s9222_s22  ;;  %6905 = vmatprep.subr.msk.bf16.mxu1 %vm7713_vm11, %v7706_v31  ;;  %v7981_v21 = vsel %vm492_vm1, %v2138_v13, %v9211_v56  ;;  %v1813_v23 = vstv %s7898_s19  ;;  %v7990_v45 = vmul.f32 %v2346_v51, %v7777_v16  ;;  %v2347_v0 = vmul.f32 %v2346_v51, %v7781_v27  ;;  %s8124_s19 = sld [smem:[#allocation7 + $0x10]]  ;;  %s8142_s22 = sld [smem:[#allocation7 + $0x34]] }
 0x2e5   : > { %v7994_v47 = vmul.f32 %v2363_v4, %v7777_v16  ;;  %v1860_v48 = vstv %s7912_s29  ;;  %v8003_v44 = vsel %vm492_vm1, %v2155_v2, %v9208_v18  ;;  %v8007_v29 = vmul.f32 %v2393_v41, %v7777_v16  ;;  %s8126_s29 = sld [smem:[#allocation7 + $0x11]] }
 0x2e6   : > { %1640 = vrot.lane.b32.xlu1 %v1636_v55, %s9220_s21  ;;  %v2364_v55 = vmul.f32 %v2363_v4, %v7781_v27  ;;  %v2394_v50 = vmul.f32 %v2393_v41, %v7781_v27  ;;  %v9206_v34 = vrot.slane %v7990_v45, 1  ;;  %v2073_v52 = vstv %s7929_s8  ;;  %s8128_s8 = sld [smem:[#allocation7 + $0x1f]] }
 0x2e7   : > { %9289 = vst [vmem:[#allocation18_spill] sm:$0xff] %v7994_v47  ;;  %6908 = vmatpush3.bf16.msk.msra.mxu1 %vm7713_vm11, %v7706_v31  ;;  %9290 = vst [vmem:[#allocation19_spill] sm:$0xff] %v8007_v29  ;;  %v2351_v31 = vrot.slane %v2347_v0, 1  ;;  %v9204_v40 = vrot.slane %v7994_v47, 1  ;;  %v9202_v51 = vrot.slane %v8007_v29, 2  ;;  %v2120_v4 = vstv %s7942_s13  ;;  %s8130_s13 = sld [smem:[#allocation7 + $0x20]] }
 0x2e8   : > { %1638 = vrot.lane.b32.xlu0 %v7844_v20, %s9220_s21  ;;  %v2368_v46 = vrot.slane %v2364_v55, 1  ;;  %v2398_v57 = vrot.slane %v2394_v50, 2  ;;  %v8027_v20 = vmul.f32 %v2410_v6, %v7777_v16  ;;  %v2411_v30 = vmul.f32 %v2410_v6, %v7781_v27  ;;  %s8140_s21 = sld [smem:[#allocation7 + $0x32]] }
 0x2e9   : > { %v8024_v3 = vsel %vm400_vm0, %v2351_v31, %v9206_v34  ;;  %v8031_v26 = vmul.f32 %v1813_v23, %v7777_v16  ;;  %v1814_v13 = vmul.f32 %v1813_v23, %v7781_v27  ;;  %v8045_v19 = vmul.f32 %v1860_v48, %v7777_v16 }
 0x2ea   : > { %6575 = vmatmul.mubr.msk.f32.vlgmr.msra.gmra.mrb[14].mxu1 %vm874_vm3, %v7900_v49  ;;  %9291 = vst [vmem:[#allocation20_spill] sm:$0xff] %v8027_v20  ;;  %v8036_v8 = vsel %vm400_vm0, %v2368_v46, %v9204_v40  ;;  %v8041_v49 = vsel %vm492_vm1, %v2398_v57, %v9202_v51  ;;  %v9203_v41 = vrot.slane %v8027_v20, 2  ;;  %v2415_v6 = vrot.slane %v2411_v30, 2 }
 0x2eb   : > { %9292 = vst [vmem:[#allocation21_spill] sm:$0xff] %v8031_v26  ;;  %9293 = vst [vmem:[#allocation22_spill] sm:$0xff] %v8036_v8  ;;  %v9205_v2 = vrot.slane %v8031_v26, 1  ;;  %v1861_v0 = vmul.f32 %v1860_v48, %v7781_v27  ;;  %v1818_v55 = vrot.slane %v1814_v13, 1  ;;  %v9207_v50 = vrot.slane %v8045_v19, 2 }
 0x2ec   : > { %9294 = vst [vmem:[#allocation23_spill] sm:$0xff] %v8041_v49  ;;  %9295 = vst [vmem:[#allocation24_spill] sm:$0xff] %v8045_v19  ;;  %v2333_v31 = vstv %s7984_s20  ;;  %v8055_v46 = vsel %vm492_vm1, %v2415_v6, %v9203_v41  ;;  %v8058_v57 = vmul.f32 %v2073_v52, %v7777_v16  ;;  %v2074_v15 = vmul.f32 %v2073_v52, %v7781_v27  ;;  %s8132_s20 = sld [smem:[#allocation7 + $0x22]] }
 0x2ed   : > { %9296 = vst [vmem:[#allocation25_spill] sm:$0xff] %v8055_v46  ;;  %v1865_v23 = vrot.slane %v1861_v0, 2  ;;  %v8064_v30 = vsel %vm400_vm0, %v1818_v55, %v9205_v2  ;;  %v8067_v48 = vmul.f32 %v2120_v4, %v7777_v16  ;;  %v2121_v13 = vmul.f32 %v2120_v4, %v7781_v27 }
 0x2ee   : > { %9297 = vst [vmem:[#allocation26_spill] sm:$0xff] %v8058_v57  ;;  %9298 = vst [vmem:[#allocation27_spill] sm:$0xff] %v8064_v30  ;;  %v2380_v51 = vstv %s8010_s23  ;;  %v9209_v0 = vrot.slane %v8058_v57, 1  ;;  %v2078_v41 = vrot.slane %v2074_v15, 1  ;;  %v8079_v55 = vmul.f32 %v2333_v31, %v7777_v16  ;;  %s8134_s23 = sld [smem:[#allocation7 + $0x23]] }
 0x2ef   : > { %9299 = vst [vmem:[#allocation28_spill] sm:$0xff] %v8067_v48  ;;  %v8074_v6 = vsel %vm492_vm1, %v1865_v23, %v9207_v50  ;;  %v9210_v52 = vrot.slane %v8067_v48, 2  ;;  %v2125_v40 = vrot.slane %v2121_v13, 2  ;;  %v2334_v2 = vmul.f32 %v2333_v31, %v7781_v27 }
 0x2f0   : > { %9300 = vst [vmem:[#allocation29_spill] sm:$0xff] %v8074_v6  ;;  %9301 = vst [vmem:[#allocation30_spill] sm:$0xff] %v8079_v55  ;;  %v8085_v4 = vsel %vm400_vm0, %v2078_v41, %v9209_v0  ;;  %v8088_v34 = vmul.f32 %v2380_v51, %v7777_v16  ;;  %v2381_v23 = vmul.f32 %v2380_v51, %v7781_v27  ;;  %v9216_v13 = vrot.slane %v8079_v55, 1 }
 0x2f1   : > { %9302 = vst [vmem:[#allocation31_spill] sm:$0xff] %v8085_v4  ;;  %v8094_v15 = vsel %vm492_vm1, %v2125_v40, %v9210_v52  ;;  %v2338_v50 = vrot.slane %v2334_v2, 1  ;;  %v1521_v0 = vstv %s1520_s9  ;;  %s8138_s9 = sld [smem:[#allocation7 + $0x31]]  ;;  %vm7263_vm3 = vmmov 0  }
 0x2f2   : > { %9303 = vst [vmem:[#allocation32_spill] sm:$0xff] %v8088_v34  ;;  %9304 = vst [vmem:[#allocation33_spill] sm:$0xff] %v8094_v15  ;;  %v9218_v31 = vrot.slane %v8088_v34, 2  ;;  %v2385_v18 = vrot.slane %v2381_v23, 2  ;;  %v1522_v52 = vmul.f32 %v1521_v0, %v7781_v27 }
 0x2f3   : > { %v8101_v41 = vsel %vm400_vm0, %v2338_v50, %v9216_v13 }
 0x2f4   : > { %9305 = vst [vmem:[#allocation34_spill] sm:$0xff] %v8101_v41  ;;  %v8106_v51 = vsel %vm492_vm1, %v2385_v18, %v9218_v31  ;;  %v1523_v31 = vmul.f32 %v1521_v0, %v7777_v16  ;;  %v1694_v0 = vstv %s8120_s18  ;;  %s8191_s18 = sld [smem:[#allocation7 + $0xf]] }
 0x2f5   : > { %9306 = vst [vmem:[#allocation35_spill] sm:$0xff] %v8106_v51  ;;  %v9307_v51 = vrot.slane %v7836_v24, 2 }
 0x344   : > { %v1533_v42 = vpop.permute.xlu1 %1532 }
 0x345   : > { %v1531_v40 = vpop.permute.xlu0 %1530  ;;  %v1537_v17 = vadd.f32 %v1533_v42, %v1523_v31 }
 0x346   : > { %v1536_v56 = vadd.f32 %v1531_v40, %v1522_v52  ;;  %v1711_v52 = vstv %s8122_s16  ;;  %v1741_v40 = vstv %s8124_s19  ;;  %s9309_s16 = smov 126   ;;  %s8235_s19 = sld [smem:[#allocation7 + $0x14]] }
 0x348   : > { %v1547_v18 = vpop.permute.xlu1 %1546 }
 0x349   : > { %v1545_v2 = vpop.permute.xlu0 %1544 }
 0x34a   : > { %v1550_v10 = vadd.f32 %v1545_v2, %v1536_v56  ;;  %v1551_v56 = vadd.f32 %v1547_v18, %v1537_v17  ;;  %v1758_v2 = vstv %s8126_s29  ;;  %s8258_s29 = sld [smem:[#allocation7 + $0x43]] }
 0x34c   : > { %v1563_v23 = vadd.f32 %v7865_v58, %v1550_v10  ;;  %v1577_v58 = vpop.permute.xlu1 %1576  ;;  %v1564_v17 = vadd.f32 %v1559_v35, %v1551_v56  ;;  %v1653_v35 = vstv %s8116_s15  ;;  %v1667_v10 = vstv %s8118_s17  ;;  %s8162_s15 = sld [smem:[#allocation7 + $0xc]]  ;;  %s9308_s17 = smov 127  }
 0x34d   : > { %v1575_v25 = vpop.permute.xlu0 %1574 }
 0x34e   : > { %v1580_v33 = vadd.f32 %v1575_v25, %v1563_v23  ;;  %v1581_v22 = vadd.f32 %v1577_v58, %v1564_v17  ;;  %v1954_v23 = vstv %s8128_s8  ;;  %v2001_v58 = vstv %s8132_s20  ;;  %s8276_s8 = sld [smem:[#allocation7 + $0x44]]  ;;  %s8359_s20 = sld [smem:[#allocation7 + $0x33]] }
 0x34f   : > { %v2018_v17 = vstv %s8134_s23  ;;  %s8386_s23 = sld [smem:[#allocation7 + $0x42]] }
 0x351   : > { %v1592_v9 = vpop.permute.xlu0 %1591 }
 0x352   : > { %v1597_v50 = vadd.f32 %v1592_v9, %v1580_v33  ;;  %v1594_v9 = vpop.permute.xlu1 %1593  ;;  %v1681_v48 = vstv %s8162_s15  ;;  %s6164_s15 = sld [smem:[#allocation7 + $0x1d]] }
 0x353   : > { %v1598_v25 = vadd.f32 %v1594_v9, %v1581_v22 }
 0x354   : > { %v8111_v13 = vadd.f32 %v7878_v11, %v1597_v50  ;;  %v1971_v50 = vstv %s8130_s13  ;;  %s8349_s13 = sld [smem:[#allocation7 + $0x30]] }
 0x355   : > { %v1611_v34 = vadd.f32 %v9307_v51, %v1598_v25 }
 0x356   : > { %v1624_v33 = vpop.permute.xlu1 %1623  ;;  %v1622_v22 = vpop.permute.xlu0 %1621 }
 0x357   : > { %v1628_v15 = vadd.f32 %v1624_v33, %v1611_v34 }
 0x3b5   : > { %v6565_v11 = vpop.f32.mrb[12].mxu1 }
 0x3b6   : > { %v1434_v42 = vpop.f32.mrb[13].mxu1 }
 0x3bd   : > { %v6576_v31 = vpop.f32.mrb[14].mxu1 }
 0x3be   : > { %v8157_v18 = vmax.f32 %v6565_v11, %v6576_v31  ;;  %v1509_v56 = vpop.f32.mrb[15].mxu1 }
 0x3bf   : > { %v8164_v9 = vmax.f32 %v1434_v42, %v1509_v56 }
 0x3c0   : > { %v1655_v41 = vmul.f32 %v1653_v35, %v8157_v18  ;;  %v1696_v11 = vmul.f32 %v1694_v0, %v8157_v18  ;;  %v8174_v31 = vmul.f32 %v1711_v52, %v8157_v18  ;;  %v8183_v51 = vmul.f32 %v1741_v40, %v8157_v18 }
 0x3c1   : > { %v1654_v55 = vmul.f32 %v1653_v35, %v8164_v9  ;;  %v1695_v5 = vmul.f32 %v1694_v0, %v8164_v9  ;;  %v1712_v42 = vmul.f32 %v1711_v52, %v8164_v9  ;;  %v1742_v25 = vmul.f32 %v1741_v40, %v8164_v9 }
 0x3c2   : > { %1660 = vrot.lane.b32.xlu1 %v1655_v41, %s9308_s17  ;;  %v1700_v37 = vrot.slane %v1696_v11, 1  ;;  %v1717_v24 = vrot.slane %v8174_v31, 1  ;;  %v8188_v0 = vmul.f32 %v1758_v2, %v8157_v18  ;;  %v1759_v41 = vmul.f32 %v1758_v2, %v8164_v9 }
 0x3c3   : > { %1658 = vrot.lane.b32.xlu0 %v1654_v55, %s9308_s17  ;;  %v1699_v35 = vrot.slane %v1695_v5, 1  ;;  %v1716_v38 = vrot.slane %v1712_v42, 1  ;;  %v1669_v52 = vmul.f32 %v1667_v10, %v8157_v18  ;;  %v1668_v11 = vmul.f32 %v1667_v10, %v8164_v9 }
 0x3c4   : > { %v9233_v40 = vrot.slane %v8183_v51, 2  ;;  %v1746_v31 = vrot.slane %v1742_v25, 2  ;;  %v9232_v55 = vrot.slane %v8188_v0, 2  ;;  %v1763_v42 = vrot.slane %v1759_v41, 2 }
 0x3c5   : > { %v1701_v56 = vsel %vm400_vm0, %v1699_v35, %v1700_v37  ;;  %v1718_v5 = vsel %vm400_vm0, %v1716_v38, %v1717_v24  ;;  %v8206_v10 = vmul.f32 %v1954_v23, %v8157_v18  ;;  %v1955_v34 = vmul.f32 %v1954_v23, %v8164_v9 }
 0x3c6   : > { %1674 = vrot.lane.b32.xlu1 %v1669_v52, %s9309_s16  ;;  %v8203_v2 = vsel %vm492_vm1, %v1746_v31, %v9233_v40  ;;  %v8213_v38 = vsel %vm492_vm1, %v1763_v42, %v9232_v55  ;;  %v8217_v33 = vmul.f32 %v1971_v50, %v8157_v18  ;;  %v1972_v25 = vmul.f32 %v1971_v50, %v8164_v9  ;;  %v1641_v31 = vpop.permute.xlu1 %1640  ;;  %v1639_v42 = vpop.permute.xlu0 %1638 }
 0x3c7   : > { %1672 = vrot.lane.b32.xlu0 %v1668_v11, %s9309_s16  ;;  %v8222_v41 = vmul.f32 %v2001_v58, %v8157_v18  ;;  %v2002_v52 = vmul.f32 %v2001_v58, %v8164_v9  ;;  %v8226_v11 = vmul.f32 %v2018_v17, %v8157_v18  ;;  %v1959_v55 = vrot.slane %v1955_v34, 1 }
 0x3c8   : > { %v9237_v23 = vrot.slane %v8217_v33, 1  ;;  %v1976_v40 = vrot.slane %v1972_v25, 1  ;;  %v2019_v50 = vmul.f32 %v2018_v17, %v8164_v9  ;;  %v1627_v35 = vadd.f32 %v1622_v22, %v8111_v13 }
 0x3c9   : > { %v9236_v58 = vrot.slane %v8222_v41, 2  ;;  %v2006_v4 = vrot.slane %v2002_v52, 2  ;;  %v9235_v57 = vrot.slane %v8226_v11, 2  ;;  %v9310_v34 = vrot.slane %v8206_v10, 1 }
 0x3ca   : > { %1704 = vrot.lane.b32.xlu1 %v1700_v37, %s9308_s17  ;;  %v8245_v37 = vsel %vm400_vm0, %v1976_v40, %v9237_v23  ;;  %v2023_v13 = vrot.slane %v2019_v50, 2  ;;  %v1728_v22 = vstv %s8191_s18  ;;  %v1645_v25 = vadd.f32 %v1641_v31, %v1628_v15  ;;  %s6173_s18 = sld [smem:[#allocation7 + $0x25]] }
 0x3cb   : > { %1702 = vrot.lane.b32.xlu0 %v1701_v56, %s9308_s17  ;;  %v8240_v17 = vsel %vm400_vm0, %v1959_v55, %v9310_v34  ;;  %v1644_v52 = vadd.f32 %v1639_v42, %v1627_v35  ;;  %v8251_v56 = vsel %vm492_vm1, %v2006_v4, %v9236_v58  ;;  %v9311_v55 = vstv %s8138_s9  ;;  %s8388_s9 = sld [smem:[#allocation7 + $0x45]] }
 0x3cc   : > { %v8256_v34 = vmul.f32 %v9311_v55, %v8157_v18  ;;  %v8263_v40 = vsel %vm492_vm1, %v2023_v13, %v9235_v57  ;;  %v9312_v15 = vmov %v9311_v55  ;;  %v9313_v31 = vstv %s8140_s21  ;;  %s8291_s21 = sld [smem:[#allocation7 + $0x46]] }
 0x3cd   : > { %v2215_v35 = vmul.f32 %v9312_v15, %v8164_v9  ;;  %v8271_v42 = vmul.f32 %v9313_v31, %v8157_v18  ;;  %v9314_v4 = vmov %v9313_v31  ;;  %v9315_v13 = vstv %s8142_s22  ;;  %s8345_s22 = sld [smem:[#allocation7 + $0x21]] }
 0x3ce   : > { %v2232_v50 = vmul.f32 %v9314_v4, %v8164_v9  ;;  %1721 = vrot.lane.b32.xlu1 %v1717_v24, %s9309_s16  ;;  %v8283_v57 = vmul.f32 %v9315_v13, %v8157_v18  ;;  %v9316_v15 = vmov %v9315_v13  ;;  %v9317_v31 = vstv %s8144_s0  ;;  %s8321_s0 = sld [smem:[#allocation7 + $0x47]] }
 0x3cf   : > { %v2262_v58 = vmul.f32 %v9316_v15, %v8164_v9  ;;  %v1649_v23 = vmul.f32 %v9317_v31, %v8157_v18  ;;  %1719 = vrot.lane.b32.xlu0 %v1718_v5, %s9309_s16  ;;  %v2219_v4 = vrot.slane %v2215_v35, 1  ;;  %v9244_v24 = vrot.slane %v8271_v42, 1 }
 0x3d0   : > { %v2236_v6 = vrot.slane %v2232_v50, 1  ;;  %v9318_v55 = vmov %v9317_v31  ;;  %v9242_v13 = vrot.slane %v8283_v57, 2  ;;  %v9319_v15 = vstv %s8146_s1  ;;  %s8336_s1 = sld [smem:[#allocation7 + $0x1e]] }
 0x3d1   : > { %v1648_v19 = vmul.f32 %v9318_v55, %v8164_v9  ;;  %v2266_v30 = vrot.slane %v2262_v58, 2  ;;  %v8299_v26 = vadd.f32 %v1649_v23, %v1645_v25  ;;  %v8304_v31 = vmul.f32 %v9319_v15, %v8157_v18 }
 0x3d2   : > { %v9320_v1 = vrot.slane %v8256_v34, 1  ;;  %v8314_v35 = vsel %vm400_vm0, %v2236_v6, %v9244_v24  ;;  %v9321_v58 = vmov %v9319_v15  ;;  %v9322_v25 = vrot.slane %v8183_v51, 2 }
 0x3d3   : > { %v8316_v50 = vadd.f32 %v1648_v19, %v1644_v52  ;;  %v2279_v23 = vmul.f32 %v9321_v58, %v8164_v9  ;;  %v9243_v6 = vrot.slane %v8304_v31, 2  ;;  %v8333_v19 = vmul.f32 %v1681_v48, %v8157_v18  ;;  %1749 = vrot.lane.b32.xlu0 %v8203_v2, %s9308_s17 }
 0x3d4   : > { %v8309_v5 = vsel %vm400_vm0, %v2219_v4, %v9320_v1  ;;  %1751 = vrot.lane.b32.xlu1 %v9322_v25, %s9308_s17  ;;  %v8329_v1 = vsel %vm492_vm1, %v2266_v30, %v9242_v13  ;;  %v1682_v52 = vmul.f32 %v1681_v48, %v8164_v9  ;;  %v1799_v51 = vstv %s8235_s19  ;;  %s6174_s19 = sld [smem:[#allocation7 + $0x26]] }
 0x3d5   : > { %v2283_v55 = vrot.slane %v2279_v23, 2  ;;  %v8342_v4 = vmul.f32 %v1728_v22, %v8157_v18  ;;  %v1729_v30 = vmul.f32 %v1728_v22, %v8164_v9  ;;  %v9247_v15 = vrot.slane %v8333_v19, 1 }
 0x3d6   : > { %v1686_v48 = vrot.slane %v1682_v52, 1  ;;  %v2474_v58 = vstv %s8258_s29  ;;  %v9245_v22 = vmov 0.0|0.0   ;;  %v2491_v13 = vstv %s8276_s8  ;;  %s6182_s29 = sld [smem:[#allocation7 + $0x2e]]  ;;  %s6183_s8 = sld [smem:[#allocation7 + $0x2f]] }
 0x3d7   : > { %v8354_v2 = vsel %vm492_vm1, %v2283_v55, %v9243_v6  ;;  %v1733_v25 = vrot.slane %v1729_v30, 2  ;;  %6909 = vmatprep.subr.bf16.mxu1 %v9245_v22  ;;  %6957 = vmatprep.subr.bf16.mxu0 %v9245_v22  ;;  %v9323_v52 = vrot.slane %v8188_v0, 2  ;;  %v2521_v6 = vstv %s8291_s21  ;;  %s6192_s21 = sld [smem:[#allocation7 + $0x37]] }
 0x3d8   : > { %v8368_v55 = vsel %vm400_vm0, %v1686_v48, %v9247_v15  ;;  %1766 = vrot.lane.b32.xlu0 %v8213_v38, %s9309_s16  ;;  %v9324_v30 = vstv %s8114_s14  ;;  %v9326_v46 = vrot.slane %v8342_v4, 2  ;;  %v1801_v38 = vmul.f32 %v1799_v51, %v7777_v16  ;;  %s6163_s14 = sld [smem:[#allocation7 + $0x1c]] }
 0x3d9   : > { %1768 = vrot.lane.b32.xlu1 %v9323_v52, %s9309_s16  ;;  %v1787_v24 = vmul.f32 %v9324_v30, %v7777_v16  ;;  %v9325_v23 = vmov %v9324_v30  ;;  %v9328_v52 = vmov 0.0   ;;  %v8392_v48 = vmul.f32 %v2474_v58, %v8157_v18 }
 0x3da   : > { %v1786_v22 = vmul.f32 %v9325_v23, %v7781_v27  ;;  %v8382_v0 = vsel %vm492_vm1, %v1733_v25, %v9326_v46  ;;  %6581 = vmatprep.mubr.msk.f32.mxu1 %vm7263_vm3, %v9328_v52  ;;  %v2475_v23 = vmul.f32 %v2474_v58, %v8164_v9  ;;  %v8396_v46 = vmul.f32 %v2491_v13, %v8157_v18 }
 0x3db   : > { %9327 = vst [vmem:[#allocation36_spill] sm:$0xff] %v8382_v0  ;;  %6665 = vmatprep.mubr.msk.f32.mxu0 %vm7263_vm3, %v9328_v52  ;;  %v2492_v25 = vmul.f32 %v2491_v13, %v8164_v9  ;;  %v8402_v30 = vmul.f32 %v2521_v6, %v8157_v18  ;;  %v2522_v15 = vmul.f32 %v2521_v6, %v8164_v9  ;;  %v2538_v20 = vstv %s8321_s0  ;;  %s6193_s0 = sld [smem:[#allocation7 + $0x38]] }
 0x3dc   : > { %9329 = vst [vmem:[#allocation37_spill] sm:$0xff] %v8396_v46  ;;  %v9254_v58 = vrot.slane %v8392_v48, 1  ;;  %v2479_v60 = vrot.slane %v2475_v23, 1  ;;  %v9256_v49 = vrot.slane %v8396_v46, 1  ;;  %v1941_v29 = vstv %s8336_s1  ;;  %1790 = vrot.lane.b32.xlu0 %v1786_v22, %s9308_s17  ;;  %s1774_s1 = sld [smem:[#allocation8]] }
 0x3dd   : > { %9330 = vst [vmem:[#allocation38_spill] sm:$0xff] %v8402_v30  ;;  %1792 = vrot.lane.b32.xlu1 %v1787_v24, %s9308_s17  ;;  %v2496_v52 = vrot.slane %v2492_v25, 1  ;;  %v9257_v13 = vrot.slane %v8402_v30, 2  ;;  %v2526_v8 = vrot.slane %v2522_v15, 2  ;;  %v1988_v47 = vstv %s8345_s22  ;;  %s6153_s22 = sld [smem:[#allocation7 + $0x12]] }
 0x3de   : > { %v1800_v0 = vmul.f32 %v1799_v51, %v7781_v27  ;;  %v8417_v24 = vsel %vm400_vm0, %v2479_v60, %v9254_v58  ;;  %v8420_v6 = vmul.f32 %v2538_v20, %v8157_v18  ;;  %v2201_v23 = vstv %s8349_s13  ;;  %s8630_s13 = sld [smem:[#allocation7 + $0x40]] }
 0x3df   : > { %9331 = vst [vmem:[#allocation39_spill] sm:$0xff] %v8417_v24  ;;  %v8426_v22 = vsel %vm400_vm0, %v2496_v52, %v9256_v49  ;;  %v8431_v51 = vsel %vm492_vm1, %v2526_v8, %v9257_v13  ;;  %v2539_v15 = vmul.f32 %v2538_v20, %v8164_v9  ;;  %v2248_v25 = vstv %s8359_s20  ;;  %s8637_s20 = sld [smem:[#allocation7 + $0x41]] }
 0x3e0   : > { %9332 = vst [vmem:[#allocation40_spill] sm:$0xff] %v8426_v22  ;;  %9333 = vst [vmem:[#allocation41_spill] sm:$0xff] %v8431_v51  ;;  %v8438_v58 = vmul.f32 %v1941_v29, %v8157_v18  ;;  %v1942_v46 = vmul.f32 %v1941_v29, %v8164_v9  ;;  %v8442_v52 = vmul.f32 %v1988_v47, %v8157_v18  ;;  %1804 = vrot.lane.b32.xlu0 %v1800_v0, %s9309_s16 }
 0x3e1   : > { %1806 = vrot.lane.b32.xlu1 %v1801_v38, %s9309_s16  ;;  %v2543_v49 = vrot.slane %v2539_v15, 2  ;;  %v1989_v8 = vmul.f32 %v1988_v47, %v8164_v9  ;;  %v2461_v13 = vstv %s8386_s23  ;;  %v2508_v20 = vstv %s8388_s9  ;;  %s6162_s23 = sld [smem:[#allocation7 + $0x1b]]  ;;  %s6172_s9 = sld [smem:[#allocation7 + $0x24]] }
 0x3e2   : > { %9334 = vst [vmem:[#allocation42_spill] sm:$0xff] %v8438_v58  ;;  %v9260_v51 = vrot.slane %v8438_v58, 1  ;;  %v1946_v38 = vrot.slane %v1942_v46, 1  ;;  %v8451_v30 = vmul.f32 %v2201_v23, %v8157_v18  ;;  %v9335_v29 = vrot.slane %v8420_v6, 2 }
 0x3e3   : > { %v1993_v24 = vrot.slane %v1989_v8, 2  ;;  %v2202_v0 = vmul.f32 %v2201_v23, %v8164_v9  ;;  %v8460_v47 = vmul.f32 %v2248_v25, %v8157_v18  ;;  %v9336_v15 = vrot.slane %v7857_v39, 1 }
 0x3e4   : > { %v8456_v22 = vsel %vm492_vm1, %v2543_v49, %v9335_v29  ;;  %v8468_v46 = vsel %vm400_vm0, %v1946_v38, %v9260_v51  ;;  %v2207_v60 = vrot.slane %v8451_v30, 1  ;;  %v2249_v49 = vmul.f32 %v2248_v25, %v8164_v9  ;;  %1834 = vrot.lane.b32.xlu0 %v7894_v28, %s9308_s17 }
 0x3e5   : > { %1836 = vrot.lane.b32.xlu1 %v9336_v15, %s9308_s17  ;;  %v9337_v23 = vrot.slane %v8442_v52, 2  ;;  %v2206_v29 = vrot.slane %v2202_v0, 1  ;;  %v2254_v39 = vrot.slane %v8460_v47, 2  ;;  %v8481_v58 = vmul.f32 %v2461_v13, %v8157_v18  ;;  %v9396_v47 = vld [vmem:[#allocation17_spill] sm:$0xff] }
 0x3e6   : > { %v2253_v15 = vrot.slane %v2249_v49, 2  ;;  %v2462_v38 = vmul.f32 %v2461_v13, %v8164_v9  ;;  %v8485_v51 = vmul.f32 %v2508_v20, %v8157_v18  ;;  %v9338_v25 = vrot.slane %v7868_v61, 1 }
 0x3e7   : > { %v8477_v8 = vsel %vm492_vm1, %v1993_v24, %v9337_v23  ;;  %v8490_v28 = vsel %vm400_vm0, %v2206_v29, %v2207_v60  ;;  %v2509_v24 = vmul.f32 %v2508_v20, %v8164_v9  ;;  %v2467_v13 = vrot.slane %v8481_v58, 1 }
 0x3e8   : > { %v8499_v0 = vsel %vm492_vm1, %v2253_v15, %v2254_v39  ;;  %v2466_v49 = vrot.slane %v2462_v38, 1  ;;  %v2514_v23 = vrot.slane %v8485_v51, 2  ;;  %1851 = vrot.lane.b32.xlu0 %v7908_v32, %s9309_s16  ;;  %v9339_v15 = vrot.slane %v7872_v63, 2 }
 0x3e9   : > { %1853 = vrot.lane.b32.xlu1 %v9338_v25, %s9309_s16  ;;  %v2513_v29 = vrot.slane %v2509_v24, 2  ;;  %v1913_v32 = vstv %s6163_s14  ;;  %v9340_v38 = vrot.slane %v7887_v43, 2  ;;  %v9341_v43 = vrot.slane %v8206_v10, 1  ;;  %s6190_s14 = sld [smem:[#allocation8 + $0x2]] }
 0x3ea   : > { %v8508_v20 = vsel %vm400_vm0, %v2466_v49, %v2467_v13  ;;  %v1915_v24 = vmul.f32 %v1913_v32, %v8157_v18  ;;  %v1914_v25 = vmul.f32 %v1913_v32, %v8164_v9  ;;  %v1927_v49 = vstv %s6164_s15  ;;  %s6191_s15 = sld [smem:[#allocation7 + $0x36]] }
 0x3eb   : > { %v8513_v61 = vsel %vm492_vm1, %v2513_v29, %v2514_v23  ;;  %v1929_v63 = vmul.f32 %v1927_v49, %v8157_v18  ;;  %v9343_v29 = vrot.slane %v8222_v41, 2  ;;  %v2045_v10 = vstv %s6173_s18  ;;  %s6200_s18 = sld [smem:[#allocation7 + $0x3f]] }
 0x3ec   : > { %1881 = vrot.lane.b32.xlu0 %v7918_v53, %s9308_s17  ;;  %v1928_v53 = vmul.f32 %v1927_v49, %v8164_v9  ;;  %v9347_v32 = vrot.slane %v7939_v14, 2  ;;  %v2305_v49 = vstv %s6192_s21 }
 0x3ed   : > { %1883 = vrot.lane.b32.xlu1 %v9339_v15, %s9308_s17  ;;  %v2059_v15 = vstv %s6174_s19  ;;  %s6209_s19 = sld [smem:[#allocation8 + $0x3]] }
 0x3ee   : > { %v2061_v41 = vmul.f32 %v2059_v15, %v7777_v16 }
 0x3f0   : > { %1898 = vrot.lane.b32.xlu0 %v7935_v7, %s9309_s16  ;;  %v9342_v7 = vrot.slane %v8217_v33, 1  ;;  %v2047_v33 = vmul.f32 %v2045_v10, %v7777_v16 }
 0x3f1   : > { %1900 = vrot.lane.b32.xlu1 %v9340_v38, %s9309_s16  ;;  %v2187_v38 = vstv %s6183_s8 }
 0x3f2   : > { %v2189_v14 = vmul.f32 %v2187_v38, %v8157_v18 }
 0x3f4   : > { %1918 = vrot.lane.b32.xlu0 %v1914_v25, %s9308_s17 }
 0x3f5   : > { %1920 = vrot.lane.b32.xlu1 %v1915_v24, %s9308_s17  ;;  %v9351_v24 = vrot.slane %v8283_v57, 2  ;;  %v2307_v57 = vmul.f32 %v2305_v49, %v7777_v16 }
 0x3f8   : > { %1932 = vrot.lane.b32.xlu0 %v1928_v53, %s9309_s16 }
 0x3f9   : > { %1934 = vrot.lane.b32.xlu1 %v1929_v63, %s9309_s16 }
 0x3fc   : > { %1962 = vrot.lane.b32.xlu0 %v8240_v17, %s9308_s17  ;;  %v9344_v17 = vrot.slane %v8226_v11, 2  ;;  %v9345_v11 = vrot.slane %v7922_v54, 1  ;;  %v2173_v54 = vstv %s6182_s29 }
 0x3fd   : > { %1964 = vrot.lane.b32.xlu1 %v9341_v43, %s9308_s17 }
 0x400   : > { %1979 = vrot.lane.b32.xlu0 %v8245_v37, %s9309_s16  ;;  %v2046_v37 = vmul.f32 %v2045_v10, %v7781_v27 }
 0x401   : > { %1981 = vrot.lane.b32.xlu1 %v9342_v7, %s9309_s16  ;;  %v2319_v7 = vstv %s6193_s0 }
 0x404   : > { %2009 = vrot.lane.b32.xlu0 %v8251_v56, %s9308_s17  ;;  %v2060_v56 = vmul.f32 %v2059_v15, %v7781_v27 }
 0x405   : > { %2011 = vrot.lane.b32.xlu1 %v9343_v29, %s9308_s17 }
 0x408   : > { %2026 = vrot.lane.b32.xlu0 %v8263_v40, %s9309_s16  ;;  %v9346_v40 = vrot.slane %v7926_v59, 1  ;;  %v2175_v59 = vmul.f32 %v2173_v54, %v8157_v18 }
 0x409   : > { %2028 = vrot.lane.b32.xlu1 %v9344_v17, %s9309_s16 }
 0x40c   : > { %2050 = vrot.lane.b32.xlu0 %v2046_v37, %s9308_s17 }
 0x40d   : > { %2052 = vrot.lane.b32.xlu1 %v2047_v33, %s9308_s17  ;;  %v2320_v33 = vmul.f32 %v2319_v7, %v7781_v27 }
 0x410   : > { %2064 = vrot.lane.b32.xlu0 %v2060_v56, %s9309_s16 }
 0x411   : > { %2066 = vrot.lane.b32.xlu1 %v2061_v41, %s9309_s16 }
 0x414   : > { %2094 = vrot.lane.b32.xlu0 %v7968_v12, %s9308_s17  ;;  %v9348_v12 = vrot.slane %v7952_v36, 2  ;;  %v9349_v36 = vrot.slane %v8256_v34, 1 }
 0x415   : > { %2096 = vrot.lane.b32.xlu1 %v9345_v11, %s9308_s17 }
 0x418   : > { %2111 = vrot.lane.b32.xlu0 %v7976_v62, %s9309_s16  ;;  %v2174_v62 = vmul.f32 %v2173_v54, %v8164_v9 }
 0x419   : > { %2113 = vrot.lane.b32.xlu1 %v9346_v40, %s9309_s16  ;;  %v9355_v40 = vrot.slane %v8342_v4, 2 }
 0x41c   : > { %2141 = vrot.lane.b32.xlu0 %v7981_v21, %s9308_s17  ;;  %v2188_v21 = vmul.f32 %v2187_v38, %v8164_v9  ;;  %v9357_v38 = vld [vmem:[#allocation18_spill] sm:$0xff] }
 0x41d   : > { %2143 = vrot.lane.b32.xlu1 %v9347_v32, %s9308_s17 }
 0x420   : > { %2158 = vrot.lane.b32.xlu0 %v8003_v44, %s9309_s16  ;;  %v9350_v44 = vrot.slane %v8271_v42, 1 }
 0x421   : > { %2160 = vrot.lane.b32.xlu1 %v9348_v12, %s9309_s16  ;;  %v9356_v12 = vld [vmem:[#allocation36_spill] sm:$0xff] }
 0x424   : > { %2178 = vrot.lane.b32.xlu0 %v2174_v62, %s9308_s17 }
 0x425   : > { %2180 = vrot.lane.b32.xlu1 %v2175_v59, %s9308_s17 }
 0x428   : > { %2192 = vrot.lane.b32.xlu0 %v2188_v21, %s9309_s16 }
 0x429   : > { %2194 = vrot.lane.b32.xlu1 %v2189_v14, %s9309_s16  ;;  %v9358_v14 = vrot.slane %v9357_v38, 1 }
 0x42c   : > { %2222 = vrot.lane.b32.xlu0 %v8309_v5, %s9308_s17  ;;  %v9352_v5 = vrot.slane %v8304_v31, 2 }
 0x42d   : > { %2224 = vrot.lane.b32.xlu1 %v9349_v36, %s9308_s17 }
 0x430   : > { %2239 = vrot.lane.b32.xlu0 %v8314_v35, %s9309_s16 }
 0x431   : > { %2241 = vrot.lane.b32.xlu1 %v9350_v44, %s9309_s16  ;;  %v1775_v44 = vstv %s1774_s1 }
 0x434   : > { %2269 = vrot.lane.b32.xlu0 %v8329_v1, %s9308_s17  ;;  %v1661_v34 = vpop.permute.xlu1 %1660  ;;  %v2306_v1 = vmul.f32 %v2305_v49, %v7781_v27  ;;  %v9360_v49 = vld [vmem:[#allocation19_spill] sm:$0xff] }
 0x435   : > { %2271 = vrot.lane.b32.xlu1 %v9351_v24, %s9308_s17  ;;  %v1659_v25 = vpop.permute.xlu0 %1658  ;;  %v1665_v42 = vadd.f32 %v1661_v34, %v8299_v26  ;;  %v9353_v26 = vrot.slane %v8333_v19, 1  ;;  %v1781_v24 = vstv %s6153_s22 }
 0x436   : > { %v1664_v35 = vadd.f32 %v1659_v25, %v8316_v50  ;;  %v2321_v50 = vmul.f32 %v2319_v7, %v7777_v16  ;;  %v1782_v7 = vmul.f32 %v1781_v24, %v7781_v27 }
 0x438   : > { %2286 = vrot.lane.b32.xlu0 %v8354_v2, %s9309_s16  ;;  %v1675_v63 = vpop.permute.xlu1 %1674 }
 0x439   : > { %2288 = vrot.lane.b32.xlu1 %v9352_v5, %s9309_s16  ;;  %v1679_v53 = vadd.f32 %v1675_v63, %v1665_v42  ;;  %v1673_v43 = vpop.permute.xlu0 %1672  ;;  %v9361_v5 = vrot.slane %v9360_v49, 2  ;;  %v1783_v63 = vmul.f32 %v1781_v24, %v7777_v16 }
 0x43a   : > { %v1678_v29 = vadd.f32 %v1673_v43, %v1664_v35  ;;  %v9362_v35 = vld [vmem:[#allocation23_spill] sm:$0xff] }
 0x43b   : > { %v1692_v31 = vadd.f32 %v9353_v26, %v1679_v53 }
 0x43c   : > { %2310 = vrot.lane.b32.xlu0 %v2306_v1, %s9308_s17  ;;  %v1705_v10 = vpop.permute.xlu1 %1704  ;;  %v1691_v2 = vadd.f32 %v8368_v55, %v1678_v29  ;;  %v9354_v55 = vrot.slane %v7990_v45, 1  ;;  %v9359_v45 = vld [vmem:[#allocation22_spill] sm:$0xff] }
 0x43d   : > { %2312 = vrot.lane.b32.xlu1 %v2307_v57, %s9308_s17  ;;  %v1703_v17 = vpop.permute.xlu0 %1702  ;;  %v1709_v37 = vadd.f32 %v1705_v10, %v1692_v31  ;;  %v9363_v57 = vld [vmem:[#allocation15_spill] sm:$0xff]  ;;  %v2433_v10 = vstv %s8630_s13 }
 0x43e   : > { %v1708_v15 = vadd.f32 %v1703_v17, %v1691_v2  ;;  %v2560_v53 = vmul.u32 2, %v9363_v57  ;;  %v9364_v17 = vld [vmem:[#allocation20_spill] sm:$0xff] }
 0x440   : > { %2324 = vrot.lane.b32.xlu0 %v2320_v33, %s9309_s16  ;;  %v1722_v41 = vpop.permute.xlu1 %1721  ;;  %v9365_v33 = vrot.slane %v9364_v17, 2 }
 0x441   : > { %2326 = vrot.lane.b32.xlu1 %v2321_v50, %s9309_s16  ;;  %v1726_v56 = vadd.f32 %v1722_v41, %v1709_v37  ;;  %v1720_v19 = vpop.permute.xlu0 %1719  ;;  %v9366_v37 = vld [vmem:[#allocation25_spill] sm:$0xff]  ;;  %v9369_v41 = vld [vmem:[#allocation16_spill] sm:$0xff] }
 0x442   : > { %v1725_v11 = vadd.f32 %v1720_v19, %v1708_v15  ;;  %vm2561_vm6 = vcmp.eq.s32.totalorder %v9369_v41, %v2560_v53 }
 0x443   : > { %v1739_v32 = vadd.f32 %v9355_v40, %v1726_v56  ;;  %v2563_v56 = vadd.s32 1, %v2560_v53 }
 0x444   : > { %2354 = vrot.lane.b32.xlu0 %v8024_v3, %s9308_s17  ;;  %v1738_v59 = vadd.f32 %v9356_v12, %v1725_v11  ;;  %v2447_v12 = vstv %s8637_s20 }
 0x445   : > { %2356 = vrot.lane.b32.xlu1 %v9354_v55, %s9308_s17  ;;  %v1750_v62 = vpop.permute.xlu0 %1749  ;;  %v2435_v55 = vmul.f32 %v2433_v10, %v8157_v18  ;;  %vm2564_vm12 = vcmp.eq.s32.totalorder %v9369_v41, %v2563_v56  ;;  %v2448_v49 = vmul.f32 %v2447_v12, %v8164_v9  ;;  %v9380_v56 = vld [vmem:[#allocation37_spill] sm:$0xff] }
 0x446   : > { %v1752_v54 = vpop.permute.xlu1 %1751  ;;  %v1755_v36 = vadd.f32 %v1750_v62, %v1738_v59  ;;  %v9370_v62 = vmov 0.0  }
 0x447   : > { %v1756_v21 = vadd.f32 %v1752_v54, %v1739_v32  ;;  %v2434_v54 = vmul.f32 %v2433_v10, %v8164_v9  ;;  %v8667_v38 = vsel %vm2561_vm6, 1.0, %v9370_v62 }
 0x448   : > { %2371 = vrot.lane.b32.xlu0 %v9359_v45, %s9309_s16 }
 0x449   : > { %2373 = vrot.lane.b32.xlu1 %v9358_v14, %s9309_s16  ;;  %v9371_v14 = vld [vmem:[#allocation21_spill] sm:$0xff] }
 0x44a   : > { %v1767_v34 = vpop.permute.xlu0 %1766 }
 0x44b   : > { %v1769_v3 = vpop.permute.xlu1 %1768  ;;  %v1772_v25 = vadd.f32 %v1767_v34, %v1755_v36  ;;  %v9373_v36 = vmov 0.0|0.0  }
 0x44c   : > { %v1773_v4 = vadd.f32 %v1769_v3, %v1756_v21  ;;  %2401 = vrot.lane.b32.xlu0 %v9362_v35, %s9308_s17  ;;  %v9372_v21 = vrot.slane %v9371_v14, 1  ;;  %v9374_v3 = vld [vmem:[#allocation27_spill] sm:$0xff] }
 0x44d   : > { %2403 = vrot.lane.b32.xlu1 %v9361_v5, %s9308_s17  ;;  %v1776_v43 = vadd.f32 %v1775_v44, %v1772_v25 }
 0x44e   : > { %v1777_v42 = vadd.f32 %v1775_v44, %v1773_v4  ;;  %v1791_v31 = vpop.permute.xlu0 %1790  ;;  %v2449_v4 = vmul.f32 %v2447_v12, %v8157_v18 }
 0x44f   : > { %v1793_v1 = vpop.permute.xlu1 %1792  ;;  %v1778_v2 = vmax.f32 %v1776_v43, 0.0  ;;  %v1796_v50 = vadd.f32 %v1791_v31, %v1782_v7  ;;  %v9376_v7 = vld [vmem:[#allocation39_spill] sm:$0xff] }
 0x450   : > { %v1779_v29 = vmax.f32 %v1777_v42, 0.0  ;;  %v1797_v26 = vadd.f32 %v1793_v1, %v1783_v63  ;;  %2418 = vrot.lane.b32.xlu0 %v9366_v37, %s9309_s16  ;;  %v8683_v42 = vsel %vm2564_vm12, 1.0, %v9370_v62  ;;  %v9375_v1 = vrot.slane %v8392_v48, 1 }
 0x451   : > { %2420 = vrot.lane.b32.xlu1 %v9365_v33, %s9309_s16  ;;  %v1907_v48 = vstv %s6162_s23  ;;  %s321_s23 = sand.u32 1, %s7242_s25  }
 0x452   : > { %v6910_v19 = vpack.c.bf16 %v1779_v29, %v1778_v2  ;;  %v1805_v32 = vpop.permute.xlu0 %1804  ;;  %v9377_v29 = vld [vmem:[#allocation24_spill] sm:$0xff]  ;;  %v9379_v2 = vld [vmem:[#allocation29_spill] sm:$0xff]  ;;  %s5957_s8 = scalar_lea.sflag [#allocation3], %s321_s23 }
 0x453   : > { %v1807_v11 = vpop.permute.xlu1 %1806  ;;  %v1810_v59 = vadd.f32 %v1805_v32, %v1796_v50 }
 0x454   : > { %v1811_v40 = vadd.f32 %v1807_v11, %v1797_v26  ;;  %6912 = vmatpush3.bf16.msk.msra.mxu1 %vm8655_vm4, %v6910_v19  ;;  %2438 = vrot.lane.b32.xlu0 %v2434_v54, %s9308_s17  ;;  %v9378_v26 = vrot.slane %v9377_v29, 2  ;;  %v9382_v11 = vld [vmem:[#allocation40_spill] sm:$0xff]  ;;  %v1909_v54 = vmul.f32 %v1907_v48, %v8157_v18 }
 0x455   : > { %2440 = vrot.lane.b32.xlu1 %v2435_v55, %s9308_s17  ;;  %6913 = vmatprep.subr.bf16.mxu1 %v9373_v36  ;;  %v1823_v24 = vadd.f32 %v9374_v3, %v1810_v59  ;;  %v9383_v59 = vld [vmem:[#allocation38_spill] sm:$0xff] }
 0x456   : > { %v1824_v45 = vadd.f32 %v9372_v21, %v1811_v40  ;;  %v1835_v25 = vpop.permute.xlu0 %1834  ;;  %v9384_v14 = vrot.slane %v9383_v59, 2  ;;  %v1908_v21 = vmul.f32 %v1907_v48, %v8164_v9 }
 0x457   : > { %v1837_v44 = vpop.permute.xlu1 %1836  ;;  %6582 = vmatmul.mubr.msk.f32.vlgmr.msra.gmra.mrb[16].mxu1 %vm2576_vm5, %v8667_v38  ;;  %v1840_v5 = vadd.f32 %v1835_v25, %v1823_v24 }
 0x458   : > { %v1841_v34 = vadd.f32 %v1837_v44, %v1824_v45  ;;  %6916 = vmatpush3.bf16.msk.msra.mxu1 %vm8655_vm4, %v6910_v19  ;;  %2452 = vrot.lane.b32.xlu0 %v2448_v49, %s9309_s16  ;;  %v9381_v19 = vrot.slane %v9380_v56, 1  ;;  %v9385_v45 = vld [vmem:[#allocation41_spill] sm:$0xff]  ;;  %v9386_v49 = vrot.slane %v8420_v6, 2 }
 0x459   : > { %2454 = vrot.lane.b32.xlu1 %v2449_v4, %s9309_s16  ;;  %6588 = vmatprep.mubr.msk.f32.mxu1 %vm7263_vm3, %v9370_v62 }
 0x45a   : > { %6917 = vmatprep.subr.bf16.mxu1 %v9373_v36  ;;  %v1852_v53 = vpop.permute.xlu0 %1851 }
 0x45b   : > { %v1854_v35 = vpop.permute.xlu1 %1853  ;;  %6589 = vmatmul.mubr.msk.f32.vlgmr.msra.gmra.mrb[18].mxu1 %vm2576_vm5, %v8683_v42  ;;  %v1857_v43 = vadd.f32 %v1852_v53, %v1840_v5 }
 0x45c   : > { %v1858_v63 = vadd.f32 %v1854_v35, %v1841_v34  ;;  %6595 = vmatprep.mubr.msk.f32.mxu1 %vm7263_vm3, %v9370_v62  ;;  %2482 = vrot.lane.b32.xlu0 %v9376_v7, %s9308_s17 }
 0x45d   : > { %2484 = vrot.lane.b32.xlu1 %v9375_v1, %s9308_s17  ;;  %v1870_v50 = vadd.f32 %v9379_v2, %v1857_v43  ;;  %v9387_v43 = vld [vmem:[#allocation42_spill] sm:$0xff] }
 0x45e   : > { %v1871_v31 = vadd.f32 %v9378_v26, %v1858_v63  ;;  %v1882_v33 = vpop.permute.xlu0 %1881  ;;  %v9388_v1 = vrot.slane %v9387_v43, 1 }
 0x45f   : > { %v1884_v10 = vpop.permute.xlu1 %1883  ;;  %v1887_v37 = vadd.f32 %v1882_v33, %v1870_v50 }
 0x460   : > { %v1888_v17 = vadd.f32 %v1884_v10, %v1871_v31  ;;  %2499 = vrot.lane.b32.xlu0 %v9382_v11, %s9309_s16 }
 0x461   : > { %2501 = vrot.lane.b32.xlu1 %v9381_v19, %s9309_s16 }
 0x462   : > { %v1899_v32 = vpop.permute.xlu0 %1898 }
 0x463   : > { %v1901_v55 = vpop.permute.xlu1 %1900  ;;  %v1904_v12 = vadd.f32 %v1899_v32, %v1887_v37  ;;  %v2041_v32 = vstv %s6172_s9 }
 0x464   : > { %v1905_v40 = vadd.f32 %v1901_v55, %v1888_v17  ;;  %2529 = vrot.lane.b32.xlu0 %v9385_v45, %s9308_s17 }
 0x465   : > { %2531 = vrot.lane.b32.xlu1 %v9384_v14, %s9308_s17  ;;  %v1910_v24 = vadd.f32 %v1908_v21, %v1904_v12  ;;  %s6171_s17 = sld [smem:[#allocation8 + $0x1]]  ;;  %v2043_v21 = vmul.f32 %v2041_v32, %v7777_v16 }
 0x466   : > { %v1911_v44 = vadd.f32 %v1909_v54, %v1905_v40  ;;  %v1919_v34 = vpop.permute.xlu0 %1918 }
 0x467   : > { %v1921_v3 = vpop.permute.xlu1 %1920  ;;  %v1924_v25 = vadd.f32 %v1919_v34, %v1910_v24 }
 0x468   : > { %v1925_v4 = vadd.f32 %v1921_v3, %v1911_v44  ;;  %2546 = vrot.lane.b32.xlu0 %v8456_v22, %s9309_s16  ;;  %v9389_v22 = vrot.slane %v8442_v52, 2  ;;  %v2042_v52 = vmul.f32 %v2041_v32, %v7781_v27 }
 0x469   : > { %2548 = vrot.lane.b32.xlu1 %v9386_v49, %s9309_s16  ;;  %s6181_s16 = sld [smem:[#allocation7 + $0x2d]] }
 0x46a   : > { %v1933_v63 = vpop.permute.xlu0 %1932 }
 0x46b   : > { %v1935_v5 = vpop.permute.xlu1 %1934  ;;  %v1938_v53 = vadd.f32 %v1933_v63, %v1924_v25  ;;  %v2035_v40 = vstv %s6171_s17 }
 0x46c   : > { %v1939_v35 = vadd.f32 %v1935_v5, %v1925_v4 }
 0x46d   : > { %v1951_v26 = vadd.f32 %v8468_v46, %v1938_v53  ;;  %v9390_v53 = vld [vmem:[#allocation26_spill] sm:$0xff] }
 0x46e   : > { %v1952_v7 = vadd.f32 %v9388_v1, %v1939_v35  ;;  %v1963_v10 = vpop.permute.xlu0 %1962  ;;  %v9391_v43 = vrot.slane %v9390_v53, 1 }
 0x46f   : > { %v1965_v29 = vpop.permute.xlu1 %1964  ;;  %v1968_v2 = vadd.f32 %v1963_v10, %v1951_v26  ;;  %v2167_v32 = vstv %s6181_s16  ;;  %s6333_s16 = sshll.u32 %s7326_s28, 4  ;;  %s7264_s28 = smov [#allocation10]  }
 0x470   : > { %v1969_v31 = vadd.f32 %v1965_v29, %v1952_v7  ;;  %v9392_v29 = vld [vmem:[#allocation31_spill] sm:$0xff]  ;;  %s9147_s29 = scalar_lea.hbm %s9196_s7, %s6333_s16  ;;  %s7180_s0 = sshll.u32 %s7264_s28, 4  ;;  %s7181_s0 = int_to_ptr.vmem [resolvable:$false] %s7180_s0 }
 0x471   : > { %s7182_s1 = scalar_lea.vmem %s7181_s0, 32 }
 0x472   : > { %v1980_v17 = vpop.permute.xlu0 %1979 }
 0x473   : > { %v1982_v50 = vpop.permute.xlu1 %1981  ;;  %v1985_v33 = vadd.f32 %v1980_v17, %v1968_v2 }
 0x474   : > { %v1986_v6 = vadd.f32 %v1982_v50, %v1969_v31 }
 0x475   : > { %v1998_v19 = vadd.f32 %v8477_v8, %v1985_v33 }
 0x476   : > { %v1999_v37 = vadd.f32 %v9389_v22, %v1986_v6  ;;  %v2010_v11 = vpop.permute.xlu0 %2009  ;;  %v9393_v22 = vld [vmem:[#allocation28_spill] sm:$0xff] }
 0x477   : > { %v2012_v56 = vpop.permute.xlu1 %2011  ;;  %v2015_v55 = vadd.f32 %v2010_v11, %v1998_v19 }
 0x478   : > { %v2016_v48 = vadd.f32 %v2012_v56, %v1999_v37  ;;  %v9394_v37 = vrot.slane %v9393_v22, 2  ;;  %v2295_v22 = vstv %s6190_s14  ;;  %s322_s14 = scalar_lea.vmem [#allocation10], %s321_s23 }
 0x47a   : > { %v2027_v12 = vpop.permute.xlu0 %2026 }
 0x47b   : > { %v2029_v46 = vpop.permute.xlu1 %2028  ;;  %v2032_v59 = vadd.f32 %v2027_v12, %v2015_v55 }
 0x47c   : > { %v2033_v54 = vadd.f32 %v2029_v46, %v2016_v48  ;;  %v9395_v48 = vld [vmem:[#allocation33_spill] sm:$0xff] }
 0x47d   : > { %v2036_v45 = vadd.f32 %v2035_v40, %v2032_v59 }
 0x47e   : > { %v2037_v14 = vadd.f32 %v2035_v40, %v2033_v54  ;;  %v2051_v4 = vpop.permute.xlu0 %2050 }
 0x47f   : > { %v2053_v44 = vpop.permute.xlu1 %2052  ;;  %v2038_v8 = vmax.f32 %v2036_v45, 0.0  ;;  %v2056_v34 = vadd.f32 %v2051_v4, %v2042_v52  ;;  %v2168_v45 = vmul.f32 %v2167_v32, %v8164_v9 }
 0x480   : > { %v2039_v3 = vmax.f32 %v2037_v14, 0.0  ;;  %v2057_v24 = vadd.f32 %v2053_v44, %v2043_v21  ;;  %v2169_v14 = vmul.f32 %v2167_v32, %v8157_v18 }
 0x482   : > { %v8726_v25 = vpack.c.bf16 %v2039_v3, %v2038_v8  ;;  %v2065_v35 = vpop.permute.xlu0 %2064 }
 0x483   : > { %v2067_v49 = vpop.permute.xlu1 %2066  ;;  %v2070_v63 = vadd.f32 %v2065_v35, %v2056_v34 }
 0x484   : > { %v2071_v5 = vadd.f32 %v2067_v49, %v2057_v24 }
 0x485   : > { %v2083_v26 = vadd.f32 %v9392_v29, %v2070_v63 }
 0x486   : > { %v2084_v1 = vadd.f32 %v9391_v43, %v2071_v5  ;;  %v2095_v10 = vpop.permute.xlu0 %2094 }
 0x487   : > { %v2097_v7 = vpop.permute.xlu1 %2096  ;;  %v2100_v2 = vadd.f32 %v2095_v10, %v2083_v26 }
 0x488   : > { %v2101_v31 = vadd.f32 %v2097_v7, %v2084_v1 }
 0x48a   : > { %v2112_v17 = vpop.permute.xlu0 %2111 }
 0x48b   : > { %v2114_v50 = vpop.permute.xlu1 %2113  ;;  %v2117_v33 = vadd.f32 %v2112_v17, %v2100_v2 }
 0x48c   : > { %v2118_v6 = vadd.f32 %v2114_v50, %v2101_v31 }
 0x48d   : > { %v2130_v11 = vadd.f32 %v9395_v48, %v2117_v33 }
 0x48e   : > { %v2131_v56 = vadd.f32 %v9394_v37, %v2118_v6  ;;  %v2142_v40 = vpop.permute.xlu0 %2141 }
 0x48f   : > { %v2144_v19 = vpop.permute.xlu1 %2143  ;;  %v2147_v46 = vadd.f32 %v2142_v40, %v2130_v11  ;;  %v2301_v11 = vstv %s6191_s15  ;;  %s5969_s15 = sshll.u32 %s322_s14, 4  ;;  %s9149_s15 = int_to_ptr.vmem [resolvable:$true] %s5969_s15 }
 0x490   : > { %v2148_v55 = vadd.f32 %v2144_v19, %v2131_v56  ;;  %v8743_v19 = vmul.u32 2, %v9369_v41  ;;  %v2303_v32 = vmul.f32 %v2301_v11, %v7777_v16  ;;  %s7176_s21 = scalar_lea.vmem %s9149_s15, 16  ;;  %p7183_p2 = scmp.lt.s32.totalorder %s9149_s15, %s7181_s0 }
 0x491   : > { %p7177_p8 = scmp.ne.s32.totalorder %s9149_s15, %s7176_s21  ;;  %p7184_p3 = scmp.lt.s32.totalorder %s7182_s1, %s7176_s21 }
 0x492   : > { %v2159_v59 = vpop.permute.xlu0 %2158  ;;  %vm2567_vm13 = vcmp.eq.s32.totalorder %v9363_v57, %v8743_v19  ;;  %vm2568_vm14 = vcmp.eq.s32.totalorder %v9396_v47, %v8743_v19  ;;  %v2571_v51 = vadd.s32 1, %v8743_v19 }
 0x493   : > { %v2161_v54 = vpop.permute.xlu1 %2160  ;;  %v2164_v21 = vadd.f32 %v2159_v59, %v2147_v46  ;;  %v2570_v40 = vsel %vm2568_vm14, 1.0, %v9370_v62  ;;  %vm8751_vm15 = vmpackc.low %vm492_vm1, %vm2567_vm13  ;;  %p7178_p13 = pnand %p7177_p8, %p9408_p11  ;;  %p7185_p4 = por %p7184_p3, %p7183_p2 }
 0x494   : > { %v2165_v12 = vadd.f32 %v2161_v54, %v2148_v55  ;;  %vm2573_vm2 = vcmp.eq.s32.totalorder %v9396_v47, %v2571_v51  ;;  %vm2572_vm7 = vcmp.eq.s32.totalorder %v9363_v57, %v2571_v51  ;;  %v6288_v51 = vld [vmem:[%s9194_s5 + $0x68] sm:$0x7f] }
 0x495   : > { %v2170_v3 = vadd.f32 %v2168_v45, %v2164_v21  ;;  %v2302_v21 = vmul.f32 %v2301_v11, %v7781_v27  ;;  %vm8802_vm8 = vmpackc.low %vm492_vm1, %vm2572_vm7  ;;  %vm3743_vm1 = vcmask 56320   ;;  %p7179_p1 = pneg %p7178_p13 }
 0x496   : > { %v2171_v44 = vadd.f32 %v2169_v14, %v2165_v12  ;;  %v2179_v4 = vpop.permute.xlu0 %2178  ;;  %v9399_v12 = vmov 1.0  }
 0x497   : > { %v2181_v52 = vpop.permute.xlu1 %2180  ;;  %v2184_v8 = vadd.f32 %v2179_v4, %v2170_v3  ;;  %v8757_v59 = vpack.c.bf16 %v2570_v40, %v9399_v12  ;;  %p7186_p9 = pnand %p7185_p4, %p7179_p1 }
 0x498   : > { %v2185_v24 = vadd.f32 %v2181_v52, %v2171_v44 }
 0x499   : > { %6920 = vmatpush3.bf16.msk.msra.mxu1 %vm8751_vm15, %v8757_v59 }
 0x49a   : > { %v2193_v5 = vpop.permute.xlu0 %2192  ;;  %6921 = vmatprep.subr.bf16.mxu1 %v9373_v36 }
 0x49b   : > { %v2195_v34 = vpop.permute.xlu1 %2194  ;;  %v2198_v35 = vadd.f32 %v2193_v5, %v2184_v8  ;;  %v9400_v8 = vld [vmem:[#allocation30_spill] sm:$0xff] }
 0x49c   : > { %v2199_v49 = vadd.f32 %v2195_v34, %v2185_v24  ;;  %v9401_v34 = vrot.slane %v9400_v8, 1 }
 0x49d   : > { %v2211_v43 = vadd.f32 %v8490_v28, %v2198_v35  ;;  %v9402_v35 = vld [vmem:[#allocation34_spill] sm:$0xff] }
 0x49e   : > { %v2212_v63 = vadd.f32 %v2207_v60, %v2199_v49  ;;  %v2223_v7 = vpop.permute.xlu0 %2222 }
 0x49f   : > { %v2225_v53 = vpop.permute.xlu1 %2224  ;;  %v2228_v29 = vadd.f32 %v2223_v7, %v2211_v43 }
 0x4a0   : > { %v2229_v1 = vadd.f32 %v2225_v53, %v2212_v63 }
 0x4a2   : > { %v2240_v10 = vpop.permute.xlu0 %2239 }
 0x4a3   : > { %v2242_v26 = vpop.permute.xlu1 %2241  ;;  %v2245_v2 = vadd.f32 %v2240_v10, %v2228_v29 }
 0x4a4   : > { %v2246_v31 = vadd.f32 %v2242_v26, %v2229_v1 }
 0x4a5   : > { %v2258_v17 = vadd.f32 %v8499_v0, %v2245_v2 }
 0x4a6   : > { %v2259_v50 = vadd.f32 %v2254_v39, %v2246_v31  ;;  %v2270_v60 = vpop.permute.xlu0 %2269  ;;  %v9403_v31 = vld [vmem:[#allocation32_spill] sm:$0xff] }
 0x4a7   : > { %v2272_v6 = vpop.permute.xlu1 %2271  ;;  %v2275_v33 = vadd.f32 %v2270_v60, %v2258_v17  ;;  %v9404_v10 = vrot.slane %v9403_v31, 2  ;;  %v2427_v60 = vstv %s6200_s18 }
 0x4a8   : > { %v2276_v30 = vadd.f32 %v2272_v6, %v2259_v50  ;;  %v9405_v6 = vld [vmem:[#allocation35_spill] sm:$0xff] }
 0x4aa   : > { %v2287_v56 = vpop.permute.xlu0 %2286 }
 0x4ab   : > { %v2289_v28 = vpop.permute.xlu1 %2288  ;;  %v2292_v48 = vadd.f32 %v2287_v56, %v2275_v33 }
 0x4ac   : > { %v2293_v37 = vadd.f32 %v2289_v28, %v2276_v30 }
 0x4ad   : > { %v2296_v39 = vadd.f32 %v2295_v22, %v2292_v48  ;;  %v2429_v48 = vmul.f32 %v2427_v60, %v8157_v18 }
 0x4ae   : > { %v2297_v55 = vadd.f32 %v2295_v22, %v2293_v37  ;;  %v2311_v54 = vpop.permute.xlu0 %2310 }
 0x4af   : > { %v2313_v0 = vpop.permute.xlu1 %2312  ;;  %v2298_v14 = vmax.f32 %v2296_v39, 0.0  ;;  %v2316_v52 = vadd.f32 %v2311_v54, %v2302_v21 }
 0x4b0   : > { %v2299_v41 = vmax.f32 %v2297_v55, 0.0  ;;  %v2317_v45 = vadd.f32 %v2313_v0, %v2303_v32  ;;  %v2428_v55 = vmul.f32 %v2427_v60, %v8164_v9 }
 0x4b2   : > { %v8763_v44 = vpack.c.bf16 %v2299_v41, %v2298_v14  ;;  %v2325_v16 = vpop.permute.xlu0 %2324 }
 0x4b3   : > { %v2327_v3 = vpop.permute.xlu1 %2326  ;;  %v2330_v4 = vadd.f32 %v2325_v16, %v2316_v52 }
 0x4b4   : > { %v2331_v24 = vadd.f32 %v2327_v3, %v2317_v45 }
 0x4b5   : > { %v2343_v27 = vadd.f32 %v9402_v35, %v2330_v4 }
 0x4b6   : > { %v2344_v49 = vadd.f32 %v9401_v34, %v2331_v24  ;;  %v2355_v63 = vpop.permute.xlu0 %2354 }
 0x4b7   : > { %v2357_v5 = vpop.permute.xlu1 %2356  ;;  %v2360_v43 = vadd.f32 %v2355_v63, %v2343_v27 }
 0x4b8   : > { %v2361_v53 = vadd.f32 %v2357_v5, %v2344_v49 }
 0x4ba   : > { %v2372_v29 = vpop.permute.xlu0 %2371 }
 0x4bb   : > { %v2374_v1 = vpop.permute.xlu1 %2373  ;;  %v2377_v26 = vadd.f32 %v2372_v29, %v2360_v43  ;;  %v2555_v43 = vstv %s6209_s19 }
 0x4bc   : > { %v2378_v7 = vadd.f32 %v2374_v1, %v2361_v53 }
 0x4bd   : > { %v2390_v17 = vadd.f32 %v9405_v6, %v2377_v26  ;;  %v2575_v6 = vsel %vm2573_vm2, 1.0, %v9370_v62 }
 0x4be   : > { %v2391_v2 = vadd.f32 %v9404_v10, %v2378_v7  ;;  %v2402_v30 = vpop.permute.xlu0 %2401 }
 0x4bf   : > { %v2404_v50 = vpop.permute.xlu1 %2403  ;;  %v2407_v22 = vadd.f32 %v2402_v30, %v2390_v17  ;;  %v8799_v30 = vpack.c.bf16 %v2575_v6, %v9399_v12  ;;  %v6294_v6 = vld [vmem:[%s9194_s5 + $0x78] sm:$0x7f] }
 0x4c0   : > { %v2408_v33 = vadd.f32 %v2404_v50, %v2391_v2 }
 0x4c2   : > { %v2419_v56 = vpop.permute.xlu0 %2418 }
 0x4c3   : > { %v2421_v28 = vpop.permute.xlu1 %2420  ;;  %v2424_v11 = vadd.f32 %v2419_v56, %v2407_v22 }
 0x4c4   : > { %v2425_v37 = vadd.f32 %v2421_v28, %v2408_v33 }
 0x4c5   : > { %v2430_v40 = vadd.f32 %v2428_v55, %v2424_v11 }
 0x4c6   : > { %v2431_v39 = vadd.f32 %v2429_v48, %v2425_v37  ;;  %v2439_v41 = vpop.permute.xlu0 %2438 }
 0x4c7   : > { %v2441_v0 = vpop.permute.xlu1 %2440  ;;  %v2444_v54 = vadd.f32 %v2439_v41, %v2430_v40 }
 0x4c8   : > { %v2445_v32 = vadd.f32 %v2441_v0, %v2431_v39 }
 0x4ca   : > { %v2453_v45 = vpop.permute.xlu0 %2452 }
 0x4cb   : > { %v2455_v14 = vpop.permute.xlu1 %2454  ;;  %v2458_v52 = vadd.f32 %v2453_v45, %v2444_v54 }
 0x4cc   : > { %v2459_v21 = vadd.f32 %v2455_v14, %v2445_v32 }
 0x4cd   : > { %v2471_v16 = vadd.f32 %v8508_v20, %v2458_v52 }
 0x4ce   : > { %v2472_v3 = vadd.f32 %v2467_v13, %v2459_v21  ;;  %v2483_v18 = vpop.permute.xlu0 %2482 }
 0x4cf   : > { %v2485_v24 = vpop.permute.xlu1 %2484  ;;  %v2488_v8 = vadd.f32 %v2483_v18, %v2471_v16  ;;  %v6252_v18 = vld [vmem:[%s9194_s5 + $0x8] sm:$0x7f] }
 0x4d0   : > { %v2489_v4 = vadd.f32 %v2485_v24, %v2472_v3 }
 0x4d2   : > { %v2500_v49 = vpop.permute.xlu0 %2499 }
 0x4d3   : > { %v2502_v9 = vpop.permute.xlu1 %2501  ;;  %v2505_v5 = vadd.f32 %v2500_v49, %v2488_v8  ;;  %v6255_v8 = vld [vmem:[%s9194_s5 + $0x10] sm:$0x7f] }
 0x4d4   : > { %v2506_v34 = vadd.f32 %v2502_v9, %v2489_v4 }
 0x4d5   : > { %v2518_v63 = vadd.f32 %v8513_v61, %v2505_v5  ;;  %v6261_v5 = vld [vmem:[%s9194_s5 + $0x20] sm:$0x7f] }
 0x4d6   : > { %v2519_v35 = vadd.f32 %v2514_v23, %v2506_v34  ;;  %v2530_v53 = vpop.permute.xlu0 %2529  ;;  %v6258_v34 = vld [vmem:[%s9194_s5 + $0x18] sm:$0x7f] }
 0x4d7   : > { %v2532_v27 = vpop.permute.xlu1 %2531  ;;  %v2535_v13 = vadd.f32 %v2530_v53, %v2518_v63  ;;  %v6267_v53 = vld [vmem:[%s9194_s5 + $0x30] sm:$0x7f] }
 0x4d8   : > { %v2536_v58 = vadd.f32 %v2532_v27, %v2519_v35  ;;  %v6264_v27 = vld [vmem:[%s9194_s5 + $0x28] sm:$0x7f] }
 0x4da   : > { %v2547_v7 = vpop.permute.xlu0 %2546 }
 0x4db   : > { %v2549_v1 = vpop.permute.xlu1 %2548  ;;  %v2552_v29 = vadd.f32 %v2547_v7, %v2535_v13  ;;  %v6270_v13 = vld [vmem:[%s9194_s5 + $0x38] sm:$0x7f] }
 0x4dc   : > { %v2553_v20 = vadd.f32 %v2549_v1, %v2536_v58 }
 0x4dd   : > { %v2556_v31 = vadd.f32 %v2555_v43, %v2552_v29  ;;  %v6279_v29 = vld [vmem:[%s9194_s5 + $0x50] sm:$0x7f] }
 0x4de   : > { %v2557_v26 = vadd.f32 %v2555_v43, %v2553_v20  ;;  %v6273_v43 = vld [vmem:[%s9194_s5 + $0x40] sm:$0x7f]  ;;  %v6276_v20 = vld [vmem:[%s9194_s5 + $0x48] sm:$0x7f] }
 0x4df   : > { %v2558_v2 = vmax.f32 %v2556_v31, 0.0  ;;  %v6282_v31 = vld [vmem:[%s9194_s5 + $0x58] sm:$0x7f] }
 0x4e0   : > { %v2559_v10 = vmax.f32 %v2557_v26, 0.0 }
 0x4e2   : > { %v8780_v50 = vpack.c.bf16 %v2559_v10, %v2558_v2  ;;  %v6285_v2 = vld [vmem:[%s9194_s5 + $0x60] sm:$0x7f] }
 0x4e4   : > { %6960 = vmatpush3.bf16.msk.msra.mxu0 %vm8655_vm4, %v8780_v50 }
 0x4e5   : > { %6965 = vmatprep.subr.bf16.mxu0 %v9373_v36 }
 0x4e7   : > { %6666 = vmatmul.mubr.msk.f32.vlgmr.msra.gmra.mrb[0].mxu0 %vm2576_vm5, %v8667_v38 }
 0x4e8   : > { %6968 = vmatpush3.bf16.msk.msra.mxu0 %vm8751_vm15, %v8757_v59  ;;  %6679 = vmatprep.mubr.msk.f32.mxu0 %vm7263_vm3, %v9370_v62 }
 0x4e9   : > { %6689 = vmatprep.subr.mxu0 %v9370_v62 }
 0x52a   : > { %v2649_v23 = vpop.f32.mrb[16].mxu1 }
 0x52b   : > { %v6583_v61 = vpop.f32.mrb[17].mxu1 }
 0x52c   : > { %v6291_v61 = vld [vmem:[%s9194_s5 + $0x70] sm:$0x7f] }
 0x52e   : > { %v2722_v17 = vpop.f32.mrb[18].mxu1 }
 0x52f   : > { %v2726_v60 = vmax.f32 %v2649_v23, %v2722_v17  ;;  %v6590_v33 = vpop.f32.mrb[19].mxu1 }
 0x530   : > { %v6300_v33 = vld [vmem:[%s9194_s5 + $0x88] sm:$0x7f] }
 0x531   : > { %6596 = vmatmul.mubr.msk.f32.vlgmr.msra.gmra.mrb[20].mxu1 %vm2576_vm5, %v2726_v60 }
 0x532   : > { %6924 = vmatpush3.bf16.msk.msra.mxu1 %vm8802_vm8, %v8799_v30  ;;  %6602 = vmatprep.mubr.msk.f32.mxu1 %vm7263_vm3, %v9370_v62 }
 0x533   : > { %6925 = vmatprep.subr.bf16.mxu1 %v9373_v36 }
 0x535   : > { %6603 = vmatmul.mubr.msk.f32.vlgmr.msra.gmra.mrb[22].mxu1 %vm2576_vm5, %v2726_v60 }
 0x536   : > { %6928 = vmatpush3.bf16.msk.msra.mxu1 %vm8655_vm4, %v8726_v25  ;;  %6609 = vmatprep.mubr.msk.f32.mxu1 %vm7263_vm3, %v9370_v62 }
 0x537   : > { %6929 = vmatprep.subr.bf16.mxu1 %v9373_v36 }
 0x539   : > { %6610 = vmatmul.mubr.msk.f32.vlgmr.msra.gmra.mrb[24].mxu1 %vm2576_vm5, %v8667_v38 }
 0x53a   : > { %6932 = vmatpush3.bf16.msk.msra.mxu1 %vm8655_vm4, %v8726_v25  ;;  %6616 = vmatprep.mubr.msk.f32.mxu1 %vm7263_vm3, %v9370_v62 }
 0x53b   : > { %6933 = vmatprep.subr.bf16.mxu1 %v9373_v36 }
 0x53d   : > { %6617 = vmatmul.mubr.msk.f32.vlgmr.msra.gmra.mrb[26].mxu1 %vm2576_vm5, %v8683_v42 }
 0x53e   : > { %6936 = vmatpush3.bf16.msk.msra.mxu1 %vm8751_vm15, %v8757_v59  ;;  %6623 = vmatprep.mubr.msk.f32.mxu1 %vm7263_vm3, %v9370_v62 }
 0x53f   : > { %6937 = vmatprep.subr.bf16.mxu1 %v9373_v36 }
 0x5ba   : > { %v3522_v46 = vpop.f32.mrb[0].mxu0 }
 0x604   : > { %v2799_v57 = vpop.f32.mrb[20].mxu1 }
 0x605   : > { %v6597_v19 = vpop.f32.mrb[21].mxu1 }
 0x608   : > { %v2872_v25 = vpop.f32.mrb[22].mxu1 }
 0x609   : > { %v8836_v47 = vmax.f32 %v2799_v57, %v2872_v25  ;;  %v6604_v12 = vpop.f32.mrb[23].mxu1  ;;  %v6303_v57 = vld [vmem:[%s9194_s5 + $0x90] sm:$0x7f]  ;;  %v6306_v25 = vld [vmem:[%s9194_s5 + $0x98] sm:$0x7f] }
 0x60a   : > { %v6309_v12 = vld [vmem:[%s9194_s5 + $0xa0] sm:$0x7f] }
 0x60b   : > { %v3823_v4 = vrot.slane %v8836_v47, 1  ;;  %v3902_v9 = vrot.slane %v8836_v47, 2  ;;  %v3981_v49 = vrot.slane %v8836_v47, 3  ;;  %v4060_v35 = vrot.slane %v8836_v47, 4 }
 0x60c   : > { %v2946_v28 = vpop.f32.mrb[24].mxu1  ;;  %v4139_v63 = vrot.slane %v8836_v47, 5  ;;  %v4218_v58 = vrot.slane %v8836_v47, 6 }
 0x60d   : > { %v6611_v37 = vpop.f32.mrb[25].mxu1 }
 0x60e   : > { %v6312_v37 = vld [vmem:[%s9194_s5 + $0xa8] sm:$0x7f] }
 0x610   : > { %v3016_v56 = vpop.f32.mrb[26].mxu1 }
 0x611   : > { %v3020_v48 = vmax.f32 %v2946_v28, %v3016_v56  ;;  %v6618_v11 = vpop.f32.mrb[27].mxu1 }
 0x613   : > { %6624 = vmatmul.mubr.msk.f32.vlgmr.msra.gmra.mrb[28].mxu1 %vm2576_vm5, %v3020_v48 }
 0x614   : > { %6940 = vmatpush3.bf16.msk.msra.mxu1 %vm8802_vm8, %v8799_v30  ;;  %6630 = vmatprep.mubr.msk.f32.mxu1 %vm7263_vm3, %v9370_v62 }
 0x615   : > { %6941 = vmatprep.subr.bf16.mxu1 %v9373_v36 }
 0x617   : > { %6631 = vmatmul.mubr.msk.f32.vlgmr.msra.gmra.mrb[30].mxu1 %vm2576_vm5, %v3020_v48 }
 0x618   : > { %6944 = vmatpush3.bf16.msk.msra.mxu1 %vm8655_vm4, %v8763_v44  ;;  %6637 = vmatprep.mubr.msk.f32.mxu1 %vm7263_vm3, %v9370_v62 }
 0x619   : > { %6945 = vmatprep.subr.bf16.mxu1 %v9373_v36 }
 0x61b   : > { %6638 = vmatmul.mubr.msk.f32.vlgmr.msra.gmra.mrb[32].mxu1 %vm2576_vm5, %v8667_v38 }
 0x61c   : > { %6948 = vmatpush3.bf16.msk.msra.mxu1 %vm8655_vm4, %v8763_v44  ;;  %6644 = vmatprep.mubr.msk.f32.mxu1 %vm7263_vm3, %v9370_v62 }
 0x61d   : > { %6949 = vmatprep.subr.bf16.mxu1 %v9373_v36 }
 0x61f   : > { %6645 = vmatmul.mubr.msk.f32.vlgmr.msra.gmra.mrb[34].mxu1 %vm2576_vm5, %v8683_v42 }
 0x620   : > { %6952 = vmatpush3.bf16.msk.msra.mxu1 %vm8751_vm15, %v8757_v59  ;;  %6651 = vmatprep.mubr.msk.f32.mxu1 %vm7263_vm3, %v9370_v62  ;;  %v6667_v59 = vpop.f32.mrb[1].mxu0 }
 0x621   : > { %6953 = vmatprep.subr.bf16.mxu1 %v9373_v36 }
 0x6e6   : > { %v3090_v38 = vpop.f32.mrb[28].mxu1 }
 0x6e7   : > { %v6625_v55 = vpop.f32.mrb[29].mxu1 }
 0x6ea   : > { %v3160_v44 = vpop.f32.mrb[30].mxu1 }
 0x6eb   : > { %v8868_v39 = vmax.f32 %v3090_v38, %v3160_v44  ;;  %v6632_v0 = vpop.f32.mrb[31].mxu1  ;;  %v6315_v44 = vld [vmem:[%s9194_s5 + $0xb0] sm:$0x7f] }
 0x6ec   : > { %v6318_v0 = vld [vmem:[%s9194_s5 + $0xb8] sm:$0x7f] }
 0x6ed   : > { %v4376_v1 = vrot.slane %v8868_v39, 1  ;;  %v4455_v7 = vrot.slane %v8868_v39, 2  ;;  %v4534_v26 = vrot.slane %v8868_v39, 3  ;;  %v4613_v10 = vrot.slane %v8868_v39, 4 }
 0x6ee   : > { %v3234_v40 = vpop.f32.mrb[32].mxu1  ;;  %v4771_v23 = vrot.slane %v8868_v39, 6 }
 0x6ef   : > { %v6639_v41 = vpop.f32.mrb[33].mxu1 }
 0x6f0   : > { %v6321_v41 = vld [vmem:[%s9194_s5 + $0xc0] sm:$0x7f] }
 0x6f2   : > { %v3304_v32 = vpop.f32.mrb[34].mxu1 }
 0x6f3   : > { %v3308_v54 = vmax.f32 %v3234_v40, %v3304_v32  ;;  %v6646_v14 = vpop.f32.mrb[35].mxu1 }
 0x6f5   : > { %6652 = vmatmul.mubr.msk.f32.vlgmr.msra.gmra.mrb[36].mxu1 %vm2576_vm5, %v3308_v54 }
 0x6f6   : > { %6956 = vmatpush3.bf16.msk.msra.mxu1 %vm8802_vm8, %v8799_v30  ;;  %6658 = vmatprep.mubr.msk.f32.mxu1 %vm7263_vm3, %v9370_v62 }
 0x6f7   : > { %6961 = vmatprep.subr.bf16.mxu1 %v9373_v36 }
 0x6f9   : > { %6659 = vmatmul.mubr.msk.f32.vlgmr.msra.gmra.mrb[38].mxu1 %vm2576_vm5, %v3308_v54  ;;  %v6324_v54 = vld [vmem:[%s9194_s5 + $0xc8] sm:$0x7f] }
 0x6fa   : > { %6964 = vmatpush3.bf16.msk.msra.mxu1 %vm8655_vm4, %v8780_v50  ;;  %6672 = vmatprep.mubr.msk.f32.mxu1 %vm7263_vm3, %v9370_v62  ;;  %v4692_v50 = vrot.slane %v8868_v39, 5 }
 0x6fb   : > { %6969 = vmatprep.subr.bf16.mxu1 %v9373_v36 }
 0x6fd   : > { %6673 = vmatmul.mubr.msk.f32.vlgmr.msra.gmra.mrb[40].mxu1 %vm2576_vm5, %v8683_v42  ;;  %v3742_v42 = vld [vmem:[%s9194_s5] sm:$0x7f] }
 0x6fe   : > { %6972 = vmatpush3.bf16.msk.msra.mxu1 %vm8802_vm8, %v8799_v30  ;;  %6686 = vmatprep.mubr.msk.f32.mxu1 %vm7263_vm3, %v9370_v62  ;;  %v6297_v30 = vld [vmem:[%s9194_s5 + $0x80] sm:$0x7f] }
 0x7c8   : > { %v3378_v21 = vpop.f32.mrb[36].mxu1 }
 0x7c9   : > { %v6653_v15 = vpop.f32.mrb[37].mxu1 }
 0x7cc   : > { %v3448_v45 = vpop.f32.mrb[38].mxu1 }
 0x7cd   : > { %v8891_v52 = vmax.f32 %v3378_v21, %v3448_v45  ;;  %v6660_v3 = vpop.f32.mrb[39].mxu1  ;;  %v6330_v21 = vld [vmem:[%s9194_s5 + $0xd8] sm:$0x7f]  ;;  %v3741_v45 = vld [vmem:[%s9195_s6] sm:$0x1] }
 0x7cf   : > { %v4929_v17 = vrot.slane %v8891_v52, 1  ;;  %v5008_v60 = vrot.slane %v8891_v52, 2  ;;  %v5087_v22 = vrot.slane %v8891_v52, 3  ;;  %v5166_v19 = vrot.slane %v8891_v52, 4 }
 0x7d0   : > { %v3592_v24 = vpop.f32.mrb[40].mxu1  ;;  %v5324_v28 = vrot.slane %v8891_v52, 6 }
 0x7d1   : > { %v3596_v36 = vmax.f32 %v3522_v46, %v3592_v24  ;;  %v6674_v16 = vpop.f32.mrb[41].mxu1  ;;  %v6327_v46 = vld [vmem:[%s9194_s5 + $0xd0] sm:$0x7f] }
 0x7d3   : > { %6680 = vmatmul.mubr.msk.f32.vlgmr.msra.gmra.mrb[2].mxu0 %vm2576_vm5, %v3596_v36  ;;  %6687 = vmatmul.mubr.msk.f32.vlgmr.msra.gmra.mrb[42].mxu1 %vm2576_vm5, %v3596_v36 }
 0x7d4   : > { %6690 = vmatpush3.msk.msra.mxu0 %vm400_vm0, %v3742_v42  ;;  %6691 = vmatprep.mubr.msk.f32.mxu0 %vm7263_vm3, %v9370_v62 }
 0x7d5   : > { %6694 = vmatprep.subr.mxu0 %v9370_v62 }
 0x7d7   : > { %6692 = vmatmul.mubr.msk.f32.vlgmr.msra.gmra.mrb[4].mxu0 %vm3743_vm1, %v8836_v47  ;;  %v5245_v47 = vrot.slane %v8891_v52, 5 }
 0x7d8   : > { %6695 = vmatpush3.msk.msra.mxu0 %vm400_vm0, %v6252_v18  ;;  %6696 = vmatprep.mubr.msk.f32.mxu0 %vm7263_vm3, %v9370_v62 }
 0x7d9   : > { %6699 = vmatprep.subr.mxu0 %v9370_v62 }
 0x7df   : > { %6697 = vmatmul.mubr.msk.f32.vlgmr.msra.gmra.mrb[4].mxu0 %vm3743_vm1, %v3823_v4 }
 0x7e0   : > { %6700 = vmatpush3.msk.msra.mxu0 %vm400_vm0, %v6255_v8  ;;  %6701 = vmatprep.mubr.msk.f32.mxu0 %vm7263_vm3, %v9370_v62 }
 0x7e1   : > { %6704 = vmatprep.subr.mxu0 %v9370_v62 }
 0x7e7   : > { %6702 = vmatmul.mubr.msk.f32.vlgmr.msra.gmra.mrb[4].mxu0 %vm3743_vm1, %v3902_v9 }
 0x7e8   : > { %6705 = vmatpush3.msk.msra.mxu0 %vm400_vm0, %v6258_v34  ;;  %6706 = vmatprep.mubr.msk.f32.mxu0 %vm7263_vm3, %v9370_v62 }
 0x7e9   : > { %6709 = vmatprep.subr.mxu0 %v9370_v62 }
 0x7ef   : > { %6707 = vmatmul.mubr.msk.f32.vlgmr.msra.gmra.mrb[4].mxu0 %vm3743_vm1, %v3981_v49 }
 0x7f0   : > { %6710 = vmatpush3.msk.msra.mxu0 %vm400_vm0, %v6261_v5  ;;  %6711 = vmatprep.mubr.msk.f32.mxu0 %vm7263_vm3, %v9370_v62 }
 0x7f1   : > { %6714 = vmatprep.subr.mxu0 %v9370_v62 }
 0x7f7   : > { %6712 = vmatmul.mubr.msk.f32.vlgmr.msra.gmra.mrb[4].mxu0 %vm3743_vm1, %v4060_v35 }
 0x7f8   : > { %6715 = vmatpush3.msk.msra.mxu0 %vm400_vm0, %v6264_v27  ;;  %6716 = vmatprep.mubr.msk.f32.mxu0 %vm7263_vm3, %v9370_v62 }
 0x7f9   : > { %6719 = vmatprep.subr.mxu0 %v9370_v62 }
 0x7ff   : > { %6717 = vmatmul.mubr.msk.f32.vlgmr.msra.gmra.mrb[4].mxu0 %vm3743_vm1, %v4139_v63 }
 0x800   : > { %6720 = vmatpush3.msk.msra.mxu0 %vm400_vm0, %v6267_v53  ;;  %6721 = vmatprep.mubr.msk.f32.mxu0 %vm7263_vm3, %v9370_v62 }
 0x801   : > { %6724 = vmatprep.subr.mxu0 %v9370_v62 }
 0x807   : > { %6722 = vmatmul.mubr.msk.f32.vlgmr.msra.gmra.mrb[4].mxu0 %vm3743_vm1, %v4218_v58 }
 0x808   : > { %6725 = vmatpush3.msk.msra.mxu0 %vm400_vm0, %v6270_v13  ;;  %6726 = vmatprep.mubr.msk.f32.mxu0 %vm7263_vm3, %v9370_v62 }
 0x809   : > { %6729 = vmatprep.subr.mxu0 %v9370_v62 }
 0x80f   : > { %6727 = vmatmul.mubr.msk.f32.vlgmr.msra.gmra.mrb[4].mxu0 %vm3743_vm1, %v8868_v39 }
 0x810   : > { %6730 = vmatpush3.msk.msra.mxu0 %vm400_vm0, %v6273_v43  ;;  %6731 = vmatprep.mubr.msk.f32.mxu0 %vm7263_vm3, %v9370_v62 }
 0x811   : > { %6734 = vmatprep.subr.mxu0 %v9370_v62 }
 0x817   : > { %6732 = vmatmul.mubr.msk.f32.vlgmr.msra.gmra.mrb[4].mxu0 %vm3743_vm1, %v4376_v1 }
 0x818   : > { %6735 = vmatpush3.msk.msra.mxu0 %vm400_vm0, %v6276_v20  ;;  %6736 = vmatprep.mubr.msk.f32.mxu0 %vm7263_vm3, %v9370_v62 }
 0x819   : > { %6739 = vmatprep.subr.mxu0 %v9370_v62 }
 0x81f   : > { %6737 = vmatmul.mubr.msk.f32.vlgmr.msra.gmra.mrb[4].mxu0 %vm3743_vm1, %v4455_v7 }
 0x820   : > { %6740 = vmatpush3.msk.msra.mxu0 %vm400_vm0, %v6279_v29  ;;  %6741 = vmatprep.mubr.msk.f32.mxu0 %vm7263_vm3, %v9370_v62 }
 0x821   : > { %6744 = vmatprep.subr.mxu0 %v9370_v62 }
 0x827   : > { %6742 = vmatmul.mubr.msk.f32.vlgmr.msra.gmra.mrb[4].mxu0 %vm3743_vm1, %v4534_v26 }
 0x828   : > { %6745 = vmatpush3.msk.msra.mxu0 %vm400_vm0, %v6282_v31  ;;  %6746 = vmatprep.mubr.msk.f32.mxu0 %vm7263_vm3, %v9370_v62 }
 0x829   : > { %6749 = vmatprep.subr.mxu0 %v9370_v62 }
 0x82f   : > { %6747 = vmatmul.mubr.msk.f32.vlgmr.msra.gmra.mrb[4].mxu0 %vm3743_vm1, %v4613_v10 }
 0x830   : > { %6750 = vmatpush3.msk.msra.mxu0 %vm400_vm0, %v6285_v2  ;;  %6751 = vmatprep.mubr.msk.f32.mxu0 %vm7263_vm3, %v9370_v62 }
 0x831   : > { %6754 = vmatprep.subr.mxu0 %v9370_v62 }
 0x837   : > { %6752 = vmatmul.mubr.msk.f32.vlgmr.msra.gmra.mrb[4].mxu0 %vm3743_vm1, %v4692_v50 }
 0x838   : > { %6755 = vmatpush3.msk.msra.mxu0 %vm400_vm0, %v6288_v51  ;;  %6756 = vmatprep.mubr.msk.f32.mxu0 %vm7263_vm3, %v9370_v62 }
 0x839   : > { %6759 = vmatprep.subr.mxu0 %v9370_v62 }
 0x83f   : > { %6757 = vmatmul.mubr.msk.f32.vlgmr.msra.gmra.mrb[4].mxu0 %vm3743_vm1, %v4771_v23 }
 0x840   : > { %6760 = vmatpush3.msk.msra.mxu0 %vm400_vm0, %v6291_v61  ;;  %6761 = vmatprep.mubr.msk.f32.mxu0 %vm7263_vm3, %v9370_v62 }
 0x841   : > { %6764 = vmatprep.subr.mxu0 %v9370_v62 }
 0x847   : > { %6762 = vmatmul.mubr.msk.f32.vlgmr.msra.gmra.mrb[4].mxu0 %vm3743_vm1, %v8891_v52 }
 0x848   : > { %6765 = vmatpush3.msk.msra.mxu0 %vm400_vm0, %v6294_v6  ;;  %6766 = vmatprep.mubr.msk.f32.mxu0 %vm7263_vm3, %v9370_v62 }
 0x849   : > { %6769 = vmatprep.subr.mxu0 %v9370_v62 }
 0x84f   : > { %6767 = vmatmul.mubr.msk.f32.vlgmr.msra.gmra.mrb[4].mxu0 %vm3743_vm1, %v4929_v17 }
 0x850   : > { %6770 = vmatpush3.msk.msra.mxu0 %vm400_vm0, %v6297_v30  ;;  %6771 = vmatprep.mubr.msk.f32.mxu0 %vm7263_vm3, %v9370_v62 }
 0x851   : > { %6774 = vmatprep.subr.mxu0 %v9370_v62 }
 0x857   : > { %6772 = vmatmul.mubr.msk.f32.vlgmr.msra.gmra.mrb[4].mxu0 %vm3743_vm1, %v5008_v60 }
 0x858   : > { %6775 = vmatpush3.msk.msra.mxu0 %vm400_vm0, %v6300_v33  ;;  %6776 = vmatprep.mubr.msk.f32.mxu0 %vm7263_vm3, %v9370_v62 }
 0x859   : > { %6779 = vmatprep.subr.mxu0 %v9370_v62 }
 0x85f   : > { %6777 = vmatmul.mubr.msk.f32.vlgmr.msra.gmra.mrb[4].mxu0 %vm3743_vm1, %v5087_v22 }
 0x860   : > { %6780 = vmatpush3.msk.msra.mxu0 %vm400_vm0, %v6303_v57  ;;  %6781 = vmatprep.mubr.msk.f32.mxu0 %vm7263_vm3, %v9370_v62 }
 0x861   : > { %6784 = vmatprep.subr.mxu0 %v9370_v62 }
 0x867   : > { %6782 = vmatmul.mubr.msk.f32.vlgmr.msra.gmra.mrb[4].mxu0 %vm3743_vm1, %v5166_v19 }
 0x868   : > { %6785 = vmatpush3.msk.msra.mxu0 %vm400_vm0, %v6306_v25  ;;  %6786 = vmatprep.mubr.msk.f32.mxu0 %vm7263_vm3, %v9370_v62 }
 0x869   : > { %6789 = vmatprep.subr.mxu0 %v9370_v62 }
 0x86f   : > { %6787 = vmatmul.mubr.msk.f32.vlgmr.msra.gmra.mrb[4].mxu0 %vm3743_vm1, %v5245_v47 }
 0x870   : > { %6790 = vmatpush3.msk.msra.mxu0 %vm400_vm0, %v6309_v12  ;;  %6791 = vmatprep.mubr.msk.f32.mxu0 %vm7263_vm3, %v9370_v62 }
 0x871   : > { %6794 = vmatprep.subr.mxu0 %v9370_v62 }
 0x877   : > { %6792 = vmatmul.mubr.msk.f32.vlgmr.msra.gmra.mrb[4].mxu0 %vm3743_vm1, %v5324_v28 }
 0x878   : > { %6795 = vmatpush3.msk.msra.mxu0 %vm400_vm0, %v6312_v37  ;;  %6796 = vmatprep.mubr.msk.f32.mxu0 %vm7263_vm3, %v9370_v62 }
 0x879   : > { %6799 = vmatprep.subr.mxu0 %v9370_v62 }
 0x8a6   : > { %v3666_v56 = vpop.f32.mrb[2].mxu0  ;;  %v3736_v48 = vpop.f32.mrb[42].mxu1 }
 0x8a7   : > { %v3740_v11 = vmax.f32 %v3666_v56, %v3736_v48  ;;  %v6681_v38 = vpop.f32.mrb[3].mxu0  ;;  %v6688_v55 = vpop.f32.mrb[43].mxu1 }
 0x8a9   : > { %6797 = vmatmul.mubr.msk.f32.vlgmr.msra.gmra.mrb[4].mxu0 %vm3743_vm1, %v3740_v11  ;;  %v5482_v39 = vrot.slane %v3740_v11, 1  ;;  %v5561_v40 = vrot.slane %v3740_v11, 2  ;;  %v5640_v32 = vrot.slane %v3740_v11, 3  ;;  %v5719_v14 = vrot.slane %v3740_v11, 4 }
 0x8aa   : > { %6800 = vmatpush3.msk.msra.mxu0 %vm400_vm0, %v6315_v44  ;;  %6801 = vmatprep.mubr.msk.f32.mxu0 %vm7263_vm3, %v9370_v62  ;;  %v5798_v59 = vrot.slane %v3740_v11, 5  ;;  %v5877_v15 = vrot.slane %v3740_v11, 6 }
 0x8ab   : > { %6804 = vmatprep.subr.mxu0 %v9370_v62 }
 0x8b1   : > { %6802 = vmatmul.mubr.msk.f32.vlgmr.msra.gmra.mrb[4].mxu0 %vm3743_vm1, %v5482_v39 }
 0x8b2   : > { %6805 = vmatpush3.msk.msra.mxu0 %vm400_vm0, %v6318_v0  ;;  %6806 = vmatprep.mubr.msk.f32.mxu0 %vm7263_vm3, %v9370_v62 }
 0x8b3   : > { %6809 = vmatprep.subr.mxu0 %v9370_v62 }
 0x8b9   : > { %6807 = vmatmul.mubr.msk.f32.vlgmr.msra.gmra.mrb[4].mxu0 %vm3743_vm1, %v5561_v40 }
 0x8ba   : > { %6810 = vmatpush3.msk.msra.mxu0 %vm400_vm0, %v6321_v41  ;;  %6811 = vmatprep.mubr.msk.f32.mxu0 %vm7263_vm3, %v9370_v62 }
 0x8bb   : > { %6814 = vmatprep.subr.mxu0 %v9370_v62 }
 0x8c1   : > { %6812 = vmatmul.mubr.msk.f32.vlgmr.msra.gmra.mrb[4].mxu0 %vm3743_vm1, %v5640_v32 }
 0x8c2   : > { %6815 = vmatpush3.msk.msra.mxu0 %vm400_vm0, %v6324_v54  ;;  %6816 = vmatprep.mubr.msk.f32.mxu0 %vm7263_vm3, %v9370_v62 }
 0x8c3   : > { %6819 = vmatprep.subr.mxu0 %v9370_v62 }
 0x8c9   : > { %6817 = vmatmul.mubr.msk.f32.vlgmr.msra.gmra.mrb[4].mxu0 %vm3743_vm1, %v5719_v14 }
 0x8ca   : > { %6820 = vmatpush3.msk.msra.mxu0 %vm400_vm0, %v6327_v46  ;;  %6821 = vmatprep.mubr.msk.f32.mxu0 %vm7263_vm3, %v9370_v62 }
 0x8cb   : > { %6824 = vmatprep.subr.mxu0 %v9370_v62 }
 0x8d1   : > { %6822 = vmatmul.mubr.msk.f32.vlgmr.msra.gmra.mrb[4].mxu0 %vm3743_vm1, %v5798_v59 }
 0x8d2   : > { %6825 = vmatpush3.msk.msra.mxu0 %vm400_vm0, %v6330_v21  ;;  %6826 = vmatprep.mubr.msk.f32.mxu0 %vm7263_vm3, %v9370_v62 }
 0x8d9   : > { %6827 = vmatmul.mubr.msk.f32.vlgmr.msra.gmra.mrb[4].mxu0 %vm3743_vm1, %v5877_v15 }
 0x9ac   : > { %v5949_v52 = vpop.f32.mrb[4].mxu0 }
 0x9ad   : > { %v6973_v3 = vadd.f32 %v5949_v52, %v3741_v45  ;;  %v6828_v24 = vpop.f32.mrb[5].mxu0 }
 0x9af   : > { %5955 = vst.msk [vmem:[%s322_s14] sm:$0x1] %vm5954_vm9, %v6973_v3 }
 0x9b0   : > { %7189 = shalt.err (!%p7186_p9)
}
 0x9b1   : > { %s7190_s22 = scalar_lea.hbm %s9147_s29, 16  ;;  %s7194_s23 = scalar_lea.hbm %s9196_s7, 32 }
 0x9b2   : > { %p7191_p7 = scmp.ne.s32.totalorder %s9147_s29, %s7190_s22  ;;  %p7195_p6 = scmp.lt.u32.totalorder %s9147_s29, %s9196_s7 }
 0x9b3   : > { %p7196_p12 = scmp.lt.u32.totalorder %s7194_s23, %s7190_s22  ;;  %p7198_p8 = scmp.lt.u32.totalorder %s7190_s22, %s9147_s29 }
 0x9b4   : > { %p7192_p0 = pnand %p7191_p7, %p9408_p11 }
 0x9b5   : > { %p7197_p10 = por %p7196_p12, %p7195_p6 }
 0x9b6   : > { %p7193_p5 = pneg %p7192_p0 }
 0x9b7   : > { %p7199_p13 = por %p7198_p8, %p7197_p10 }
 0x9b9   : > { %p7200_p1 = pnand %p7199_p13, %p7193_p5 }
 0x9bb   : > { %7203 = shalt.err (!%p7200_p1)
}
 0x9bc   : > { %7044 = dma.vmem_to_hbm [thread:$0]  (%p9408_p11), %s9149_s15, 16, %s9147_s29, %s5957_s8  }
 0x9bd PF: > { %p7071_p2 = scmp.ge.s32.totalorder %s7250_s27, 2  ;;  %s5981_s16 = sand.u32 1, %s7238_s24  }
 0x9be   : > { %p9409_p3 = scmp.ne.s32.totalorder %s9264_s12, 0  ;;  %s5982_s14 = scalar_lea.sflag [#allocation3], %s5981_s16 }
 0x9c0   : > { %p7060_p4 = pnand %p7071_p2, %p9409_p3 }
 0x9c2   : > { %7233 = dma.done.wait (!%p7060_p4), %s5982_s14, 16  }
 0x9c3   : > { %7235 = vsyncadd (!%p7060_p4), %s5982_s14, 4294967280  ;;  %p20_p9 = scmp.ge.s32.totalorder %s7330_s30, 4   ;;  %s9410_s24 = smov %s7242_s25 }
 0x9c4   : > { %s9411_s25 = smov %s7246_s26  ;;  %s9412_s26 = smov %s7341_s10 }
 0x9c5   : > { %s9413_s27 = smov %s7330_s30  ;;  %22 = sbr.rel (!%p20_p9) target bundleno = 9 (0x9), region = 127 }
 0x9cc   :  { %5986 = vsyncpa [#allocation3], 1 }
 0x9cd   :  { %5988 = vsyncpa [#allocation3 + $0x1], 1 }
 0x9ce   :  { %5989 = vsyncpa [#allocation4], 1 }
 0x9cf   :  { %5991 = vsyncpa [#allocation4 + $0x1], 1 }
 0x9d0   :  { %5992 = vsyncpa [#allocation6], 1 }
 0x9d1   :  { %5993 = vsyncpa [#allocation9], 1 }

</bundles_post_ra>
